<compile_context>
chip_gen: v6e
topology: v6e:2x2x1
jax: 0.10.0
libtpu: 0.0.40
codegen_flags: <defaults>
</compile_context>

<pallas_src>
import functools

import jax
import jax.numpy as jnp
from jax import lax
from jax.experimental import pallas as pl
from jax.experimental.pallas import tpu as pltpu

EPS = 1e-5          # nn.BatchNorm2d default eps
LANE = 128          # TPU lane width; channels are padded to this
VMEM_LIMIT = 32 * 1024 * 1024


# ------------------------------ small helpers -------------------------------

def _round_up(x, m):
    return ((x + m - 1) // m) * m


def _pick_block(total, target, multiple):
    """Largest divisor of `total` that is <= target and a multiple of `multiple`;
    falls back to `total` (single block)."""
    if total <= target:
        return total
    b = (target // multiple) * multiple
    while b >= multiple:
        if total % b == 0:
            return b
        b -= multiple
    return total


def _mosaic_params(n_axes):
    return pltpu.CompilerParams(
        dimension_semantics=("parallel",) * n_axes,   # shards across v7x's 2 TCs
        vmem_limit_bytes=VMEM_LIMIT)


# ----------------------------- Pallas kernels ------------------------------

def _conv_stats_kernel(x_ref, w_ref, b_ref, y_ref, sum_ref, sq_ref, *,
                       kh, hw, row_w):
    # x_ref:   (1, Hp*W, KW*Cin)  padded image, KW column taps pre-concatenated
    # w_ref:   (KH, KW*Cin, CP)   weights, KW*Cin folded into one contraction
    # b_ref:   (1, CP)            bias (f32)
    # y_ref:   (1, H*W, CP)       raw conv + bias output (f32)
    # sum_ref: (1, 1, CP)         per-image partial sum   (for BN batch stats)
    # sq_ref:  (1, 1, CP)         per-image partial sumsq (for BN batch stats)
    xt = x_ref[0]                                   # (Hp*W, KW*Cin)
    cp = w_ref.shape[-1]
    acc = jnp.zeros((hw, cp), jnp.float32)
    for i in range(kh):                             # static unroll: KH MXU matmuls, K = KW*Cin
        lhs = xt[i * row_w:i * row_w + hw, :]       # aligned sublane slice == shift by one row
        acc = acc + jnp.dot(lhs, w_ref[i], preferred_element_type=jnp.float32)
    acc = acc + b_ref[...]                          # (1, CP) lane-dense broadcast
    y_ref[0] = acc
    sum_ref[0] = jnp.sum(acc, axis=0, keepdims=True)
    sq_ref[0] = jnp.sum(acc * acc, axis=0, keepdims=True)


def _bn_relu_kernel(y_ref, scale_ref, shift_ref, o_ref):
    # y_ref/o_ref: (bm, CP); scale/shift: (1, CP) precomputed gamma*invstd / beta - mean*scale
    o_ref[...] = jnp.maximum(y_ref[...] * scale_ref[...] + shift_ref[...], 0.0)


def _bn_relu_pool_kernel(y_ref, scale_ref, shift_ref, skip_ref, pool_ref):
    # y_ref/skip_ref: (bp, 2, W2, 2, CP);  pool_ref: (bp, W2, CP)
    y = y_ref[...]
    cp = y.shape[-1]
    s = scale_ref[...].reshape((1, 1, 1, 1, cp))
    t = shift_ref[...].reshape((1, 1, 1, 1, cp))
    z = jnp.maximum(y * s + t, 0.0)                 # BN affine + ReLU (f32 epilogue)
    skip_ref[...] = z                               # skip-connection output
    zh = jnp.maximum(z[:, 0], z[:, 1])              # pool over H pairs -> (bp, W2, 2, CP)
    pool_ref[...] = jnp.maximum(zh[:, :, 0, :], zh[:, :, 1, :])   # pool over W pairs


# ------------------------------ JAX wrappers --------------------------------

def _build_conv_input(x, kh, kw):
    """x: (N,H,W,C) -> (N, (H+kh-1)*W, kw*C).

    Zero 'same' padding; the kw column taps are concatenated on the channel axis
    and rows are flattened so a one-row shift is a +W offset in the kernel."""
    n, h, w, c = x.shape
    ph, pw = kh // 2, kw // 2
    xp = jnp.pad(x, ((0, 0), (ph, ph), (pw, pw), (0, 0)))
    cols = [xp[:, :, j:j + w, :] for j in range(kw)]
    xk = jnp.concatenate(cols, axis=-1)             # (N, H+2*ph, W, kw*C)
    return xk.reshape(n, (h + 2 * ph) * w, kw * c)


def _conv_bias_stats(x, w, b, cp, compute_dtype):
    """Tiled conv + bias; also emits per-image partial BN statistics."""
    n, h, wd, cin = x.shape
    kh, kw, _, cout = w.shape
    assert kh % 2 == 1 and kw % 2 == 1, "padding=k//2 ('same') assumes odd kernel size"
    hw = h * wd
    hp = h + kh - 1
    kwc = kw * cin

    xk = _build_conv_input(x, kh, kw).astype(compute_dtype)
    wk = jnp.pad(w, ((0, 0), (0, 0), (0, 0), (0, cp - cout)))
    wk = wk.reshape(kh, kwc, cp).astype(compute_dtype)         # (KH, KW*Cin, CP)
    bp = jnp.pad(b, (0, cp - cout)).reshape(1, cp).astype(jnp.float32)

    kern = functools.partial(_conv_stats_kernel, kh=kh, hw=hw, row_w=wd)
    y_raw, psum, psq = pl.pallas_call(
        kern,
        out_shape=(jax.ShapeDtypeStruct((n, hw, cp), jnp.float32),
                   jax.ShapeDtypeStruct((n, 1, cp), jnp.float32),
                   jax.ShapeDtypeStruct((n, 1, cp), jnp.float32)),
        grid=(n,),
        in_specs=[
            pl.BlockSpec((1, hp * wd, kwc), lambda i: (i, 0, 0)),
            pl.BlockSpec((kh, kwc, cp), lambda i: (0, 0, 0)),
            pl.BlockSpec((1, cp), lambda i: (0, 0)),
        ],
        out_specs=(pl.BlockSpec((1, hw, cp), lambda i: (i, 0, 0)),
                   pl.BlockSpec((1, 1, cp), lambda i: (i, 0, 0)),
                   pl.BlockSpec((1, 1, cp), lambda i: (i, 0, 0))),
        compiler_params=_mosaic_params(1),
    )(xk, wk, bp)
    return y_raw, psum, psq


def _bn_affine(psum, psq, gamma, beta, count, cp):
    """Tiny per-channel finalize of the batch statistics (glue-level math)."""
    cout = gamma.shape[0]
    s = jnp.sum(psum[:, 0, :], axis=0)
    ss = jnp.sum(psq[:, 0, :], axis=0)
    mean = s / count
    var = jnp.maximum(ss / count - mean * mean, 0.0)   # biased, training-mode variance
    inv = lax.rsqrt(var + EPS)
    # padded channels get gamma=0 / beta=0 -> normalized output is exactly 0 there
    scale = jnp.pad(gamma, (0, cp - cout)) * inv
    shift = jnp.pad(beta, (0, cp - cout)) - mean * scale
    return scale.reshape(1, cp), shift.reshape(1, cp)


def _bn_relu(y_raw, scale, shift, n, h, wd, cout, block_rows=256):
    """Tiled normalize + ReLU over the flattened (M, CP) activation."""
    cp = y_raw.shape[-1]
    m = n * h * wd
    bm = _pick_block(m, block_rows, 8)
    yf = y_raw.reshape(m, cp)
    out = pl.pallas_call(
        _bn_relu_kernel,
        out_shape=jax.ShapeDtypeStruct((m, cp), jnp.float32),
        grid=(m // bm,),
        in_specs=[pl.BlockSpec((bm, cp), lambda i: (i, 0)),
                  pl.BlockSpec((1, cp), lambda i: (0, 0)),
                  pl.BlockSpec((1, cp), lambda i: (0, 0))],
        out_specs=pl.BlockSpec((bm, cp), lambda i: (i, 0)),
        compiler_params=_mosaic_params(1),
    )(yf, scale, shift)
    return out.reshape(n, h, wd, cp)[..., :cout]


def _bn_relu_pool(y_raw, scale, shift, n, h, wd, cout, block_pairs=8):
    """Tiled normalize + ReLU with the 2x2 max-pool fused into the epilogue."""
    cp = y_raw.shape[-1]
    h2, w2 = h // 2, wd // 2
    rows = n * h2
    bp = _pick_block(rows, block_pairs, 1)
    y5 = y_raw.reshape(rows, 2, w2, 2, cp)
    skip5, pooled = pl.pallas_call(
        _bn_relu_pool_kernel,
        out_shape=(jax.ShapeDtypeStruct((rows, 2, w2, 2, cp), jnp.float32),
                   jax.ShapeDtypeStruct((rows, w2, cp), jnp.float32)),
        grid=(rows // bp,),
        in_specs=[pl.BlockSpec((bp, 2, w2, 2, cp), lambda i: (i, 0, 0, 0, 0)),
                  pl.BlockSpec((1, cp), lambda i: (0, 0)),
                  pl.BlockSpec((1, cp), lambda i: (0, 0))],
        out_specs=(pl.BlockSpec((bp, 2, w2, 2, cp), lambda i: (i, 0, 0, 0, 0)),
                   pl.BlockSpec((bp, w2, cp), lambda i: (i, 0, 0))),
        compiler_params=_mosaic_params(1),
    )(y5, scale, shift)
    skip = skip5.reshape(n, h, wd, cp)[..., :cout]
    pooled = pooled.reshape(n, h2, w2, cp)[..., :cout]
    return skip, pooled


def downsampling_block(x_nchw, params, compute_dtype=jnp.float32):
    """Matches DownSamplingBlock.forward.  x: NCHW.  Returns (pooled, skip), NCHW."""
    x = jnp.transpose(x_nchw, (0, 2, 3, 1)).astype(jnp.float32)   # NCHW -> NHWC
    n, h, wd, _ = x.shape
    assert h % 2 == 0 and wd % 2 == 0, "MaxPool2d(2) assumes even H, W"
    cout = params["w1"].shape[-1]
    cp = max(LANE, _round_up(cout, LANE))
    m = n * h * wd

    # conv1 -> BN1 (batch stats) -> ReLU1
    y1_raw, s1, q1 = _conv_bias_stats(x, params["w1"], params["b1"], cp, compute_dtype)
    sc1, sh1 = _bn_affine(s1, q1, params["g1"], params["be1"], m, cp)
    y1 = _bn_relu(y1_raw, sc1, sh1, n, h, wd, cout)

    # conv2 -> BN2 -> ReLU2  (+ fused 2x2 max-pool in the epilogue pass)
    y2_raw, s2, q2 = _conv_bias_stats(y1, params["w2"], params["b2"], cp, compute_dtype)
    sc2, sh2 = _bn_affine(s2, q2, params["g2"], params["be2"], m, cp)
    skip, pooled = _bn_relu_pool(y2_raw, sc2, sh2, n, h, wd, cout)

    return (jnp.transpose(pooled, (0, 3, 1, 2)),                  # NHWC -> NCHW
            jnp.transpose(skip, (0, 3, 1, 2)))


# ------------------------------ reference -----------------------------------

def _ref_conv_bn_relu(x, w, b, gamma, beta):
    y = lax.conv_general_dilated(
        x, w, window_strides=(1, 1), padding="SAME",
        dimension_numbers=("NHWC", "HWIO", "NHWC"),
        precision=lax.Precision.HIGHEST)
    y = y + b
    mean = jnp.mean(y, axis=(0, 1, 2), keepdims=True)
    var = jnp.mean(jnp.square(y - mean), axis=(0, 1, 2), keepdims=True)
    y = (y - mean) * lax.rsqrt(var + EPS) * gamma + beta
    return jnp.maximum(y, 0.0)


def _ref_block(x_nchw, p):
    x = jnp.transpose(x_nchw, (0, 2, 3, 1))
    y = _ref_conv_bn_relu(x, p["w1"], p["b1"], p["g1"], p["be1"])
    y = _ref_conv_bn_relu(y, p["w2"], p["b2"], p["g2"], p["be2"])
    n, h, w, c = y.shape
    pooled = jnp.max(y.reshape(n, h // 2, 2, w // 2, 2, c), axis=(2, 4))
    return (jnp.transpose(pooled, (0, 3, 1, 2)),
            jnp.transpose(y, (0, 3, 1, 2)))


# --------------------------------- main --------------------------------------

if __name__ == "__main__":
    # DownSamplingBlock(kernelSize=3, inputFeatures=4, outputFeatures=8, factor=2)
    N, CIN, COUT, H, W, K = 2, 4, 8, 16, 16, 3

    key = jax.random.PRNGKey(0)
    k_x, k_w1, k_b1, k_w2, k_b2 = jax.random.split(key, 5)

    x = jax.random.normal(k_x, (N, CIN, H, W), jnp.float32)   # NCHW like PyTorch

    params = {
        "w1": jax.random.normal(k_w1, (K, K, CIN, COUT), jnp.float32) * 0.2,
        "b1": jax.random.normal(k_b1, (COUT,), jnp.float32) * 0.1,
        "g1": jnp.ones((COUT,), jnp.float32),     # BatchNorm2d default gamma
        "be1": jnp.zeros((COUT,), jnp.float32),   # BatchNorm2d default beta
        "w2": jax.random.normal(k_w2, (K, K, COUT, COUT), jnp.float32) * 0.2,
        "b2": jax.random.normal(k_b2, (COUT,), jnp.float32) * 0.1,
        "g2": jnp.ones((COUT,), jnp.float32),
        "be2": jnp.zeros((COUT,), jnp.float32),
    }

    ref_pooled, ref_skip = _ref_block(x, params)

    # f32 matmul-operand path (checked tightly).
    fwd_f32 = jax.jit(functools.partial(downsampling_block, compute_dtype=jnp.float32))
    pooled, skip = fwd_f32(x, params)
    jax.block_until_ready((pooled, skip))
    assert pooled.shape == (N, COUT, H // 2, W // 2), pooled.shape
    assert skip.shape == (N, COUT, H, W), skip.shape
    assert jnp.allclose(skip, ref_skip, atol=1e-3, rtol=1e-3), "skip mismatch (f32)"
    assert jnp.allclose(pooled, ref_pooled, atol=1e-3, rtol=1e-3), "pool mismatch (f32)"

    # bf16 matmul-operand path (v6e/v7x MXU optimization): f32 accumulation and
    # f32 BN/ReLU epilogue, so only the conv operands are narrowed -> loose check.
    fwd_bf16 = jax.jit(functools.partial(downsampling_block, compute_dtype=jnp.bfloat16))
    pooled_b, skip_b = fwd_bf16(x, params)
    jax.block_until_ready((pooled_b, skip_b))
    assert jnp.allclose(skip_b, ref_skip, atol=2e-1, rtol=2e-1), "skip mismatch (bf16)"
    assert jnp.allclose(pooled_b, ref_pooled, atol=2e-1, rtol=2e-1), "pool mismatch (bf16)"

    print("KERNEL_OK")
</pallas_src>

<mosaic_0001>
module attributes {stable_mosaic.version = 11 : i64} {
  func.func @_conv_stats_kernel(%arg0: i32, %arg1: memref<1x288x12xf32, #tpu.memory_space<vmem>>, %arg2: memref<3x12x128xf32, #tpu.memory_space<vmem>>, %arg3: memref<1x128xf32, #tpu.memory_space<vmem>>, %arg4: memref<1x256x128xf32, #tpu.memory_space<vmem>>, %arg5: memref<1x1x128xf32, #tpu.memory_space<vmem>>, %arg6: memref<1x1x128xf32, #tpu.memory_space<vmem>>) attributes {dimension_semantics = [#tpu.dimension_semantics<parallel>], iteration_bounds = array<i64: 2>, scalar_prefetch = 0 : i64, scratch_operands = 0 : i64, tpu.core_type = #tpu.core_type<tc>, window_params = [{transform_indices = @transform_0, window_bounds = array<i64: 1, 288, 12>}, {pipeline_mode = #tpu.pipeline_mode<synchronous>, transform_indices = @transform_1, window_bounds = array<i64: 3, 12, 128>}, {pipeline_mode = #tpu.pipeline_mode<synchronous>, transform_indices = @transform_2, window_bounds = array<i64: 1, 128>}, {transform_indices = @transform_3, window_bounds = array<i64: 1, 256, 128>}, {transform_indices = @transform_4, window_bounds = array<i64: 1, 1, 128>}, {transform_indices = @transform_5, window_bounds = array<i64: 1, 1, 128>}]} {
    %c0 = arith.constant 0 : index
    %c0_0 = arith.constant 0 : index
    %c0_1 = arith.constant 0 : index
    %0 = vector.load %arg1[%c0, %c0_0, %c0_1] : memref<1x288x12xf32, #tpu.memory_space<vmem>>, vector<1x288x12xf32>
    %1 = vector.shape_cast %0 : vector<1x288x12xf32> to vector<288x12xf32>
    %cst = arith.constant 0.000000e+00 : f32
    %2 = vector.broadcast %cst : f32 to vector<256x128xf32>
    %3 = vector.extract_strided_slice %1 {offsets = [0, 0], sizes = [256, 12], strides = [1, 1]} : vector<288x12xf32> to vector<256x12xf32>
    %c0_2 = arith.constant 0 : index
    %c0_3 = arith.constant 0 : index
    %c0_4 = arith.constant 0 : index
    %4 = vector.load %arg2[%c0_2, %c0_3, %c0_4] : memref<3x12x128xf32, #tpu.memory_space<vmem>>, vector<1x12x128xf32>
    %5 = vector.shape_cast %4 : vector<1x12x128xf32> to vector<12x128xf32>
    %cst_5 = arith.constant dense<0.000000e+00> : vector<256x128xf32>
    %6 = tpu.matmul %3, %5, %cst_5 {dimension_numbers = #tpu.dot_dimension_numbers<[1], [0], [0], [1], [0, 0, 1, 1], [], []>} : vector<256x12xf32>, vector<12x128xf32>, vector<256x128xf32> -> vector<256x128xf32>
    %7 = arith.addf %2, %6 : vector<256x128xf32>
    %8 = vector.extract_strided_slice %1 {offsets = [16, 0], sizes = [256, 12], strides = [1, 1]} : vector<288x12xf32> to vector<256x12xf32>
    %c1 = arith.constant 1 : index
    %c0_6 = arith.constant 0 : index
    %c0_7 = arith.constant 0 : index
    %9 = vector.load %arg2[%c1, %c0_6, %c0_7] : memref<3x12x128xf32, #tpu.memory_space<vmem>>, vector<1x12x128xf32>
    %10 = vector.shape_cast %9 : vector<1x12x128xf32> to vector<12x128xf32>
    %cst_8 = arith.constant dense<0.000000e+00> : vector<256x128xf32>
    %11 = tpu.matmul %8, %10, %cst_8 {dimension_numbers = #tpu.dot_dimension_numbers<[1], [0], [0], [1], [0, 0, 1, 1], [], []>} : vector<256x12xf32>, vector<12x128xf32>, vector<256x128xf32> -> vector<256x128xf32>
    %12 = arith.addf %7, %11 : vector<256x128xf32>
    %13 = vector.extract_strided_slice %1 {offsets = [32, 0], sizes = [256, 12], strides = [1, 1]} : vector<288x12xf32> to vector<256x12xf32>
    %c2 = arith.constant 2 : index
    %c0_9 = arith.constant 0 : index
    %c0_10 = arith.constant 0 : index
    %14 = vector.load %arg2[%c2, %c0_9, %c0_10] : memref<3x12x128xf32, #tpu.memory_space<vmem>>, vector<1x12x128xf32>
    %15 = vector.shape_cast %14 : vector<1x12x128xf32> to vector<12x128xf32>
    %cst_11 = arith.constant dense<0.000000e+00> : vector<256x128xf32>
    %16 = tpu.matmul %13, %15, %cst_11 {dimension_numbers = #tpu.dot_dimension_numbers<[1], [0], [0], [1], [0, 0, 1, 1], [], []>} : vector<256x12xf32>, vector<12x128xf32>, vector<256x128xf32> -> vector<256x128xf32>
    %17 = arith.addf %12, %16 : vector<256x128xf32>
    %c0_12 = arith.constant 0 : index
    %c0_13 = arith.constant 0 : index
    %18 = vector.load %arg3[%c0_12, %c0_13] : memref<1x128xf32, #tpu.memory_space<vmem>>, vector<1x128xf32>
    %19 = vector.broadcast %18 : vector<1x128xf32> to vector<256x128xf32>
    %20 = arith.addf %17, %19 : vector<256x128xf32>
    %c0_14 = arith.constant 0 : index
    %c0_15 = arith.constant 0 : index
    %c0_16 = arith.constant 0 : index
    %21 = vector.load %arg4[%c0_14, %c0_15, %c0_16] : memref<1x256x128xf32, #tpu.memory_space<vmem>>, vector<1x256x128xf32>
    %22 = vector.shape_cast %21 : vector<1x256x128xf32> to vector<256x128xf32>
    %23 = vector.shape_cast %20 : vector<256x128xf32> to vector<1x256x128xf32>
    tpu.vector_store %arg4[%c0_14, %c0_15, %c0_16], %23 {strides = array<i32>} : memref<1x256x128xf32, #tpu.memory_space<vmem>>, vector<1x256x128xf32>,
    %cst_17 = arith.constant dense<0.000000e+00> : vector<128xf32>
    %24 = vector.multi_reduction <add>, %20, %cst_17 [0] : vector<256x128xf32> to vector<128xf32>
    %25 = vector.shape_cast %24 : vector<128xf32> to vector<1x128xf32>
    %c0_18 = arith.constant 0 : index
    %c0_19 = arith.constant 0 : index
    %c0_20 = arith.constant 0 : index
    %26 = vector.load %arg5[%c0_18, %c0_19, %c0_20] : memref<1x1x128xf32, #tpu.memory_space<vmem>>, vector<1x1x128xf32>
    %27 = vector.shape_cast %26 : vector<1x1x128xf32> to vector<1x128xf32>
    %28 = vector.shape_cast %25 : vector<1x128xf32> to vector<1x1x128xf32>
    tpu.vector_store %arg5[%c0_18, %c0_19, %c0_20], %28 {strides = array<i32>} : memref<1x1x128xf32, #tpu.memory_space<vmem>>, vector<1x1x128xf32>,
    %29 = arith.mulf %20, %20 : vector<256x128xf32>
    %cst_21 = arith.constant dense<0.000000e+00> : vector<128xf32>
    %30 = vector.multi_reduction <add>, %29, %cst_21 [0] : vector<256x128xf32> to vector<128xf32>
    %31 = vector.shape_cast %30 : vector<128xf32> to vector<1x128xf32>
    %c0_22 = arith.constant 0 : index
    %c0_23 = arith.constant 0 : index
    %c0_24 = arith.constant 0 : index
    %32 = vector.load %arg6[%c0_22, %c0_23, %c0_24] : memref<1x1x128xf32, #tpu.memory_space<vmem>>, vector<1x1x128xf32>
    %33 = vector.shape_cast %32 : vector<1x1x128xf32> to vector<1x128xf32>
    %34 = vector.shape_cast %31 : vector<1x128xf32> to vector<1x1x128xf32>
    tpu.vector_store %arg6[%c0_22, %c0_23, %c0_24], %34 {strides = array<i32>} : memref<1x1x128xf32, #tpu.memory_space<vmem>>, vector<1x1x128xf32>,
    return
  }
  func.func @transform_0(%arg0: i32) -> (i32, i32, i32) {
    %c0_i32 = arith.constant 0 : i32
    %c0_i32_0 = arith.constant 0 : i32
    %c0_i32_1 = arith.constant 0 : i32
    return %arg0, %c0_i32, %c0_i32_0 : i32, i32, i32
  }
  func.func @transform_1(%arg0: i32) -> (i32, i32, i32) {
    %c0_i32 = arith.constant 0 : i32
    %c0_i32_0 = arith.constant 0 : i32
    %c0_i32_1 = arith.constant 0 : i32
    %c0_i32_2 = arith.constant 0 : i32
    return %c0_i32, %c0_i32_0, %c0_i32_1 : i32, i32, i32
  }
  func.func @transform_2(%arg0: i32) -> (i32, i32) {
    %c0_i32 = arith.constant 0 : i32
    %c0_i32_0 = arith.constant 0 : i32
    %c0_i32_1 = arith.constant 0 : i32
    return %c0_i32, %c0_i32_0 : i32, i32
  }
  func.func @transform_3(%arg0: i32) -> (i32, i32, i32) {
    %c0_i32 = arith.constant 0 : i32
    %c0_i32_0 = arith.constant 0 : i32
    %c0_i32_1 = arith.constant 0 : i32
    return %arg0, %c0_i32, %c0_i32_0 : i32, i32, i32
  }
  func.func @transform_4(%arg0: i32) -> (i32, i32, i32) {
    %c0_i32 = arith.constant 0 : i32
    %c0_i32_0 = arith.constant 0 : i32
    %c0_i32_1 = arith.constant 0 : i32
    return %arg0, %c0_i32, %c0_i32_0 : i32, i32, i32
  }
  func.func @transform_5(%arg0: i32) -> (i32, i32, i32) {
    %c0_i32 = arith.constant 0 : i32
    %c0_i32_0 = arith.constant 0 : i32
    %c0_i32_1 = arith.constant 0 : i32
    return %arg0, %c0_i32, %c0_i32_0 : i32, i32, i32
  }
}

module attributes {stable_mosaic.version = 11 : i64} {
  func.func @_bn_relu_kernel(%arg0: i32, %arg1: memref<256x128xf32, #tpu.memory_space<vmem>>, %arg2: memref<1x128xf32, #tpu.memory_space<vmem>>, %arg3: memref<1x128xf32, #tpu.memory_space<vmem>>, %arg4: memref<256x128xf32, #tpu.memory_space<vmem>>) attributes {dimension_semantics = [#tpu.dimension_semantics<parallel>], iteration_bounds = array<i64: 2>, scalar_prefetch = 0 : i64, scratch_operands = 0 : i64, tpu.core_type = #tpu.core_type<tc>, window_params = [{transform_indices = @transform_0, window_bounds = array<i64: 256, 128>}, {pipeline_mode = #tpu.pipeline_mode<synchronous>, transform_indices = @transform_1, window_bounds = array<i64: 1, 128>}, {pipeline_mode = #tpu.pipeline_mode<synchronous>, transform_indices = @transform_2, window_bounds = array<i64: 1, 128>}, {transform_indices = @transform_3, window_bounds = array<i64: 256, 128>}]} {
    %c0 = arith.constant 0 : index
    %c0_0 = arith.constant 0 : index
    %0 = vector.load %arg1[%c0, %c0_0] : memref<256x128xf32, #tpu.memory_space<vmem>>, vector<256x128xf32>
    %c0_1 = arith.constant 0 : index
    %c0_2 = arith.constant 0 : index
    %1 = vector.load %arg2[%c0_1, %c0_2] : memref<1x128xf32, #tpu.memory_space<vmem>>, vector<1x128xf32>
    %2 = vector.broadcast %1 : vector<1x128xf32> to vector<256x128xf32>
    %3 = arith.mulf %0, %2 : vector<256x128xf32>
    %c0_3 = arith.constant 0 : index
    %c0_4 = arith.constant 0 : index
    %4 = vector.load %arg3[%c0_3, %c0_4] : memref<1x128xf32, #tpu.memory_space<vmem>>, vector<1x128xf32>
    %5 = vector.broadcast %4 : vector<1x128xf32> to vector<256x128xf32>
    %6 = arith.addf %3, %5 : vector<256x128xf32>
    %cst = arith.constant 0.000000e+00 : f32
    %7 = vector.broadcast %cst : f32 to vector<256x128xf32>
    %8 = arith.maximumf %6, %7 : vector<256x128xf32>
    %c0_5 = arith.constant 0 : index
    %c0_6 = arith.constant 0 : index
    %9 = vector.load %arg4[%c0_5, %c0_6] : memref<256x128xf32, #tpu.memory_space<vmem>>, vector<256x128xf32>
    tpu.vector_store %arg4[%c0_5, %c0_6], %8 {strides = array<i32>} : memref<256x128xf32, #tpu.memory_space<vmem>>, vector<256x128xf32>,
    return
  }
  func.func @transform_0(%arg0: i32) -> (i32, i32) {
    %c0_i32 = arith.constant 0 : i32
    %c0_i32_0 = arith.constant 0 : i32
    return %arg0, %c0_i32 : i32, i32
  }
  func.func @transform_1(%arg0: i32) -> (i32, i32) {
    %c0_i32 = arith.constant 0 : i32
    %c0_i32_0 = arith.constant 0 : i32
    %c0_i32_1 = arith.constant 0 : i32
    return %c0_i32, %c0_i32_0 : i32, i32
  }
  func.func @transform_2(%arg0: i32) -> (i32, i32) {
    %c0_i32 = arith.constant 0 : i32
    %c0_i32_0 = arith.constant 0 : i32
    %c0_i32_1 = arith.constant 0 : i32
    return %c0_i32, %c0_i32_0 : i32, i32
  }
  func.func @transform_3(%arg0: i32) -> (i32, i32) {
    %c0_i32 = arith.constant 0 : i32
    %c0_i32_0 = arith.constant 0 : i32
    return %arg0, %c0_i32 : i32, i32
  }
}

module attributes {stable_mosaic.version = 11 : i64} {
  func.func @_conv_stats_kernel(%arg0: i32, %arg1: memref<1x288x24xf32, #tpu.memory_space<vmem>>, %arg2: memref<3x24x128xf32, #tpu.memory_space<vmem>>, %arg3: memref<1x128xf32, #tpu.memory_space<vmem>>, %arg4: memref<1x256x128xf32, #tpu.memory_space<vmem>>, %arg5: memref<1x1x128xf32, #tpu.memory_space<vmem>>, %arg6: memref<1x1x128xf32, #tpu.memory_space<vmem>>) attributes {dimension_semantics = [#tpu.dimension_semantics<parallel>], iteration_bounds = array<i64: 2>, scalar_prefetch = 0 : i64, scratch_operands = 0 : i64, tpu.core_type = #tpu.core_type<tc>, window_params = [{transform_indices = @transform_0, window_bounds = array<i64: 1, 288, 24>}, {pipeline_mode = #tpu.pipeline_mode<synchronous>, transform_indices = @transform_1, window_bounds = array<i64: 3, 24, 128>}, {pipeline_mode = #tpu.pipeline_mode<synchronous>, transform_indices = @transform_2, window_bounds = array<i64: 1, 128>}, {transform_indices = @transform_3, window_bounds = array<i64: 1, 256, 128>}, {transform_indices = @transform_4, window_bounds = array<i64: 1, 1, 128>}, {transform_indices = @transform_5, window_bounds = array<i64: 1, 1, 128>}]} {
    %c0 = arith.constant 0 : index
    %c0_0 = arith.constant 0 : index
    %c0_1 = arith.constant 0 : index
    %0 = vector.load %arg1[%c0, %c0_0, %c0_1] : memref<1x288x24xf32, #tpu.memory_space<vmem>>, vector<1x288x24xf32>
    %1 = vector.shape_cast %0 : vector<1x288x24xf32> to vector<288x24xf32>
    %cst = arith.constant 0.000000e+00 : f32
    %2 = vector.broadcast %cst : f32 to vector<256x128xf32>
    %3 = vector.extract_strided_slice %1 {offsets = [0, 0], sizes = [256, 24], strides = [1, 1]} : vector<288x24xf32> to vector<256x24xf32>
    %c0_2 = arith.constant 0 : index
    %c0_3 = arith.constant 0 : index
    %c0_4 = arith.constant 0 : index
    %4 = vector.load %arg2[%c0_2, %c0_3, %c0_4] : memref<3x24x128xf32, #tpu.memory_space<vmem>>, vector<1x24x128xf32>
    %5 = vector.shape_cast %4 : vector<1x24x128xf32> to vector<24x128xf32>
    %cst_5 = arith.constant dense<0.000000e+00> : vector<256x128xf32>
    %6 = tpu.matmul %3, %5, %cst_5 {dimension_numbers = #tpu.dot_dimension_numbers<[1], [0], [0], [1], [0, 0, 1, 1], [], []>} : vector<256x24xf32>, vector<24x128xf32>, vector<256x128xf32> -> vector<256x128xf32>
    %7 = arith.addf %2, %6 : vector<256x128xf32>
    %8 = vector.extract_strided_slice %1 {offsets = [16, 0], sizes = [256, 24], strides = [1, 1]} : vector<288x24xf32> to vector<256x24xf32>
    %c1 = arith.constant 1 : index
    %c0_6 = arith.constant 0 : index
    %c0_7 = arith.constant 0 : index
    %9 = vector.load %arg2[%c1, %c0_6, %c0_7] : memref<3x24x128xf32, #tpu.memory_space<vmem>>, vector<1x24x128xf32>
    %10 = vector.shape_cast %9 : vector<1x24x128xf32> to vector<24x128xf32>
    %cst_8 = arith.constant dense<0.000000e+00> : vector<256x128xf32>
    %11 = tpu.matmul %8, %10, %cst_8 {dimension_numbers = #tpu.dot_dimension_numbers<[1], [0], [0], [1], [0, 0, 1, 1], [], []>} : vector<256x24xf32>, vector<24x128xf32>, vector<256x128xf32> -> vector<256x128xf32>
    %12 = arith.addf %7, %11 : vector<256x128xf32>
    %13 = vector.extract_strided_slice %1 {offsets = [32, 0], sizes = [256, 24], strides = [1, 1]} : vector<288x24xf32> to vector<256x24xf32>
    %c2 = arith.constant 2 : index
    %c0_9 = arith.constant 0 : index
    %c0_10 = arith.constant 0 : index
    %14 = vector.load %arg2[%c2, %c0_9, %c0_10] : memref<3x24x128xf32, #tpu.memory_space<vmem>>, vector<1x24x128xf32>
    %15 = vector.shape_cast %14 : vector<1x24x128xf32> to vector<24x128xf32>
    %cst_11 = arith.constant dense<0.000000e+00> : vector<256x128xf32>
    %16 = tpu.matmul %13, %15, %cst_11 {dimension_numbers = #tpu.dot_dimension_numbers<[1], [0], [0], [1], [0, 0, 1, 1], [], []>} : vector<256x24xf32>, vector<24x128xf32>, vector<256x128xf32> -> vector<256x128xf32>
    %17 = arith.addf %12, %16 : vector<256x128xf32>
    %c0_12 = arith.constant 0 : index
    %c0_13 = arith.constant 0 : index
    %18 = vector.load %arg3[%c0_12, %c0_13] : memref<1x128xf32, #tpu.memory_space<vmem>>, vector<1x128xf32>
    %19 = vector.broadcast %18 : vector<1x128xf32> to vector<256x128xf32>
    %20 = arith.addf %17, %19 : vector<256x128xf32>
    %c0_14 = arith.constant 0 : index
    %c0_15 = arith.constant 0 : index
    %c0_16 = arith.constant 0 : index
    %21 = vector.load %arg4[%c0_14, %c0_15, %c0_16] : memref<1x256x128xf32, #tpu.memory_space<vmem>>, vector<1x256x128xf32>
    %22 = vector.shape_cast %21 : vector<1x256x128xf32> to vector<256x128xf32>
    %23 = vector.shape_cast %20 : vector<256x128xf32> to vector<1x256x128xf32>
    tpu.vector_store %arg4[%c0_14, %c0_15, %c0_16], %23 {strides = array<i32>} : memref<1x256x128xf32, #tpu.memory_space<vmem>>, vector<1x256x128xf32>,
    %cst_17 = arith.constant dense<0.000000e+00> : vector<128xf32>
    %24 = vector.multi_reduction <add>, %20, %cst_17 [0] : vector<256x128xf32> to vector<128xf32>
    %25 = vector.shape_cast %24 : vector<128xf32> to vector<1x128xf32>
    %c0_18 = arith.constant 0 : index
    %c0_19 = arith.constant 0 : index
    %c0_20 = arith.constant 0 : index
    %26 = vector.load %arg5[%c0_18, %c0_19, %c0_20] : memref<1x1x128xf32, #tpu.memory_space<vmem>>, vector<1x1x128xf32>
    %27 = vector.shape_cast %26 : vector<1x1x128xf32> to vector<1x128xf32>
    %28 = vector.shape_cast %25 : vector<1x128xf32> to vector<1x1x128xf32>
    tpu.vector_store %arg5[%c0_18, %c0_19, %c0_20], %28 {strides = array<i32>} : memref<1x1x128xf32, #tpu.memory_space<vmem>>, vector<1x1x128xf32>,
    %29 = arith.mulf %20, %20 : vector<256x128xf32>
    %cst_21 = arith.constant dense<0.000000e+00> : vector<128xf32>
    %30 = vector.multi_reduction <add>, %29, %cst_21 [0] : vector<256x128xf32> to vector<128xf32>
    %31 = vector.shape_cast %30 : vector<128xf32> to vector<1x128xf32>
    %c0_22 = arith.constant 0 : index
    %c0_23 = arith.constant 0 : index
    %c0_24 = arith.constant 0 : index
    %32 = vector.load %arg6[%c0_22, %c0_23, %c0_24] : memref<1x1x128xf32, #tpu.memory_space<vmem>>, vector<1x1x128xf32>
    %33 = vector.shape_cast %32 : vector<1x1x128xf32> to vector<1x128xf32>
    %34 = vector.shape_cast %31 : vector<1x128xf32> to vector<1x1x128xf32>
    tpu.vector_store %arg6[%c0_22, %c0_23, %c0_24], %34 {strides = array<i32>} : memref<1x1x128xf32, #tpu.memory_space<vmem>>, vector<1x1x128xf32>,
    return
  }
  func.func @transform_0(%arg0: i32) -> (i32, i32, i32) {
    %c0_i32 = arith.constant 0 : i32
    %c0_i32_0 = arith.constant 0 : i32
    %c0_i32_1 = arith.constant 0 : i32
    return %arg0, %c0_i32, %c0_i32_0 : i32, i32, i32
  }
  func.func @transform_1(%arg0: i32) -> (i32, i32, i32) {
    %c0_i32 = arith.constant 0 : i32
    %c0_i32_0 = arith.constant 0 : i32
    %c0_i32_1 = arith.constant 0 : i32
    %c0_i32_2 = arith.constant 0 : i32
    return %c0_i32, %c0_i32_0, %c0_i32_1 : i32, i32, i32
  }
  func.func @transform_2(%arg0: i32) -> (i32, i32) {
    %c0_i32 = arith.constant 0 : i32
    %c0_i32_0 = arith.constant 0 : i32
    %c0_i32_1 = arith.constant 0 : i32
    return %c0_i32, %c0_i32_0 : i32, i32
  }
  func.func @transform_3(%arg0: i32) -> (i32, i32, i32) {
    %c0_i32 = arith.constant 0 : i32
    %c0_i32_0 = arith.constant 0 : i32
    %c0_i32_1 = arith.constant 0 : i32
    return %arg0, %c0_i32, %c0_i32_0 : i32, i32, i32
  }
  func.func @transform_4(%arg0: i32) -> (i32, i32, i32) {
    %c0_i32 = arith.constant 0 : i32
    %c0_i32_0 = arith.constant 0 : i32
    %c0_i32_1 = arith.constant 0 : i32
    return %arg0, %c0_i32, %c0_i32_0 : i32, i32, i32
  }
  func.func @transform_5(%arg0: i32) -> (i32, i32, i32) {
    %c0_i32 = arith.constant 0 : i32
    %c0_i32_0 = arith.constant 0 : i32
    %c0_i32_1 = arith.constant 0 : i32
    return %arg0, %c0_i32, %c0_i32_0 : i32, i32, i32
  }
}

module attributes {stable_mosaic.version = 11 : i64} {
  func.func @_bn_relu_pool_kernel(%arg0: i32, %arg1: memref<8x2x8x2x128xf32, #tpu.memory_space<vmem>>, %arg2: memref<1x128xf32, #tpu.memory_space<vmem>>, %arg3: memref<1x128xf32, #tpu.memory_space<vmem>>, %arg4: memref<8x2x8x2x128xf32, #tpu.memory_space<vmem>>, %arg5: memref<8x8x128xf32, #tpu.memory_space<vmem>>) attributes {dimension_semantics = [#tpu.dimension_semantics<parallel>], iteration_bounds = array<i64: 2>, scalar_prefetch = 0 : i64, scratch_operands = 0 : i64, tpu.core_type = #tpu.core_type<tc>, window_params = [{transform_indices = @transform_0, window_bounds = array<i64: 8, 2, 8, 2, 128>}, {pipeline_mode = #tpu.pipeline_mode<synchronous>, transform_indices = @transform_1, window_bounds = array<i64: 1, 128>}, {pipeline_mode = #tpu.pipeline_mode<synchronous>, transform_indices = @transform_2, window_bounds = array<i64: 1, 128>}, {transform_indices = @transform_3, window_bounds = array<i64: 8, 2, 8, 2, 128>}, {transform_indices = @transform_4, window_bounds = array<i64: 8, 8, 128>}]} {
    %c0 = arith.constant 0 : index
    %c0_0 = arith.constant 0 : index
    %c0_1 = arith.constant 0 : index
    %c0_2 = arith.constant 0 : index
    %c0_3 = arith.constant 0 : index
    %0 = vector.load %arg1[%c0, %c0_0, %c0_1, %c0_2, %c0_3] : memref<8x2x8x2x128xf32, #tpu.memory_space<vmem>>, vector<8x2x8x2x128xf32>
    %c0_4 = arith.constant 0 : index
    %c0_5 = arith.constant 0 : index
    %1 = vector.load %arg2[%c0_4, %c0_5] : memref<1x128xf32, #tpu.memory_space<vmem>>, vector<1x128xf32>
    %2 = vector.shape_cast %1 : vector<1x128xf32> to vector<1x1x1x1x128xf32>
    %c0_6 = arith.constant 0 : index
    %c0_7 = arith.constant 0 : index
    %3 = vector.load %arg3[%c0_6, %c0_7] : memref<1x128xf32, #tpu.memory_space<vmem>>, vector<1x128xf32>
    %4 = vector.shape_cast %3 : vector<1x128xf32> to vector<1x1x1x1x128xf32>
    %5 = vector.broadcast %2 : vector<1x1x1x1x128xf32> to vector<8x2x8x2x128xf32>
    %6 = arith.mulf %0, %5 : vector<8x2x8x2x128xf32>
    %7 = vector.broadcast %4 : vector<1x1x1x1x128xf32> to vector<8x2x8x2x128xf32>
    %8 = arith.addf %6, %7 : vector<8x2x8x2x128xf32>
    %cst = arith.constant 0.000000e+00 : f32
    %9 = vector.broadcast %cst : f32 to vector<8x2x8x2x128xf32>
    %10 = arith.maximumf %8, %9 : vector<8x2x8x2x128xf32>
    %c0_8 = arith.constant 0 : index
    %c0_9 = arith.constant 0 : index
    %c0_10 = arith.constant 0 : index
    %c0_11 = arith.constant 0 : index
    %c0_12 = arith.constant 0 : index
    %11 = vector.load %arg4[%c0_8, %c0_9, %c0_10, %c0_11, %c0_12] : memref<8x2x8x2x128xf32, #tpu.memory_space<vmem>>, vector<8x2x8x2x128xf32>
    tpu.vector_store %arg4[%c0_8, %c0_9, %c0_10, %c0_11, %c0_12], %10 {strides = array<i32>} : memref<8x2x8x2x128xf32, #tpu.memory_space<vmem>>, vector<8x2x8x2x128xf32>,
    %12 = vector.extract_strided_slice %10 {offsets = [0, 0, 0, 0, 0], sizes = [8, 1, 8, 2, 128], strides = [1, 1, 1, 1, 1]} : vector<8x2x8x2x128xf32> to vector<8x1x8x2x128xf32>
    %13 = vector.shape_cast %12 : vector<8x1x8x2x128xf32> to vector<8x8x2x128xf32>
    %14 = vector.extract_strided_slice %10 {offsets = [0, 1, 0, 0, 0], sizes = [8, 1, 8, 2, 128], strides = [1, 1, 1, 1, 1]} : vector<8x2x8x2x128xf32> to vector<8x1x8x2x128xf32>
    %15 = vector.shape_cast %14 : vector<8x1x8x2x128xf32> to vector<8x8x2x128xf32>
    %16 = arith.maximumf %13, %15 : vector<8x8x2x128xf32>
    %17 = vector.extract_strided_slice %16 {offsets = [0, 0, 0, 0], sizes = [8, 8, 1, 128], strides = [1, 1, 1, 1]} : vector<8x8x2x128xf32> to vector<8x8x1x128xf32>
    %18 = vector.shape_cast %17 : vector<8x8x1x128xf32> to vector<8x8x128xf32>
    %19 = vector.extract_strided_slice %16 {offsets = [0, 0, 1, 0], sizes = [8, 8, 1, 128], strides = [1, 1, 1, 1]} : vector<8x8x2x128xf32> to vector<8x8x1x128xf32>
    %20 = vector.shape_cast %19 : vector<8x8x1x128xf32> to vector<8x8x128xf32>
    %21 = arith.maximumf %18, %20 : vector<8x8x128xf32>
    %c0_13 = arith.constant 0 : index
    %c0_14 = arith.constant 0 : index
    %c0_15 = arith.constant 0 : index
    %22 = vector.load %arg5[%c0_13, %c0_14, %c0_15] : memref<8x8x128xf32, #tpu.memory_space<vmem>>, vector<8x8x128xf32>
    tpu.vector_store %arg5[%c0_13, %c0_14, %c0_15], %21 {strides = array<i32>} : memref<8x8x128xf32, #tpu.memory_space<vmem>>, vector<8x8x128xf32>,
    return
  }
  func.func @transform_0(%arg0: i32) -> (i32, i32, i32, i32, i32) {
    %c0_i32 = arith.constant 0 : i32
    %c0_i32_0 = arith.constant 0 : i32
    %c0_i32_1 = arith.constant 0 : i32
    %c0_i32_2 = arith.constant 0 : i32
    %c0_i32_3 = arith.constant 0 : i32
    return %arg0, %c0_i32, %c0_i32_0, %c0_i32_1, %c0_i32_2 : i32, i32, i32, i32, i32
  }
  func.func @transform_1(%arg0: i32) -> (i32, i32) {
    %c0_i32 = arith.constant 0 : i32
    %c0_i32_0 = arith.constant 0 : i32
    %c0_i32_1 = arith.constant 0 : i32
    return %c0_i32, %c0_i32_0 : i32, i32
  }
  func.func @transform_2(%arg0: i32) -> (i32, i32) {
    %c0_i32 = arith.constant 0 : i32
    %c0_i32_0 = arith.constant 0 : i32
    %c0_i32_1 = arith.constant 0 : i32
    return %c0_i32, %c0_i32_0 : i32, i32
  }
  func.func @transform_3(%arg0: i32) -> (i32, i32, i32, i32, i32) {
    %c0_i32 = arith.constant 0 : i32
    %c0_i32_0 = arith.constant 0 : i32
    %c0_i32_1 = arith.constant 0 : i32
    %c0_i32_2 = arith.constant 0 : i32
    %c0_i32_3 = arith.constant 0 : i32
    return %arg0, %c0_i32, %c0_i32_0, %c0_i32_1, %c0_i32_2 : i32, i32, i32, i32, i32
  }
  func.func @transform_4(%arg0: i32) -> (i32, i32, i32) {
    %c0_i32 = arith.constant 0 : i32
    %c0_i32_0 = arith.constant 0 : i32
    %c0_i32_1 = arith.constant 0 : i32
    return %arg0, %c0_i32, %c0_i32_0 : i32, i32, i32
  }
}

</mosaic_0001>

<bundles_post_ra>
// kernel: downsampling_block.5
= control target key start
LH: loop header
LB: loop body
LE: loop exit
PB: predicated region body
PF: predicated region fallthrough
CT: control target
= control target key end

     0   :  { %s453_s12 = smov 0   ;;  %s612_s0 = inlined_call_operand.vmem [shape: f32[512,128], index: 0, kind: input, shape index: {}]   ;;  %s613_s1 = inlined_call_operand.vmem [shape: f32[1,128], index: 1, kind: input, shape index: {}]   ;;  %s614_s2 = inlined_call_operand.vmem [shape: f32[1,128], index: 2, kind: input, shape index: {}]   ;;  %s615_s3 = inlined_call_operand.vmem [shape: f32[512,128], index: 3, kind: output, shape index: {}]  }
   0x1 LB: > { %s404_s13 = sadd.s32 4294967295, %s431_s12   ;;  %p408_p0 = scmp.ge.s32.totalorder %s431_s12, 1  ;;  %s431_s12 = sphi %s453_s12, %s13_s12  }
   0x2   : > { %p138_p1 = scmp.lt.s32.totalorder %s431_s12, 3 }
   0x4   : > { %p139_p2 = pnand %p408_p0, %p138_p1 }
   0x5   : > { %s409_s14 = sshll.u32 (!%p139_p2), %s404_s13, 5 }
   0x6   : > { %142 = sbr.rel (%p139_p2) target bundleno = 44 (0x2c), region = 32  ;;  %p163_p3 = scmp.lt.s32.totalorder (!%p139_p2), %s409_s14, 63 }
   0xb   : > { %s617_s14 = smov (!%p163_p3, %s409_s14), 63  ;;  %v464_v0 = vld [vmem:[%s613_s1] ss:$0 sm:$0xff] }
   0xc   : > { %s410_s15 = sshll.u32 %s617_s14, 3  ;;  %v474_v1 = vld [vmem:[%s614_s2] ss:$0 sm:$0xff] }
   0xd   : > { %s469_s20 = scalar_lea.vmem %s612_s0, %s410_s15  ;;  %s497_s25 = scalar_lea.vmem %s615_s3, %s410_s15 }
   0xe   : > { %v174_v2 = vld [vmem:[%s469_s20] sm:$0xff]  ;;  %v175_v3 = vld [vmem:[%s469_s20 + $0x8] sm:$0xff]  ;;  %v176_v4 = vld [vmem:[%s469_s20 + $0x10] sm:$0xff] }
   0xf   : > { %v213_v5 = vmul.f32 %v464_v0, %v174_v2  ;;  %v214_v6 = vmul.f32 %v464_v0, %v175_v3  ;;  %v215_v7 = vmul.f32 %v464_v0, %v176_v4  ;;  %v177_v8 = vld [vmem:[%s469_s20 + $0x18] sm:$0xff]  ;;  %v178_v9 = vld [vmem:[%s469_s20 + $0x20] sm:$0xff]  ;;  %v179_v10 = vld [vmem:[%s469_s20 + $0x28] sm:$0xff] }
  0x10   : > { %v216_v11 = vmul.f32 %v464_v0, %v177_v8  ;;  %v217_v12 = vmul.f32 %v464_v0, %v178_v9  ;;  %v218_v13 = vmul.f32 %v464_v0, %v179_v10  ;;  %v180_v14 = vld [vmem:[%s469_s20 + $0x30] sm:$0xff]  ;;  %v181_v15 = vld [vmem:[%s469_s20 + $0x38] sm:$0xff]  ;;  %v182_v24 = vld [vmem:[%s469_s20 + $0x40] sm:$0xff] }
  0x11   : > { %v252_v16 = vadd.f32 %v474_v1, %v213_v5  ;;  %v253_v17 = vadd.f32 %v474_v1, %v214_v6  ;;  %v254_v18 = vadd.f32 %v474_v1, %v215_v7  ;;  %v219_v19 = vmul.f32 %v464_v0, %v180_v14  ;;  %v183_v25 = vld [vmem:[%s469_s20 + $0x48] sm:$0xff]  ;;  %v184_v26 = vld [vmem:[%s469_s20 + $0x50] sm:$0xff]  ;;  %v185_v31 = vld [vmem:[%s469_s20 + $0x58] sm:$0xff] }
  0x12   : > { %v255_v20 = vadd.f32 %v474_v1, %v216_v11  ;;  %v256_v21 = vadd.f32 %v474_v1, %v217_v12  ;;  %v257_v22 = vadd.f32 %v474_v1, %v218_v13  ;;  %v220_v23 = vmul.f32 %v464_v0, %v181_v15  ;;  %v186_v32 = vld [vmem:[%s469_s20 + $0x60] sm:$0xff]  ;;  %v187_v33 = vld [vmem:[%s469_s20 + $0x68] sm:$0xff]  ;;  %v188_v38 = vld [vmem:[%s469_s20 + $0x70] sm:$0xff] }
  0x13   : > { %v284_v27 = vmax.f32 %v252_v16, 0.0  ;;  %v285_v28 = vmax.f32 %v253_v17, 0.0  ;;  %v286_v29 = vmax.f32 %v254_v18, 0.0  ;;  %v258_v30 = vadd.f32 %v474_v1, %v219_v19  ;;  %v189_v43 = vld [vmem:[%s469_s20 + $0x78] sm:$0xff]  ;;  %v190_v56 = vld [vmem:[%s469_s20 + $0x80] sm:$0xff]  ;;  %v191_v57 = vld [vmem:[%s469_s20 + $0x88] sm:$0xff] }
  0x14   : > { %v287_v34 = vmax.f32 %v255_v20, 0.0  ;;  %v288_v35 = vmax.f32 %v256_v21, 0.0  ;;  %v289_v36 = vmax.f32 %v257_v22, 0.0  ;;  %v259_v37 = vadd.f32 %v474_v1, %v220_v23  ;;  %v192_v58 = vld [vmem:[%s469_s20 + $0x90] sm:$0xff]  ;;  %v193_v63 = vld [vmem:[%s469_s20 + $0x98] sm:$0xff]  ;;  %v194_v2 = vld [vmem:[%s469_s20 + $0xa0] sm:$0xff] }
  0x15   : > { %316 = vst [vmem:[%s497_s25] sm:$0xff] %v284_v27  ;;  %317 = vst [vmem:[%s497_s25 + $0x8] sm:$0xff] %v285_v28  ;;  %v290_v39 = vmax.f32 %v258_v30, 0.0  ;;  %v221_v40 = vmul.f32 %v464_v0, %v182_v24  ;;  %v222_v41 = vmul.f32 %v464_v0, %v183_v25  ;;  %v223_v42 = vmul.f32 %v464_v0, %v184_v26  ;;  %v195_v3 = vld [vmem:[%s469_s20 + $0xa8] sm:$0xff]  ;;  %v196_v8 = vld [vmem:[%s469_s20 + $0xb0] sm:$0xff] }
  0x16   : > { %318 = vst [vmem:[%s497_s25 + $0x10] sm:$0xff] %v286_v29  ;;  %319 = vst [vmem:[%s497_s25 + $0x18] sm:$0xff] %v287_v34  ;;  %v291_v44 = vmax.f32 %v259_v37, 0.0  ;;  %v224_v45 = vmul.f32 %v464_v0, %v185_v31  ;;  %v225_v46 = vmul.f32 %v464_v0, %v186_v32  ;;  %v226_v47 = vmul.f32 %v464_v0, %v187_v33  ;;  %v197_v13 = vld [vmem:[%s469_s20 + $0xb8] sm:$0xff]  ;;  %v198_v26 = vld [vmem:[%s469_s20 + $0xc0] sm:$0xff] }
  0x17   : > { %320 = vst [vmem:[%s497_s25 + $0x20] sm:$0xff] %v288_v35  ;;  %321 = vst [vmem:[%s497_s25 + $0x28] sm:$0xff] %v289_v36  ;;  %v260_v48 = vadd.f32 %v474_v1, %v221_v40  ;;  %v261_v49 = vadd.f32 %v474_v1, %v222_v41  ;;  %v262_v50 = vadd.f32 %v474_v1, %v223_v42  ;;  %v199_v27 = vld [vmem:[%s469_s20 + $0xc8] sm:$0xff]  ;;  %v200_v28 = vld [vmem:[%s469_s20 + $0xd0] sm:$0xff] }
  0x18   : > { %322 = vst [vmem:[%s497_s25 + $0x30] sm:$0xff] %v290_v39  ;;  %v227_v51 = vmul.f32 %v464_v0, %v188_v38  ;;  %323 = vst [vmem:[%s497_s25 + $0x38] sm:$0xff] %v291_v44  ;;  %v263_v52 = vadd.f32 %v474_v1, %v224_v45  ;;  %v264_v53 = vadd.f32 %v474_v1, %v225_v46  ;;  %v201_v33 = vld [vmem:[%s469_s20 + $0xd8] sm:$0xff]  ;;  %v202_v34 = vld [vmem:[%s469_s20 + $0xe0] sm:$0xff] }
  0x19   : > { %v265_v54 = vadd.f32 %v474_v1, %v226_v47  ;;  %v228_v55 = vmul.f32 %v464_v0, %v189_v43  ;;  %v292_v59 = vmax.f32 %v260_v48, 0.0  ;;  %v293_v60 = vmax.f32 %v261_v49, 0.0  ;;  %v203_v35 = vld [vmem:[%s469_s20 + $0xe8] sm:$0xff]  ;;  %v204_v40 = vld [vmem:[%s469_s20 + $0xf0] sm:$0xff]  ;;  %v205_v45 = vld [vmem:[%s469_s20 + $0xf8] sm:$0xff] }
  0x1a   : > { %v294_v61 = vmax.f32 %v262_v50, 0.0  ;;  %v266_v62 = vadd.f32 %v474_v1, %v227_v51  ;;  %v295_v4 = vmax.f32 %v263_v52, 0.0  ;;  %v296_v5 = vmax.f32 %v264_v53, 0.0 }
  0x1b   : > { %v297_v6 = vmax.f32 %v265_v54, 0.0  ;;  %v267_v7 = vadd.f32 %v474_v1, %v228_v55  ;;  %324 = vst [vmem:[%s497_s25 + $0x40] sm:$0xff] %v292_v59  ;;  %325 = vst [vmem:[%s497_s25 + $0x48] sm:$0xff] %v293_v60  ;;  %v229_v10 = vmul.f32 %v464_v0, %v190_v56  ;;  %v230_v11 = vmul.f32 %v464_v0, %v191_v57 }
  0x1c   : > { %326 = vst [vmem:[%s497_s25 + $0x50] sm:$0xff] %v294_v61  ;;  %v298_v9 = vmax.f32 %v266_v62, 0.0  ;;  %v231_v12 = vmul.f32 %v464_v0, %v192_v58  ;;  %327 = vst [vmem:[%s497_s25 + $0x58] sm:$0xff] %v295_v4  ;;  %v232_v15 = vmul.f32 %v464_v0, %v193_v63  ;;  %v233_v16 = vmul.f32 %v464_v0, %v194_v2 }
  0x1d   : > { %328 = vst [vmem:[%s497_s25 + $0x60] sm:$0xff] %v296_v5  ;;  %329 = vst [vmem:[%s497_s25 + $0x68] sm:$0xff] %v297_v6  ;;  %v299_v14 = vmax.f32 %v267_v7, 0.0  ;;  %v234_v17 = vmul.f32 %v464_v0, %v195_v3  ;;  %v268_v18 = vadd.f32 %v474_v1, %v229_v10  ;;  %v269_v19 = vadd.f32 %v474_v1, %v230_v11 }
  0x1e   : > { %330 = vst [vmem:[%s497_s25 + $0x70] sm:$0xff] %v298_v9  ;;  %v270_v20 = vadd.f32 %v474_v1, %v231_v12  ;;  %v235_v21 = vmul.f32 %v464_v0, %v196_v8  ;;  %v271_v22 = vadd.f32 %v474_v1, %v232_v15  ;;  %v272_v23 = vadd.f32 %v474_v1, %v233_v16 }
  0x1f   : > { %331 = vst [vmem:[%s497_s25 + $0x78] sm:$0xff] %v299_v14  ;;  %v273_v24 = vadd.f32 %v474_v1, %v234_v17  ;;  %v236_v25 = vmul.f32 %v464_v0, %v197_v13  ;;  %v300_v29 = vmax.f32 %v268_v18, 0.0  ;;  %v301_v30 = vmax.f32 %v269_v19, 0.0 }
  0x20   : > { %v302_v31 = vmax.f32 %v270_v20, 0.0  ;;  %v274_v32 = vadd.f32 %v474_v1, %v235_v21  ;;  %v303_v36 = vmax.f32 %v271_v22, 0.0  ;;  %v304_v37 = vmax.f32 %v272_v23, 0.0 }
  0x21   : > { %v305_v38 = vmax.f32 %v273_v24, 0.0  ;;  %v275_v39 = vadd.f32 %v474_v1, %v236_v25  ;;  %332 = vst [vmem:[%s497_s25 + $0x80] sm:$0xff] %v300_v29  ;;  %333 = vst [vmem:[%s497_s25 + $0x88] sm:$0xff] %v301_v30  ;;  %v237_v42 = vmul.f32 %v464_v0, %v198_v26  ;;  %v238_v43 = vmul.f32 %v464_v0, %v199_v27 }
  0x22   : > { %334 = vst [vmem:[%s497_s25 + $0x90] sm:$0xff] %v302_v31  ;;  %v306_v41 = vmax.f32 %v274_v32, 0.0  ;;  %v239_v44 = vmul.f32 %v464_v0, %v200_v28  ;;  %335 = vst [vmem:[%s497_s25 + $0x98] sm:$0xff] %v303_v36  ;;  %v240_v47 = vmul.f32 %v464_v0, %v201_v33  ;;  %v241_v48 = vmul.f32 %v464_v0, %v202_v34 }
  0x23   : > { %336 = vst [vmem:[%s497_s25 + $0xa0] sm:$0xff] %v304_v37  ;;  %337 = vst [vmem:[%s497_s25 + $0xa8] sm:$0xff] %v305_v38  ;;  %v307_v46 = vmax.f32 %v275_v39, 0.0  ;;  %v242_v49 = vmul.f32 %v464_v0, %v203_v35  ;;  %v276_v50 = vadd.f32 %v474_v1, %v237_v42  ;;  %v277_v51 = vadd.f32 %v474_v1, %v238_v43 }
  0x24   : > { %338 = vst [vmem:[%s497_s25 + $0xb0] sm:$0xff] %v306_v41  ;;  %v278_v52 = vadd.f32 %v474_v1, %v239_v44  ;;  %v243_v53 = vmul.f32 %v464_v0, %v204_v40  ;;  %v279_v54 = vadd.f32 %v474_v1, %v240_v47  ;;  %v280_v55 = vadd.f32 %v474_v1, %v241_v48 }
  0x25   : > { %339 = vst [vmem:[%s497_s25 + $0xb8] sm:$0xff] %v307_v46  ;;  %v281_v56 = vadd.f32 %v474_v1, %v242_v49  ;;  %v244_v57 = vmul.f32 %v464_v0, %v205_v45  ;;  %v308_v58 = vmax.f32 %v276_v50, 0.0  ;;  %v309_v59 = vmax.f32 %v277_v51, 0.0 }
  0x26   : > { %v310_v60 = vmax.f32 %v278_v52, 0.0  ;;  %v282_v61 = vadd.f32 %v474_v1, %v243_v53  ;;  %v311_v62 = vmax.f32 %v279_v54, 0.0  ;;  %v312_v63 = vmax.f32 %v280_v55, 0.0 }
  0x27   : > { %v313_v2 = vmax.f32 %v281_v56, 0.0  ;;  %v283_v3 = vadd.f32 %v474_v1, %v244_v57  ;;  %340 = vst [vmem:[%s497_s25 + $0xc0] sm:$0xff] %v308_v58  ;;  %341 = vst [vmem:[%s497_s25 + $0xc8] sm:$0xff] %v309_v59 }
  0x28   : > { %342 = vst [vmem:[%s497_s25 + $0xd0] sm:$0xff] %v310_v60  ;;  %v314_v4 = vmax.f32 %v282_v61, 0.0  ;;  %343 = vst [vmem:[%s497_s25 + $0xd8] sm:$0xff] %v311_v62 }
  0x29   : > { %344 = vst [vmem:[%s497_s25 + $0xe0] sm:$0xff] %v312_v63  ;;  %345 = vst [vmem:[%s497_s25 + $0xe8] sm:$0xff] %v313_v2  ;;  %v315_v0 = vmax.f32 %v283_v3, 0.0 }
  0x2a   : > { %346 = vst [vmem:[%s497_s25 + $0xf0] sm:$0xff] %v314_v4 }
  0x2b   : > { %347 = vst [vmem:[%s497_s25 + $0xf8] sm:$0xff] %v315_v0 }
  0x2c PF: > { %s13_s12 = sadd.s32 1, %s431_s12  }
  0x2d   : > { %p10_p4 = scmp.ge.s32.totalorder %s13_s12, 4  }
  0x2f   :  { %12 = sbr.rel (!%p10_p4) target bundleno = 1 (0x1), region = 62 }

// kernel: downsampling_block.4
= control target key start
LH: loop header
LB: loop body
LE: loop exit
PB: predicated region body
PF: predicated region fallthrough
CT: control target
= control target key end

     0   :  { %s1820_s18 = smov 0   ;;  %s2259_s0 = inlined_call_operand.vmem [shape: f32[2,288,12], index: 0, kind: input, shape index: {}]   ;;  %s2260_s1 = inlined_call_operand.vmem [shape: f32[3,12,128], index: 1, kind: input, shape index: {}]   ;;  %s2261_s2 = inlined_call_operand.vmem [shape: f32[1,128], index: 2, kind: input, shape index: {}]   ;;  %s2262_s3 = inlined_call_operand.vmem [shape: f32[2,256,128], index: 3, kind: output, shape index: {0}]   ;;  %s2263_s4 = inlined_call_operand.vmem [shape: f32[2,1,128], index: 4, kind: output, shape index: {1}]   ;;  %s2264_s5 = inlined_call_operand.vmem [shape: f32[2,1,128], index: 5, kind: output, shape index: {2}]  }
   0x1 LB: > { %s1396_s19 = sadd.s32 4294967295, %s1788_s18   ;;  %p1400_p0 = scmp.ge.s32.totalorder %s1788_s18, 1  ;;  %s1788_s18 = sphi %s1820_s18, %s16_s18  }
   0x2   : > { %p192_p1 = scmp.lt.s32.totalorder %s1788_s18, 3 }
   0x4   : > { %p193_p2 = pnand %p1400_p0, %p192_p1 }
   0x5   : > { %p226_p3 = scmp.lt.s32.totalorder (!%p193_p2), %s1396_s19, 1 }
   0x6   : > { %196 = sbr.rel (%p193_p2) target bundleno = 331 (0x14b), region = 32 }
   0xb   : > { %v1405_v0 = vld [vmem:[%s2260_s1 + $0x18] sm:$0xf]  ;;  %vm380_vm0 = vcmask 1043456   ;;  %v1404_v1 = vld [vmem:[%s2260_s1 + $0x10] sm:$0xff]  ;;  %s2266_s19 = smov (!%p226_p3, %s1396_s19), 1  ;;  %vm283_vm1 = vcmask 97280  }
   0xc   : > { %1769 = vmatprep.subr.msk.mxu1 %vm380_vm0, %v1405_v0  ;;  %1613 = vmatprep.subr.msk.mxu0 %vm380_vm0, %v1405_v0  ;;  %v279_v2 = vld [vmem:[%s2260_s1 + $0x8] sm:$0xf]  ;;  %s1773_s28 = smul.u32 288, %s2266_s19  ;;  %v278_v10 = vld [vmem:[%s2260_s1] sm:$0xff]  ;;  %s1510_s11 = sshll.u32 %s2266_s19, 8 }
   0xd   : > { %1771 = vmatpush3.msk.msra.mxu1 %vm380_vm0, %v1405_v0  ;;  %1614 = vmatpush3.msk.msra.mxu0 %vm380_vm0, %v1405_v0  ;;  %v1473_v3 = vld [vmem:[%s2260_s1 + $0x28] sm:$0xf]  ;;  %v1472_v11 = vld [vmem:[%s2260_s1 + $0x20] sm:$0xff]  ;;  %s2156_s16 = scalar_lea.vmem %s2262_s3, %s1510_s11  ;;  %s238_s21 = scalar_lea.vmem %s2263_s4, %s2266_s19 }
   0xe   : > { %1770 = vmatprep.subr.mxu1 %v1404_v1  ;;  %1615 = vmatprep.subr.mxu0 %v1404_v1  ;;  %s1852_s6 = scalar_lea.vmem %s2259_s0, %s1773_s28  ;;  %s241_s24 = scalar_lea.vmem %s2264_s5, %s2266_s19 }
   0xf   : > { %1772 = vmatpush3.msra.mxu1 %v1404_v1  ;;  %1616 = vmatpush3.msra.mxu0 %v1404_v1  ;;  %v1855_v4 = vld [vmem:[%s1852_s6 + $0x10] sm:$0xff]  ;;  %v1861_v6 = vld [vmem:[%s1852_s6 + $0x18] sm:$0xff]  ;;  %v1871_v8 = vld [vmem:[%s1852_s6 + $0x20] sm:$0xff] }
  0x10   : > { %1665 = vmatprep.subr.msk.mxu1 %vm380_vm0, %v279_v2  ;;  %1717 = vmatprep.subr.msk.mxu0 %vm380_vm0, %v1473_v3  ;;  %v1858_v5 = vld [vmem:[%s1852_s6 + $0x90] sm:$0xff]  ;;  %v1868_v7 = vld [vmem:[%s1852_s6 + $0x98] sm:$0xff]  ;;  %v1874_v9 = vld [vmem:[%s1852_s6 + $0xa0] sm:$0xff] }
  0x11   : > { %1617 = vmatprep.mubr.msk.f32.mxu0 %vm283_vm1, %v1855_v4  ;;  %1641 = vmatprep.mubr.msk.f32.mxu1 %vm283_vm1, %v1858_v5  ;;  %v1889_v12 = vld [vmem:[%s1852_s6 + $0x28] sm:$0xff]  ;;  %v1899_v14 = vld [vmem:[%s1852_s6 + $0x30] sm:$0xff]  ;;  %v249_v16 = vld [vmem:[%s1852_s6 + $0x38] sm:$0xff] }
  0x12   : > { %1618 = vmatmul.mubr.msk.f32.vlgmr.msra.gmra.mxu0 %vm283_vm1, %v1861_v6  ;;  %1642 = vmatmul.mubr.msk.f32.vlgmr.msra.gmra.mxu1 %vm283_vm1, %v1868_v7  ;;  %v1892_v13 = vld [vmem:[%s1852_s6 + $0xa8] sm:$0xff]  ;;  %v1902_v15 = vld [vmem:[%s1852_s6 + $0xb0] sm:$0xff]  ;;  %v1914_v17 = vld [vmem:[%s1852_s6 + $0xb8] sm:$0xff] }
  0x13   : > { %1666 = vmatpush3.msk.msra.mxu1 %vm380_vm0, %v279_v2  ;;  %1718 = vmatpush3.msk.msra.mxu0 %vm380_vm0, %v1473_v3  ;;  %v250_v18 = vld [vmem:[%s1852_s6 + $0x40] sm:$0xff]  ;;  %v251_v20 = vld [vmem:[%s1852_s6 + $0x48] sm:$0xff]  ;;  %v252_v22 = vld [vmem:[%s1852_s6 + $0x50] sm:$0xff] }
  0x14   : > { %1620 = vmatprep.mubr.msk.f32.mxu0 %vm283_vm1, %v1871_v8  ;;  %1644 = vmatprep.mubr.msk.f32.mxu1 %vm283_vm1, %v1874_v9  ;;  %v1918_v19 = vld [vmem:[%s1852_s6 + $0xc0] sm:$0xff]  ;;  %v1928_v21 = vld [vmem:[%s1852_s6 + $0xc8] sm:$0xff]  ;;  %v1932_v23 = vld [vmem:[%s1852_s6 + $0xd0] sm:$0xff] }
  0x15   : > { %1667 = vmatprep.subr.mxu1 %v278_v10  ;;  %1719 = vmatprep.subr.mxu0 %v1472_v11  ;;  %v253_v24 = vld [vmem:[%s1852_s6 + $0x58] sm:$0xff]  ;;  %v254_v26 = vld [vmem:[%s1852_s6 + $0x60] sm:$0xff]  ;;  %v255_v28 = vld [vmem:[%s1852_s6 + $0x68] sm:$0xff] }
  0x16   : > { %1621 = vmatmul.mubr.msk.f32.gmra.mxu0 %vm283_vm1, %v1889_v12  ;;  %1645 = vmatmul.mubr.msk.f32.gmra.mxu1 %vm283_vm1, %v1892_v13  ;;  %v1942_v25 = vld [vmem:[%s1852_s6 + $0xd8] sm:$0xff]  ;;  %v1946_v27 = vld [vmem:[%s1852_s6 + $0xe0] sm:$0xff]  ;;  %v1956_v29 = vld [vmem:[%s1852_s6 + $0xe8] sm:$0xff] }
  0x17   : > { %1623 = vmatprep.mubr.msk.f32.mxu0 %vm283_vm1, %v1899_v14  ;;  %1647 = vmatprep.mubr.msk.f32.mxu1 %vm283_vm1, %v1902_v15  ;;  %v256_v30 = vld [vmem:[%s1852_s6 + $0x70] sm:$0xff]  ;;  %v257_v32 = vld [vmem:[%s1852_s6 + $0x78] sm:$0xff]  ;;  %v258_v34 = vld [vmem:[%s1852_s6 + $0x80] sm:$0xff] }
  0x18   : > { %1668 = vmatpush3.msra.mxu1 %v278_v10  ;;  %1720 = vmatpush3.msra.mxu0 %v1472_v11  ;;  %v1960_v31 = vld [vmem:[%s1852_s6 + $0xf0] sm:$0xff]  ;;  %v1970_v33 = vld [vmem:[%s1852_s6 + $0xf8] sm:$0xff]  ;;  %v1974_v35 = vld [vmem:[%s1852_s6 + $0x100] sm:$0xff] }
  0x19   : > { %v259_v36 = vld [vmem:[%s1852_s6 + $0x88] sm:$0xff]  ;;  %v242_v38 = vld [vmem:[%s1852_s6] sm:$0xff]  ;;  %v276_v40 = vld [vmem:[%s1852_s6 + $0x110] sm:$0xff] }
  0x1a   : > { %1624 = vmatmul.mubr.msk.f32.gmra.mxu0 %vm283_vm1, %v249_v16  ;;  %1648 = vmatmul.mubr.msk.f32.gmra.mxu1 %vm283_vm1, %v1914_v17  ;;  %v1984_v37 = vld [vmem:[%s1852_s6 + $0x108] sm:$0xff]  ;;  %v277_v41 = vld [vmem:[%s1852_s6 + $0x118] sm:$0xff] }
  0x1b   : > { %1626 = vmatprep.mubr.msk.f32.mxu0 %vm283_vm1, %v250_v18  ;;  %1650 = vmatprep.mubr.msk.f32.mxu1 %vm283_vm1, %v1918_v19  ;;  %v243_v39 = vld [vmem:[%s1852_s6 + $0x8] sm:$0xff] }
  0x1e   : > { %1627 = vmatmul.mubr.msk.f32.gmra.mxu0 %vm283_vm1, %v251_v20  ;;  %1651 = vmatmul.mubr.msk.f32.gmra.mxu1 %vm283_vm1, %v1928_v21 }
  0x1f   : > { %1629 = vmatprep.mubr.msk.f32.mxu0 %vm283_vm1, %v252_v22  ;;  %1653 = vmatprep.mubr.msk.f32.mxu1 %vm283_vm1, %v1932_v23 }
  0x22   : > { %1630 = vmatmul.mubr.msk.f32.gmra.mxu0 %vm283_vm1, %v253_v24  ;;  %1654 = vmatmul.mubr.msk.f32.gmra.mxu1 %vm283_vm1, %v1942_v25 }
  0x23   : > { %1632 = vmatprep.mubr.msk.f32.mxu0 %vm283_vm1, %v254_v26  ;;  %1656 = vmatprep.mubr.msk.f32.mxu1 %vm283_vm1, %v1946_v27 }
  0x26   : > { %1633 = vmatmul.mubr.msk.f32.gmra.mxu0 %vm283_vm1, %v255_v28  ;;  %1657 = vmatmul.mubr.msk.f32.gmra.mxu1 %vm283_vm1, %v1956_v29 }
  0x27   : > { %1635 = vmatprep.mubr.msk.f32.mxu0 %vm283_vm1, %v256_v30  ;;  %1659 = vmatprep.mubr.msk.f32.mxu1 %vm283_vm1, %v1960_v31 }
  0x2a   : > { %1636 = vmatmul.mubr.msk.f32.gmra.mxu0 %vm283_vm1, %v257_v32  ;;  %1660 = vmatmul.mubr.msk.f32.gmra.mxu1 %vm283_vm1, %v1970_v33 }
  0x2b   : > { %1638 = vmatprep.mubr.msk.f32.mxu0 %vm283_vm1, %v258_v34  ;;  %1662 = vmatprep.mubr.msk.f32.mxu1 %vm283_vm1, %v1974_v35 }
  0x2e   : > { %1639 = vmatmul.mubr.msk.f32.gmra.mxu0 %vm283_vm1, %v259_v36  ;;  %1663 = vmatmul.mubr.msk.f32.gmra.mxu1 %vm283_vm1, %v1984_v37 }
  0x2f   : > { %1669 = vmatprep.mubr.msk.f32.mxu1 %vm283_vm1, %v242_v38  ;;  %1721 = vmatprep.mubr.msk.f32.mxu0 %vm283_vm1, %v1871_v8 }
  0x32   : > { %1670 = vmatmul.mubr.msk.f32.vlgmr.msra.gmra.mxu1 %vm283_vm1, %v243_v39  ;;  %1722 = vmatmul.mubr.msk.f32.vlgmr.msra.gmra.mxu0 %vm283_vm1, %v1889_v12 }
  0x33   : > { %1672 = vmatprep.mubr.msk.f32.mxu1 %vm283_vm1, %v1855_v4  ;;  %1724 = vmatprep.mubr.msk.f32.mxu0 %vm283_vm1, %v1899_v14 }
  0x36   : > { %1673 = vmatmul.mubr.msk.f32.gmra.mxu1 %vm283_vm1, %v1861_v6  ;;  %1725 = vmatmul.mubr.msk.f32.gmra.mxu0 %vm283_vm1, %v249_v16 }
  0x37   : > { %1675 = vmatprep.mubr.msk.f32.mxu1 %vm283_vm1, %v1871_v8  ;;  %1727 = vmatprep.mubr.msk.f32.mxu0 %vm283_vm1, %v250_v18 }
  0x3a   : > { %1676 = vmatmul.mubr.msk.f32.gmra.mxu1 %vm283_vm1, %v1889_v12  ;;  %1728 = vmatmul.mubr.msk.f32.gmra.mxu0 %vm283_vm1, %v251_v20 }
  0x3b   : > { %1678 = vmatprep.mubr.msk.f32.mxu1 %vm283_vm1, %v1899_v14  ;;  %1730 = vmatprep.mubr.msk.f32.mxu0 %vm283_vm1, %v252_v22 }
  0x3e   : > { %1679 = vmatmul.mubr.msk.f32.gmra.mxu1 %vm283_vm1, %v249_v16  ;;  %1731 = vmatmul.mubr.msk.f32.gmra.mxu0 %vm283_vm1, %v253_v24 }
  0x3f   : > { %1681 = vmatprep.mubr.msk.f32.mxu1 %vm283_vm1, %v250_v18  ;;  %1733 = vmatprep.mubr.msk.f32.mxu0 %vm283_vm1, %v254_v26 }
  0x42   : > { %1682 = vmatmul.mubr.msk.f32.gmra.mxu1 %vm283_vm1, %v251_v20  ;;  %1734 = vmatmul.mubr.msk.f32.gmra.mxu0 %vm283_vm1, %v255_v28 }
  0x43   : > { %1684 = vmatprep.mubr.msk.f32.mxu1 %vm283_vm1, %v252_v22  ;;  %1736 = vmatprep.mubr.msk.f32.mxu0 %vm283_vm1, %v256_v30 }
  0x46   : > { %1685 = vmatmul.mubr.msk.f32.gmra.mxu1 %vm283_vm1, %v253_v24  ;;  %1737 = vmatmul.mubr.msk.f32.gmra.mxu0 %vm283_vm1, %v257_v32 }
  0x47   : > { %1687 = vmatprep.mubr.msk.f32.mxu1 %vm283_vm1, %v254_v26  ;;  %1739 = vmatprep.mubr.msk.f32.mxu0 %vm283_vm1, %v258_v34 }
  0x4a   : > { %1688 = vmatmul.mubr.msk.f32.gmra.mxu1 %vm283_vm1, %v255_v28  ;;  %1740 = vmatmul.mubr.msk.f32.gmra.mxu0 %vm283_vm1, %v259_v36 }
  0x4b   : > { %1690 = vmatprep.mubr.msk.f32.mxu1 %vm283_vm1, %v256_v30  ;;  %1742 = vmatprep.mubr.msk.f32.mxu0 %vm283_vm1, %v1858_v5 }
  0x4e   : > { %1691 = vmatmul.mubr.msk.f32.gmra.mxu1 %vm283_vm1, %v257_v32  ;;  %1743 = vmatmul.mubr.msk.f32.gmra.mxu0 %vm283_vm1, %v1868_v7 }
  0x4f   : > { %1693 = vmatprep.mubr.msk.f32.mxu1 %vm283_vm1, %v258_v34  ;;  %1745 = vmatprep.mubr.msk.f32.mxu0 %vm283_vm1, %v1874_v9 }
  0x52   : > { %1694 = vmatmul.mubr.msk.f32.gmra.mxu1 %vm283_vm1, %v259_v36  ;;  %1746 = vmatmul.mubr.msk.f32.gmra.mxu0 %vm283_vm1, %v1892_v13 }
  0x53   : > { %1696 = vmatprep.mubr.msk.f32.mxu1 %vm283_vm1, %v1858_v5  ;;  %1748 = vmatprep.mubr.msk.f32.mxu0 %vm283_vm1, %v1902_v15 }
  0x56   : > { %1697 = vmatmul.mubr.msk.f32.gmra.mxu1 %vm283_vm1, %v1868_v7  ;;  %1749 = vmatmul.mubr.msk.f32.gmra.mxu0 %vm283_vm1, %v1914_v17 }
  0x57   : > { %1699 = vmatprep.mubr.msk.f32.mxu1 %vm283_vm1, %v1874_v9  ;;  %1751 = vmatprep.mubr.msk.f32.mxu0 %vm283_vm1, %v1918_v19 }
  0x5a   : > { %1700 = vmatmul.mubr.msk.f32.gmra.mxu1 %vm283_vm1, %v1892_v13  ;;  %1752 = vmatmul.mubr.msk.f32.gmra.mxu0 %vm283_vm1, %v1928_v21  ;;  %v2151_v13 = vld [vmem:[%s2261_s2] ss:$0 sm:$0xff] }
  0x5b   : > { %1702 = vmatprep.mubr.msk.f32.mxu1 %vm283_vm1, %v1902_v15  ;;  %1754 = vmatprep.mubr.msk.f32.mxu0 %vm283_vm1, %v1932_v23 }
  0x5e   : > { %1703 = vmatmul.mubr.msk.f32.gmra.mxu1 %vm283_vm1, %v1914_v17  ;;  %1755 = vmatmul.mubr.msk.f32.gmra.mxu0 %vm283_vm1, %v1942_v25 }
  0x5f   : > { %1705 = vmatprep.mubr.msk.f32.mxu1 %vm283_vm1, %v1918_v19  ;;  %1757 = vmatprep.mubr.msk.f32.mxu0 %vm283_vm1, %v1946_v27 }
  0x62   : > { %1706 = vmatmul.mubr.msk.f32.gmra.mxu1 %vm283_vm1, %v1928_v21  ;;  %1758 = vmatmul.mubr.msk.f32.gmra.mxu0 %vm283_vm1, %v1956_v29 }
  0x63   : > { %1708 = vmatprep.mubr.msk.f32.mxu1 %vm283_vm1, %v1932_v23  ;;  %1760 = vmatprep.mubr.msk.f32.mxu0 %vm283_vm1, %v1960_v31 }
  0x66   : > { %1709 = vmatmul.mubr.msk.f32.gmra.mxu1 %vm283_vm1, %v1942_v25  ;;  %1761 = vmatmul.mubr.msk.f32.gmra.mxu0 %vm283_vm1, %v1970_v33 }
  0x67   : > { %1711 = vmatprep.mubr.msk.f32.mxu1 %vm283_vm1, %v1946_v27  ;;  %1763 = vmatprep.mubr.msk.f32.mxu0 %vm283_vm1, %v1974_v35 }
  0x6a   : > { %1712 = vmatmul.mubr.msk.f32.gmra.mxu1 %vm283_vm1, %v1956_v29  ;;  %1764 = vmatmul.mubr.msk.f32.gmra.mxu0 %vm283_vm1, %v1984_v37 }
  0x6b   : > { %1714 = vmatprep.mubr.msk.f32.mxu1 %vm283_vm1, %v1960_v31  ;;  %1766 = vmatprep.mubr.msk.f32.mxu0 %vm283_vm1, %v276_v40 }
  0x6e   : > { %1715 = vmatmul.mubr.msk.f32.gmra.mxu1 %vm283_vm1, %v1970_v33  ;;  %1767 = vmatmul.mubr.msk.f32.gmra.mxu0 %vm283_vm1, %v277_v41 }
  0xd2   : > { %v1619_v42 = vpop.f32.mrf.mxu0  ;;  %v2095_v43 = vpop.f32.mrf.mxu1 }
  0xd4   : > { %v450_v44 = vpop.f32.mrf.mxu0  ;;  %v2097_v45 = vpop.f32.mrf.mxu1 }
  0xd6   : > { %v1622_v46 = vpop.f32.mrf.mxu0  ;;  %v2099_v47 = vpop.f32.mrf.mxu1 }
  0xd8   : > { %v460_v48 = vpop.f32.mrf.mxu0  ;;  %v2101_v49 = vpop.f32.mrf.mxu1 }
  0xda   : > { %v1625_v50 = vpop.f32.mrf.mxu0  ;;  %v2103_v51 = vpop.f32.mrf.mxu1 }
  0xdc   : > { %v470_v52 = vpop.f32.mrf.mxu0  ;;  %v2105_v53 = vpop.f32.mrf.mxu1 }
  0xde   : > { %v2107_v54 = vpop.f32.mrf.mxu0  ;;  %v2109_v55 = vpop.f32.mrf.mxu1 }
  0xe0   : > { %v2111_v56 = vpop.f32.mrf.mxu0  ;;  %v2113_v57 = vpop.f32.mrf.mxu1 }
  0xe2   : > { %v2115_v58 = vpop.f32.mrf.mxu0  ;;  %v2117_v59 = vpop.f32.mrf.mxu1 }
  0xe4   : > { %v2119_v60 = vpop.f32.mrf.mxu0  ;;  %v2121_v61 = vpop.f32.mrf.mxu1 }
  0xe6   : > { %v2123_v62 = vpop.f32.mrf.mxu0  ;;  %v2125_v63 = vpop.f32.mrf.mxu1 }
  0xe8   : > { %v2127_v0 = vpop.f32.mrf.mxu0  ;;  %v2129_v1 = vpop.f32.mrf.mxu1 }
  0xea   : > { %v2131_v2 = vpop.f32.mrf.mxu0  ;;  %v2133_v3 = vpop.f32.mrf.mxu1 }
  0xec   : > { %v2135_v4 = vpop.f32.mrf.mxu0  ;;  %v2137_v5 = vpop.f32.mrf.mxu1 }
  0xee   : > { %v2139_v6 = vpop.f32.mrf.mxu0  ;;  %v2141_v7 = vpop.f32.mrf.mxu1 }
  0xf0   : > { %v2143_v8 = vpop.f32.mrf.mxu0  ;;  %v2145_v9 = vpop.f32.mrf.mxu1 }
  0xf2   : > { %v1671_v10 = vpop.f32.mrf.mxu1  ;;  %v1723_v11 = vpop.f32.mrf.mxu0 }
  0xf3   : > { %v690_v12 = vadd.f32 %v1671_v10, %v1619_v42 }
  0xf4   : > { %v684_v14 = vpop.f32.mrf.mxu1  ;;  %v921_v15 = vpop.f32.mrf.mxu0 }
  0xf5   : > { %v1081_v16 = vadd.f32 %v1723_v11, %v690_v12  ;;  %v685_v17 = vadd.f32 %v684_v14, %v450_v44 }
  0xf6   : > { %v1674_v18 = vpop.f32.mrf.mxu1  ;;  %v1726_v19 = vpop.f32.mrf.mxu0 }
  0xf7   : > { %v1120_v20 = vadd.f32 %v2151_v13, %v1081_v16  ;;  %v1080_v21 = vadd.f32 %v921_v15, %v685_v17  ;;  %v700_v22 = vadd.f32 %v1674_v18, %v1622_v46 }
  0xf8   : > { %v694_v23 = vpop.f32.mrf.mxu1  ;;  %v931_v24 = vpop.f32.mrf.mxu0 }
  0xf9   : > { %1152 = vst [vmem:[%s2156_s16 + $0x8] sm:$0xff] %v1120_v20  ;;  %v1119_v25 = vadd.f32 %v2151_v13, %v1080_v21  ;;  %v1083_v26 = vadd.f32 %v1726_v19, %v700_v22  ;;  %v695_v27 = vadd.f32 %v694_v23, %v460_v48  ;;  %v1222_v33 = vmul.f32 %v1120_v20, %v1120_v20 }
  0xfa   : > { %v1677_v28 = vpop.f32.mrf.mxu1  ;;  %v1729_v29 = vpop.f32.mrf.mxu0 }
  0xfb   : > { %1151 = vst [vmem:[%s2156_s16] sm:$0xff] %v1119_v25  ;;  %v1221_v30 = vmul.f32 %v1119_v25, %v1119_v25  ;;  %v1122_v31 = vadd.f32 %v2151_v13, %v1083_v26  ;;  %v1082_v32 = vadd.f32 %v931_v24, %v695_v27  ;;  %v710_v34 = vadd.f32 %v1677_v28, %v1625_v50 }
  0xfc   : > { %v704_v35 = vpop.f32.mrf.mxu1  ;;  %v941_v36 = vpop.f32.mrf.mxu0  ;;  %v1183_v37 = vadd.f32 %v1120_v20, %v1119_v25 }
  0xfd   : > { %1154 = vst [vmem:[%s2156_s16 + $0x18] sm:$0xff] %v1122_v31  ;;  %v1121_v38 = vadd.f32 %v2151_v13, %v1082_v32  ;;  %v705_v39 = vadd.f32 %v704_v35, %v470_v52  ;;  %v1253_v40 = vadd.f32 %v1222_v33, %v1221_v30  ;;  %v1085_v41 = vadd.f32 %v1729_v29, %v710_v34 }
  0xfe   : > { %v1680_v42 = vpop.f32.mrf.mxu1  ;;  %v1732_v44 = vpop.f32.mrf.mxu0  ;;  %v1224_v50 = vmul.f32 %v1122_v31, %v1122_v31 }
  0xff   : > { %1153 = vst [vmem:[%s2156_s16 + $0x10] sm:$0xff] %v1121_v38  ;;  %v1184_v46 = vadd.f32 %v1183_v37, %v1121_v38  ;;  %v1223_v48 = vmul.f32 %v1121_v38, %v1121_v38  ;;  %v1084_v10 = vadd.f32 %v941_v36, %v705_v39  ;;  %v720_v11 = vadd.f32 %v1680_v42, %v2107_v54 }
 0x100   : > { %v1124_v12 = vadd.f32 %v2151_v13, %v1085_v41  ;;  %v714_v14 = vpop.f32.mrf.mxu1  ;;  %v951_v15 = vpop.f32.mrf.mxu0 }
 0x101   : > { %v1254_v16 = vadd.f32 %v1253_v40, %v1223_v48  ;;  %v1123_v52 = vadd.f32 %v2151_v13, %v1084_v10  ;;  %v1185_v17 = vadd.f32 %v1184_v46, %v1122_v31  ;;  %v1087_v18 = vadd.f32 %v1732_v44, %v720_v11 }
 0x102   : > { %1156 = vst [vmem:[%s2156_s16 + $0x28] sm:$0xff] %v1124_v12  ;;  %v715_v19 = vadd.f32 %v714_v14, %v2111_v56  ;;  %v1683_v20 = vpop.f32.mrf.mxu1  ;;  %v1735_v21 = vpop.f32.mrf.mxu0  ;;  %v1226_v29 = vmul.f32 %v1124_v12, %v1124_v12 }
 0x103   : > { %1155 = vst [vmem:[%s2156_s16 + $0x20] sm:$0xff] %v1123_v52  ;;  %v1186_v22 = vadd.f32 %v1185_v17, %v1123_v52  ;;  %v1225_v23 = vmul.f32 %v1123_v52, %v1123_v52  ;;  %v1255_v54 = vadd.f32 %v1254_v16, %v1224_v50  ;;  %v1126_v24 = vadd.f32 %v2151_v13, %v1087_v18 }
 0x104   : > { %v1086_v25 = vadd.f32 %v951_v15, %v715_v19  ;;  %v730_v26 = vadd.f32 %v1683_v20, %v2115_v58  ;;  %v724_v27 = vpop.f32.mrf.mxu1  ;;  %v961_v28 = vpop.f32.mrf.mxu0 }
 0x105   : > { %v1256_v30 = vadd.f32 %v1255_v54, %v1225_v23  ;;  %1158 = vst [vmem:[%s2156_s16 + $0x38] sm:$0xff] %v1126_v24  ;;  %v1187_v31 = vadd.f32 %v1186_v22, %v1124_v12  ;;  %v725_v56 = vadd.f32 %v724_v27, %v2119_v60  ;;  %v1228_v48 = vmul.f32 %v1126_v24, %v1126_v24 }
 0x106   : > { %v1125_v32 = vadd.f32 %v2151_v13, %v1086_v25  ;;  %v1089_v33 = vadd.f32 %v1735_v21, %v730_v26  ;;  %v1686_v34 = vpop.f32.mrf.mxu1  ;;  %v1738_v35 = vpop.f32.mrf.mxu0 }
 0x107   : > { %v1257_v36 = vadd.f32 %v1256_v30, %v1226_v29  ;;  %v1088_v37 = vadd.f32 %v961_v28, %v725_v56  ;;  %v740_v38 = vadd.f32 %v1686_v34, %v2123_v62 }
 0x108   : > { %1157 = vst [vmem:[%s2156_s16 + $0x30] sm:$0xff] %v1125_v32  ;;  %v1188_v58 = vadd.f32 %v1187_v31, %v1125_v32  ;;  %v1227_v39 = vmul.f32 %v1125_v32, %v1125_v32  ;;  %v1128_v40 = vadd.f32 %v2151_v13, %v1089_v33  ;;  %v734_v41 = vpop.f32.mrf.mxu1  ;;  %v971_v42 = vpop.f32.mrf.mxu0 }
 0x109   : > { %v1127_v60 = vadd.f32 %v2151_v13, %v1088_v37  ;;  %v1091_v44 = vadd.f32 %v1738_v35, %v740_v38  ;;  %v735_v46 = vadd.f32 %v734_v41, %v2127_v0 }
 0x10a   : > { %v1258_v10 = vadd.f32 %v1257_v36, %v1227_v39  ;;  %1160 = vst [vmem:[%s2156_s16 + $0x48] sm:$0xff] %v1128_v40  ;;  %v1189_v11 = vadd.f32 %v1188_v58, %v1126_v24  ;;  %v1689_v50 = vpop.f32.mrf.mxu1  ;;  %v1741_v62 = vpop.f32.mrf.mxu0  ;;  %v1230_v22 = vmul.f32 %v1128_v40, %v1128_v40 }
 0x10b   : > { %1159 = vst [vmem:[%s2156_s16 + $0x40] sm:$0xff] %v1127_v60  ;;  %v1229_v12 = vmul.f32 %v1127_v60, %v1127_v60  ;;  %v1130_v14 = vadd.f32 %v2151_v13, %v1091_v44  ;;  %v1090_v15 = vadd.f32 %v971_v42, %v735_v46  ;;  %v750_v16 = vadd.f32 %v1689_v50, %v2131_v2 }
 0x10c   : > { %v1190_v52 = vadd.f32 %v1189_v11, %v1127_v60  ;;  %v1259_v17 = vadd.f32 %v1258_v10, %v1228_v48  ;;  %v744_v18 = vpop.f32.mrf.mxu1  ;;  %v981_v19 = vpop.f32.mrf.mxu0 }
 0x10d   : > { %1162 = vst [vmem:[%s2156_s16 + $0x58] sm:$0xff] %v1130_v14  ;;  %v1129_v0 = vadd.f32 %v2151_v13, %v1090_v15  ;;  %v1093_v20 = vadd.f32 %v1741_v62, %v750_v16  ;;  %v745_v21 = vadd.f32 %v744_v18, %v2135_v4  ;;  %v1232_v34 = vmul.f32 %v1130_v14, %v1130_v14 }
 0x10e   : > { %v1260_v23 = vadd.f32 %v1259_v17, %v1229_v12  ;;  %v1191_v54 = vadd.f32 %v1190_v52, %v1128_v40  ;;  %v1692_v24 = vpop.f32.mrf.mxu1  ;;  %v1744_v25 = vpop.f32.mrf.mxu0 }
 0x10f   : > { %1161 = vst [vmem:[%s2156_s16 + $0x50] sm:$0xff] %v1129_v0  ;;  %v1231_v26 = vmul.f32 %v1129_v0, %v1129_v0  ;;  %v1132_v2 = vadd.f32 %v2151_v13, %v1093_v20  ;;  %v1092_v27 = vadd.f32 %v981_v19, %v745_v21  ;;  %v760_v28 = vadd.f32 %v1692_v24, %v2139_v6 }
 0x110   : > { %v1192_v29 = vadd.f32 %v1191_v54, %v1129_v0  ;;  %v1261_v30 = vadd.f32 %v1260_v23, %v1230_v22  ;;  %v754_v31 = vpop.f32.mrf.mxu1  ;;  %v991_v56 = vpop.f32.mrf.mxu0 }
 0x111   : > { %1164 = vst [vmem:[%s2156_s16 + $0x68] sm:$0xff] %v1132_v2  ;;  %v1131_v4 = vadd.f32 %v2151_v13, %v1092_v27  ;;  %v1095_v32 = vadd.f32 %v1744_v25, %v760_v28  ;;  %v755_v33 = vadd.f32 %v754_v31, %v2143_v8  ;;  %v1234_v10 = vmul.f32 %v1132_v2, %v1132_v2 }
 0x112   : > { %v1262_v35 = vadd.f32 %v1261_v30, %v1231_v26  ;;  %v1193_v36 = vadd.f32 %v1192_v29, %v1130_v14  ;;  %v1695_v37 = vpop.f32.mrf.mxu1  ;;  %v1747_v38 = vpop.f32.mrf.mxu0 }
 0x113   : > { %1163 = vst [vmem:[%s2156_s16 + $0x60] sm:$0xff] %v1131_v4  ;;  %v1233_v58 = vmul.f32 %v1131_v4, %v1131_v4  ;;  %v1134_v6 = vadd.f32 %v2151_v13, %v1095_v32  ;;  %v1094_v39 = vadd.f32 %v991_v56, %v755_v33  ;;  %v770_v40 = vadd.f32 %v1695_v37, %v2095_v43 }
 0x114   : > { %v1194_v41 = vadd.f32 %v1193_v36, %v1131_v4  ;;  %v1263_v42 = vadd.f32 %v1262_v35, %v1232_v34  ;;  %v764_v60 = vpop.f32.mrf.mxu1  ;;  %v1001_v44 = vpop.f32.mrf.mxu0 }
 0x115   : > { %1166 = vst [vmem:[%s2156_s16 + $0x78] sm:$0xff] %v1134_v6  ;;  %v1133_v8 = vadd.f32 %v2151_v13, %v1094_v39  ;;  %v1097_v46 = vadd.f32 %v1747_v38, %v770_v40  ;;  %v765_v48 = vadd.f32 %v764_v60, %v2097_v45  ;;  %v1236_v21 = vmul.f32 %v1134_v6, %v1134_v6 }
 0x116   : > { %v1264_v11 = vadd.f32 %v1263_v42, %v1233_v58  ;;  %v1195_v50 = vadd.f32 %v1194_v41, %v1132_v2  ;;  %v1698_v62 = vpop.f32.mrf.mxu1  ;;  %v1750_v12 = vpop.f32.mrf.mxu0 }
 0x117   : > { %1165 = vst [vmem:[%s2156_s16 + $0x70] sm:$0xff] %v1133_v8  ;;  %v1235_v14 = vmul.f32 %v1133_v8, %v1133_v8  ;;  %v1136_v43 = vadd.f32 %v2151_v13, %v1097_v46  ;;  %v1096_v15 = vadd.f32 %v1001_v44, %v765_v48  ;;  %v780_v16 = vadd.f32 %v1698_v62, %v2099_v47 }
 0x118   : > { %v1196_v52 = vadd.f32 %v1195_v50, %v1133_v8  ;;  %v1265_v17 = vadd.f32 %v1264_v11, %v1234_v10  ;;  %v774_v18 = vpop.f32.mrf.mxu1  ;;  %v1011_v19 = vpop.f32.mrf.mxu0 }
 0x119   : > { %1168 = vst [vmem:[%s2156_s16 + $0x88] sm:$0xff] %v1136_v43  ;;  %v1135_v45 = vadd.f32 %v2151_v13, %v1096_v15  ;;  %v1099_v0 = vadd.f32 %v1750_v12, %v780_v16  ;;  %v775_v20 = vadd.f32 %v774_v18, %v2101_v49  ;;  %v1238_v4 = vmul.f32 %v1136_v43, %v1136_v43 }
 0x11a   : > { %v1266_v22 = vadd.f32 %v1265_v17, %v1235_v14  ;;  %v1197_v23 = vadd.f32 %v1196_v52, %v1134_v6  ;;  %v1701_v54 = vpop.f32.mrf.mxu1  ;;  %v1753_v24 = vpop.f32.mrf.mxu0 }
 0x11b   : > { %1167 = vst [vmem:[%s2156_s16 + $0x80] sm:$0xff] %v1135_v45  ;;  %v1237_v25 = vmul.f32 %v1135_v45, %v1135_v45  ;;  %v1138_v47 = vadd.f32 %v2151_v13, %v1099_v0  ;;  %v1098_v26 = vadd.f32 %v1011_v19, %v775_v20  ;;  %v790_v2 = vadd.f32 %v1701_v54, %v2103_v51 }
 0x11c   : > { %v1198_v27 = vadd.f32 %v1197_v23, %v1135_v45  ;;  %v1267_v28 = vadd.f32 %v1266_v22, %v1236_v21  ;;  %v784_v29 = vpop.f32.mrf.mxu1  ;;  %v1021_v30 = vpop.f32.mrf.mxu0 }
 0x11d   : > { %1170 = vst [vmem:[%s2156_s16 + $0x98] sm:$0xff] %v1138_v47  ;;  %v1137_v49 = vadd.f32 %v2151_v13, %v1098_v26  ;;  %v1101_v31 = vadd.f32 %v1753_v24, %v790_v2  ;;  %v785_v56 = vadd.f32 %v784_v29, %v2105_v53  ;;  %v1240_v60 = vmul.f32 %v1138_v47, %v1138_v47 }
 0x11e   : > { %v1268_v32 = vadd.f32 %v1267_v28, %v1237_v25  ;;  %v1199_v33 = vadd.f32 %v1198_v27, %v1136_v43  ;;  %v1704_v34 = vpop.f32.mrf.mxu1  ;;  %v1756_v35 = vpop.f32.mrf.mxu0 }
 0x11f   : > { %1169 = vst [vmem:[%s2156_s16 + $0x90] sm:$0xff] %v1137_v49  ;;  %v1239_v36 = vmul.f32 %v1137_v49, %v1137_v49  ;;  %v1140_v51 = vadd.f32 %v2151_v13, %v1101_v31  ;;  %v1100_v37 = vadd.f32 %v1021_v30, %v785_v56  ;;  %v800_v38 = vadd.f32 %v1704_v34, %v2109_v55 }
 0x120   : > { %v1200_v58 = vadd.f32 %v1199_v33, %v1137_v49  ;;  %v1269_v6 = vadd.f32 %v1268_v32, %v1238_v4  ;;  %v794_v39 = vpop.f32.mrf.mxu1  ;;  %v1031_v40 = vpop.f32.mrf.mxu0 }
 0x121   : > { %1172 = vst [vmem:[%s2156_s16 + $0xa8] sm:$0xff] %v1140_v51  ;;  %v1139_v53 = vadd.f32 %v2151_v13, %v1100_v37  ;;  %v1103_v41 = vadd.f32 %v1756_v35, %v800_v38  ;;  %v795_v42 = vadd.f32 %v794_v39, %v2113_v57  ;;  %v1242_v52 = vmul.f32 %v1140_v51, %v1140_v51 }
 0x122   : > { %v1270_v44 = vadd.f32 %v1269_v6, %v1239_v36  ;;  %v1201_v8 = vadd.f32 %v1200_v58, %v1138_v47  ;;  %v1707_v46 = vpop.f32.mrf.mxu1  ;;  %v1759_v48 = vpop.f32.mrf.mxu0 }
 0x123   : > { %1171 = vst [vmem:[%s2156_s16 + $0xa0] sm:$0xff] %v1139_v53  ;;  %v1241_v10 = vmul.f32 %v1139_v53, %v1139_v53  ;;  %v1142_v55 = vadd.f32 %v2151_v13, %v1103_v41  ;;  %v1102_v11 = vadd.f32 %v1031_v40, %v795_v42  ;;  %v810_v50 = vadd.f32 %v1707_v46, %v2117_v59 }
 0x124   : > { %v1202_v62 = vadd.f32 %v1201_v8, %v1139_v53  ;;  %v1271_v12 = vadd.f32 %v1270_v44, %v1240_v60  ;;  %v804_v14 = vpop.f32.mrf.mxu1  ;;  %v1041_v43 = vpop.f32.mrf.mxu0 }
 0x125   : > { %1174 = vst [vmem:[%s2156_s16 + $0xb8] sm:$0xff] %v1142_v55  ;;  %v1141_v57 = vadd.f32 %v2151_v13, %v1102_v11  ;;  %v1105_v15 = vadd.f32 %v1759_v48, %v810_v50  ;;  %v805_v16 = vadd.f32 %v804_v14, %v2121_v61  ;;  %v1244_v26 = vmul.f32 %v1142_v55, %v1142_v55 }
 0x126   : > { %v1272_v17 = vadd.f32 %v1271_v12, %v1241_v10  ;;  %v1203_v18 = vadd.f32 %v1202_v62, %v1140_v51  ;;  %v1710_v19 = vpop.f32.mrf.mxu1  ;;  %v1762_v45 = vpop.f32.mrf.mxu0 }
 0x127   : > { %1173 = vst [vmem:[%s2156_s16 + $0xb0] sm:$0xff] %v1141_v57  ;;  %v1243_v0 = vmul.f32 %v1141_v57, %v1141_v57  ;;  %v1144_v59 = vadd.f32 %v2151_v13, %v1105_v15  ;;  %v1104_v20 = vadd.f32 %v1041_v43, %v805_v16  ;;  %v820_v21 = vadd.f32 %v1710_v19, %v2125_v63 }
 0x128   : > { %v1204_v22 = vadd.f32 %v1203_v18, %v1141_v57  ;;  %v1273_v23 = vadd.f32 %v1272_v17, %v1242_v52  ;;  %v814_v54 = vpop.f32.mrf.mxu1  ;;  %v1051_v24 = vpop.f32.mrf.mxu0 }
 0x129   : > { %1176 = vst [vmem:[%s2156_s16 + $0xc8] sm:$0xff] %v1144_v59  ;;  %v1143_v61 = vadd.f32 %v2151_v13, %v1104_v20  ;;  %v1107_v25 = vadd.f32 %v1762_v45, %v820_v21  ;;  %v815_v47 = vadd.f32 %v814_v54, %v2129_v1  ;;  %v1246_v36 = vmul.f32 %v1144_v59, %v1144_v59 }
 0x12a   : > { %v1274_v2 = vadd.f32 %v1273_v23, %v1243_v0  ;;  %v1205_v27 = vadd.f32 %v1204_v22, %v1142_v55  ;;  %v1713_v28 = vpop.f32.mrf.mxu1  ;;  %v1765_v29 = vpop.f32.mrf.mxu0 }
 0x12b   : > { %1175 = vst [vmem:[%s2156_s16 + $0xc0] sm:$0xff] %v1143_v61  ;;  %v1245_v30 = vmul.f32 %v1143_v61, %v1143_v61  ;;  %v1146_v63 = vadd.f32 %v2151_v13, %v1107_v25  ;;  %v1106_v49 = vadd.f32 %v1051_v24, %v815_v47  ;;  %v830_v31 = vadd.f32 %v1713_v28, %v2133_v3 }
 0x12c   : > { %v1206_v56 = vadd.f32 %v1205_v27, %v1143_v61  ;;  %v1275_v4 = vadd.f32 %v1274_v2, %v1244_v26  ;;  %v824_v32 = vpop.f32.mrf.mxu1  ;;  %v1061_v33 = vpop.f32.mrf.mxu0 }
 0x12d   : > { %1178 = vst [vmem:[%s2156_s16 + $0xd8] sm:$0xff] %v1146_v63  ;;  %v1145_v1 = vadd.f32 %v2151_v13, %v1106_v49  ;;  %v1109_v34 = vadd.f32 %v1765_v29, %v830_v31  ;;  %v825_v35 = vadd.f32 %v824_v32, %v2137_v5  ;;  %v1248_v8 = vmul.f32 %v1146_v63, %v1146_v63 }
 0x12e   : > { %v1276_v51 = vadd.f32 %v1275_v4, %v1245_v30  ;;  %v1207_v37 = vadd.f32 %v1206_v56, %v1144_v59  ;;  %v1716_v38 = vpop.f32.mrf.mxu1  ;;  %v1768_v58 = vpop.f32.mrf.mxu0 }
 0x12f   : > { %1177 = vst [vmem:[%s2156_s16 + $0xd0] sm:$0xff] %v1145_v1  ;;  %v1247_v6 = vmul.f32 %v1145_v1, %v1145_v1  ;;  %v1148_v3 = vadd.f32 %v2151_v13, %v1109_v34  ;;  %v1108_v39 = vadd.f32 %v1061_v33, %v825_v35  ;;  %v840_v40 = vadd.f32 %v1716_v38, %v2141_v7 }
 0x130   : > { %v1208_v53 = vadd.f32 %v1207_v37, %v1145_v1  ;;  %v1277_v41 = vadd.f32 %v1276_v51, %v1246_v36  ;;  %v834_v42 = vpop.f32.mrf.mxu1  ;;  %v1071_v10 = vpop.f32.mrf.mxu0 }
 0x131   : > { %1180 = vst [vmem:[%s2156_s16 + $0xe8] sm:$0xff] %v1148_v3  ;;  %v1147_v5 = vadd.f32 %v2151_v13, %v1108_v39  ;;  %v1111_v60 = vadd.f32 %v1768_v58, %v840_v40  ;;  %v835_v44 = vadd.f32 %v834_v42, %v2145_v9  ;;  %v1250_v14 = vmul.f32 %v1148_v3, %v1148_v3 }
 0x132   : > { %v1278_v46 = vadd.f32 %v1277_v41, %v1247_v6  ;;  %v1209_v48 = vadd.f32 %v1208_v53, %v1146_v63 }
 0x133   : > { %1179 = vst [vmem:[%s2156_s16 + $0xe0] sm:$0xff] %v1147_v5  ;;  %v1249_v55 = vmul.f32 %v1147_v5, %v1147_v5  ;;  %v1150_v11 = vadd.f32 %v2151_v13, %v1111_v60  ;;  %v1110_v7 = vadd.f32 %v1071_v10, %v835_v44 }
 0x134   : > { %v1210_v50 = vadd.f32 %v1209_v48, %v1147_v5  ;;  %v1279_v62 = vadd.f32 %v1278_v46, %v1248_v8 }
 0x135   : > { %1182 = vst [vmem:[%s2156_s16 + $0xf8] sm:$0xff] %v1150_v11  ;;  %v1149_v12 = vadd.f32 %v2151_v13, %v1110_v7  ;;  %v1252_v52 = vmul.f32 %v1150_v11, %v1150_v11 }
 0x136   : > { %v1280_v43 = vadd.f32 %v1279_v62, %v1249_v55  ;;  %v1211_v57 = vadd.f32 %v1210_v50, %v1148_v3 }
 0x137   : > { %1181 = vst [vmem:[%s2156_s16 + $0xf0] sm:$0xff] %v1149_v12  ;;  %v1251_v9 = vmul.f32 %v1149_v12, %v1149_v12 }
 0x138   : > { %v1212_v15 = vadd.f32 %v1211_v57, %v1149_v12  ;;  %v1281_v16 = vadd.f32 %v1280_v43, %v1250_v14 }
 0x13a   : > { %v1213_v17 = vadd.f32 %v1212_v15, %v1150_v11  ;;  %v1282_v18 = vadd.f32 %v1281_v16, %v1251_v9 }
 0x13c   : > { %v1214_v19 = vrot.slane %v1213_v17, 4  ;;  %v1283_v45 = vadd.f32 %v1282_v18, %v1252_v52 }
 0x13e   : > { %v1215_v0 = vadd.f32 %v1214_v19, %v1213_v17  ;;  %v1284_v59 = vrot.slane %v1283_v45, 4 }
 0x140   : > { %v1216_v20 = vrot.slane %v1215_v0, 2  ;;  %v1285_v21 = vadd.f32 %v1284_v59, %v1283_v45 }
 0x142   : > { %v1217_v22 = vadd.f32 %v1216_v20, %v1215_v0  ;;  %v1286_v13 = vrot.slane %v1285_v21, 2 }
 0x144   : > { %v1218_v23 = vrot.slane %v1217_v22, 1  ;;  %v1287_v54 = vadd.f32 %v1286_v13, %v1285_v21 }
 0x146   : > { %v1219_v24 = vadd.f32 %v1218_v23, %v1217_v22  ;;  %v1288_v61 = vrot.slane %v1287_v54, 1 }
 0x148   : > { %1220 = vst [vmem:[%s238_s21] sm:$0x1] %v1219_v24  ;;  %v1289_v25 = vadd.f32 %v1288_v61, %v1287_v54 }
 0x14a   : > { %1290 = vst [vmem:[%s241_s24] sm:$0x1] %v1289_v25 }
 0x14b PF: > { %s16_s18 = sadd.s32 1, %s1788_s18  }
 0x14c   : > { %p13_p4 = scmp.ge.s32.totalorder %s16_s18, 4  }
 0x14e   :  { %15 = sbr.rel (!%p13_p4) target bundleno = 1 (0x1), region = 88 }

// kernel: downsampling_block.6
= control target key start
LH: loop header
LB: loop body
LE: loop exit
PB: predicated region body
PF: predicated region fallthrough
CT: control target
= control target key end

     0   :  { %s1823_s18 = smov 0   ;;  %s2273_s0 = inlined_call_operand.vmem [shape: f32[2,288,24], index: 0, kind: input, shape index: {}]   ;;  %s2274_s1 = inlined_call_operand.vmem [shape: f32[3,24,128], index: 1, kind: input, shape index: {}]   ;;  %s2275_s2 = inlined_call_operand.vmem [shape: f32[1,128], index: 2, kind: input, shape index: {}]   ;;  %s2276_s3 = inlined_call_operand.vmem [shape: f32[2,256,128], index: 3, kind: output, shape index: {0}]   ;;  %s2277_s4 = inlined_call_operand.vmem [shape: f32[2,1,128], index: 4, kind: output, shape index: {1}]   ;;  %s2278_s5 = inlined_call_operand.vmem [shape: f32[2,1,128], index: 5, kind: output, shape index: {2}]  }
   0x1 LB: > { %s1389_s19 = sadd.s32 4294967295, %s1791_s18   ;;  %p1393_p0 = scmp.ge.s32.totalorder %s1791_s18, 1  ;;  %s1791_s18 = sphi %s1823_s18, %s16_s18  }
   0x2   : > { %p192_p1 = scmp.lt.s32.totalorder %s1791_s18, 3 }
   0x4   : > { %p193_p2 = pnand %p1393_p0, %p192_p1 }
   0x5   : > { %p226_p3 = scmp.lt.s32.totalorder (!%p193_p2), %s1389_s19, 1 }
   0x6   : > { %196 = sbr.rel (%p193_p2) target bundleno = 333 (0x14d), region = 32 }
   0xb   : > { %v1399_v0 = vld [vmem:[%s2274_s1 + $0x28] sm:$0xff]  ;;  %v1398_v1 = vld [vmem:[%s2274_s1 + $0x20] sm:$0xff]  ;;  %v1397_v2 = vld [vmem:[%s2274_s1 + $0x18] sm:$0xff]  ;;  %s2280_s19 = smov (!%p226_p3, %s1389_s19), 1  ;;  %vm285_vm0 = vcmask 195584  }
   0xc   : > { %1770 = vmatprep.subr.mxu1 %v1399_v0  ;;  %1608 = vmatprep.subr.mxu0 %v1399_v0  ;;  %s1776_s26 = smul.u32 288, %s2280_s19  ;;  %v280_v3 = vld [vmem:[%s2274_s1 + $0x10] sm:$0xff]  ;;  %v1466_v4 = vld [vmem:[%s2274_s1 + $0x40] sm:$0xff]  ;;  %v279_v11 = vld [vmem:[%s2274_s1 + $0x8] sm:$0xff]  ;;  %s1502_s17 = sshll.u32 %s2280_s19, 8 }
   0xd   : > { %1773 = vmatpush3.msra.mxu1 %v1399_v0  ;;  %1609 = vmatpush3.msra.mxu0 %v1399_v0  ;;  %v1465_v12 = vld [vmem:[%s2274_s1 + $0x38] sm:$0xff]  ;;  %v278_v17 = vld [vmem:[%s2274_s1] sm:$0xff]  ;;  %v1464_v18 = vld [vmem:[%s2274_s1 + $0x30] sm:$0xff]  ;;  %s2170_s24 = scalar_lea.vmem %s2276_s3, %s1502_s17  ;;  %s238_s27 = scalar_lea.vmem %s2277_s4, %s2280_s19 }
   0xe   : > { %1771 = vmatprep.subr.mxu1 %v1398_v1  ;;  %1610 = vmatprep.subr.mxu0 %v1398_v1  ;;  %s1852_s8 = scalar_lea.vmem %s2273_s0, %s1776_s26  ;;  %s241_s30 = scalar_lea.vmem %s2278_s5, %s2280_s19 }
   0xf   : > { %1774 = vmatpush3.msra.mxu1 %v1398_v1  ;;  %1611 = vmatpush3.msra.mxu0 %v1398_v1  ;;  %v1855_v5 = vld [vmem:[%s1852_s8 + $0x10] sm:$0xff]  ;;  %v1861_v7 = vld [vmem:[%s1852_s8 + $0x18] sm:$0xff]  ;;  %v1871_v9 = vld [vmem:[%s1852_s8 + $0x20] sm:$0xff] }
  0x10   : > { %1772 = vmatprep.subr.mxu1 %v1397_v2  ;;  %1612 = vmatprep.subr.mxu0 %v1397_v2  ;;  %v1858_v6 = vld [vmem:[%s1852_s8 + $0x90] sm:$0xff]  ;;  %v1868_v8 = vld [vmem:[%s1852_s8 + $0x98] sm:$0xff]  ;;  %v1874_v10 = vld [vmem:[%s1852_s8 + $0xa0] sm:$0xff] }
  0x11   : > { %1775 = vmatpush3.msra.mxu1 %v1397_v2  ;;  %1613 = vmatpush3.msra.mxu0 %v1397_v2  ;;  %v1887_v13 = vld [vmem:[%s1852_s8 + $0x28] sm:$0xff]  ;;  %v1897_v15 = vld [vmem:[%s1852_s8 + $0x30] sm:$0xff]  ;;  %v1917_v19 = vld [vmem:[%s1852_s8 + $0x38] sm:$0xff] }
  0x12   : > { %1662 = vmatprep.subr.mxu1 %v280_v3  ;;  %1716 = vmatprep.subr.mxu0 %v1466_v4  ;;  %v1890_v14 = vld [vmem:[%s1852_s8 + $0xa8] sm:$0xff]  ;;  %v1900_v16 = vld [vmem:[%s1852_s8 + $0xb0] sm:$0xff]  ;;  %v1920_v20 = vld [vmem:[%s1852_s8 + $0xb8] sm:$0xff] }
  0x13   : > { %1614 = vmatprep.mubr.msk.f32.mxu0 %vm285_vm0, %v1855_v5  ;;  %1638 = vmatprep.mubr.msk.f32.mxu1 %vm285_vm0, %v1858_v6  ;;  %v1923_v21 = vld [vmem:[%s1852_s8 + $0x40] sm:$0xff]  ;;  %v251_v23 = vld [vmem:[%s1852_s8 + $0x48] sm:$0xff]  ;;  %v252_v25 = vld [vmem:[%s1852_s8 + $0x50] sm:$0xff] }
  0x14   : > { %1615 = vmatmul.mubr.msk.f32.vlgmr.msra.gmra.mxu0 %vm285_vm0, %v1861_v7  ;;  %1639 = vmatmul.mubr.msk.f32.vlgmr.msra.gmra.mxu1 %vm285_vm0, %v1868_v8  ;;  %v1926_v22 = vld [vmem:[%s1852_s8 + $0xc0] sm:$0xff]  ;;  %v1938_v24 = vld [vmem:[%s1852_s8 + $0xc8] sm:$0xff]  ;;  %v1942_v26 = vld [vmem:[%s1852_s8 + $0xd0] sm:$0xff] }
  0x15   : > { %1663 = vmatpush3.msra.mxu1 %v280_v3  ;;  %1717 = vmatpush3.msra.mxu0 %v1466_v4  ;;  %v253_v27 = vld [vmem:[%s1852_s8 + $0x58] sm:$0xff]  ;;  %v254_v29 = vld [vmem:[%s1852_s8 + $0x60] sm:$0xff]  ;;  %v255_v31 = vld [vmem:[%s1852_s8 + $0x68] sm:$0xff] }
  0x16   : > { %1617 = vmatprep.mubr.msk.f32.mxu0 %vm285_vm0, %v1871_v9  ;;  %1641 = vmatprep.mubr.msk.f32.mxu1 %vm285_vm0, %v1874_v10  ;;  %v1952_v28 = vld [vmem:[%s1852_s8 + $0xd8] sm:$0xff]  ;;  %v1956_v30 = vld [vmem:[%s1852_s8 + $0xe0] sm:$0xff]  ;;  %v1966_v32 = vld [vmem:[%s1852_s8 + $0xe8] sm:$0xff] }
  0x17   : > { %1664 = vmatprep.subr.mxu1 %v279_v11  ;;  %1718 = vmatprep.subr.mxu0 %v1465_v12  ;;  %v256_v33 = vld [vmem:[%s1852_s8 + $0x70] sm:$0xff]  ;;  %v257_v35 = vld [vmem:[%s1852_s8 + $0x78] sm:$0xff]  ;;  %v258_v37 = vld [vmem:[%s1852_s8 + $0x80] sm:$0xff] }
  0x18   : > { %1618 = vmatmul.mubr.msk.f32.gmra.mxu0 %vm285_vm0, %v1887_v13  ;;  %1642 = vmatmul.mubr.msk.f32.gmra.mxu1 %vm285_vm0, %v1890_v14  ;;  %v1970_v34 = vld [vmem:[%s1852_s8 + $0xf0] sm:$0xff]  ;;  %v1980_v36 = vld [vmem:[%s1852_s8 + $0xf8] sm:$0xff]  ;;  %v1984_v38 = vld [vmem:[%s1852_s8 + $0x100] sm:$0xff] }
  0x19   : > { %1620 = vmatprep.mubr.msk.f32.mxu0 %vm285_vm0, %v1897_v15  ;;  %1644 = vmatprep.mubr.msk.f32.mxu1 %vm285_vm0, %v1900_v16  ;;  %v259_v39 = vld [vmem:[%s1852_s8 + $0x88] sm:$0xff]  ;;  %v242_v41 = vld [vmem:[%s1852_s8] sm:$0xff]  ;;  %v276_v43 = vld [vmem:[%s1852_s8 + $0x110] sm:$0xff] }
  0x1a   : > { %1665 = vmatpush3.msra.mxu1 %v279_v11  ;;  %1719 = vmatpush3.msra.mxu0 %v1465_v12  ;;  %v1994_v40 = vld [vmem:[%s1852_s8 + $0x108] sm:$0xff]  ;;  %v277_v44 = vld [vmem:[%s1852_s8 + $0x118] sm:$0xff] }
  0x1b   : > { %1666 = vmatprep.subr.mxu1 %v278_v17  ;;  %1720 = vmatprep.subr.mxu0 %v1464_v18  ;;  %v243_v42 = vld [vmem:[%s1852_s8 + $0x8] sm:$0xff] }
  0x1c   : > { %1621 = vmatmul.mubr.msk.f32.gmra.mxu0 %vm285_vm0, %v1917_v19  ;;  %1645 = vmatmul.mubr.msk.f32.gmra.mxu1 %vm285_vm0, %v1920_v20 }
  0x1d   : > { %1623 = vmatprep.mubr.msk.f32.mxu0 %vm285_vm0, %v1923_v21  ;;  %1647 = vmatprep.mubr.msk.f32.mxu1 %vm285_vm0, %v1926_v22 }
  0x1e   : > { %1667 = vmatpush3.msra.mxu1 %v278_v17  ;;  %1721 = vmatpush3.msra.mxu0 %v1464_v18 }
  0x20   : > { %1624 = vmatmul.mubr.msk.f32.gmra.mxu0 %vm285_vm0, %v251_v23  ;;  %1648 = vmatmul.mubr.msk.f32.gmra.mxu1 %vm285_vm0, %v1938_v24 }
  0x21   : > { %1626 = vmatprep.mubr.msk.f32.mxu0 %vm285_vm0, %v252_v25  ;;  %1650 = vmatprep.mubr.msk.f32.mxu1 %vm285_vm0, %v1942_v26 }
  0x24   : > { %1627 = vmatmul.mubr.msk.f32.gmra.mxu0 %vm285_vm0, %v253_v27  ;;  %1651 = vmatmul.mubr.msk.f32.gmra.mxu1 %vm285_vm0, %v1952_v28 }
  0x25   : > { %1629 = vmatprep.mubr.msk.f32.mxu0 %vm285_vm0, %v254_v29  ;;  %1653 = vmatprep.mubr.msk.f32.mxu1 %vm285_vm0, %v1956_v30 }
  0x28   : > { %1630 = vmatmul.mubr.msk.f32.gmra.mxu0 %vm285_vm0, %v255_v31  ;;  %1654 = vmatmul.mubr.msk.f32.gmra.mxu1 %vm285_vm0, %v1966_v32 }
  0x29   : > { %1632 = vmatprep.mubr.msk.f32.mxu0 %vm285_vm0, %v256_v33  ;;  %1656 = vmatprep.mubr.msk.f32.mxu1 %vm285_vm0, %v1970_v34 }
  0x2c   : > { %1633 = vmatmul.mubr.msk.f32.gmra.mxu0 %vm285_vm0, %v257_v35  ;;  %1657 = vmatmul.mubr.msk.f32.gmra.mxu1 %vm285_vm0, %v1980_v36 }
  0x2d   : > { %1635 = vmatprep.mubr.msk.f32.mxu0 %vm285_vm0, %v258_v37  ;;  %1659 = vmatprep.mubr.msk.f32.mxu1 %vm285_vm0, %v1984_v38 }
  0x30   : > { %1636 = vmatmul.mubr.msk.f32.gmra.mxu0 %vm285_vm0, %v259_v39  ;;  %1660 = vmatmul.mubr.msk.f32.gmra.mxu1 %vm285_vm0, %v1994_v40 }
  0x31   : > { %1668 = vmatprep.mubr.msk.f32.mxu1 %vm285_vm0, %v242_v41  ;;  %1722 = vmatprep.mubr.msk.f32.mxu0 %vm285_vm0, %v1871_v9 }
  0x34   : > { %1669 = vmatmul.mubr.msk.f32.vlgmr.msra.gmra.mxu1 %vm285_vm0, %v243_v42  ;;  %1723 = vmatmul.mubr.msk.f32.vlgmr.msra.gmra.mxu0 %vm285_vm0, %v1887_v13 }
  0x35   : > { %1671 = vmatprep.mubr.msk.f32.mxu1 %vm285_vm0, %v1855_v5  ;;  %1725 = vmatprep.mubr.msk.f32.mxu0 %vm285_vm0, %v1897_v15 }
  0x38   : > { %1672 = vmatmul.mubr.msk.f32.gmra.mxu1 %vm285_vm0, %v1861_v7  ;;  %1726 = vmatmul.mubr.msk.f32.gmra.mxu0 %vm285_vm0, %v1917_v19 }
  0x39   : > { %1674 = vmatprep.mubr.msk.f32.mxu1 %vm285_vm0, %v1871_v9  ;;  %1728 = vmatprep.mubr.msk.f32.mxu0 %vm285_vm0, %v1923_v21 }
  0x3c   : > { %1675 = vmatmul.mubr.msk.f32.gmra.mxu1 %vm285_vm0, %v1887_v13  ;;  %1729 = vmatmul.mubr.msk.f32.gmra.mxu0 %vm285_vm0, %v251_v23 }
  0x3d   : > { %1677 = vmatprep.mubr.msk.f32.mxu1 %vm285_vm0, %v1897_v15  ;;  %1731 = vmatprep.mubr.msk.f32.mxu0 %vm285_vm0, %v252_v25 }
  0x40   : > { %1678 = vmatmul.mubr.msk.f32.gmra.mxu1 %vm285_vm0, %v1917_v19  ;;  %1732 = vmatmul.mubr.msk.f32.gmra.mxu0 %vm285_vm0, %v253_v27 }
  0x41   : > { %1680 = vmatprep.mubr.msk.f32.mxu1 %vm285_vm0, %v1923_v21  ;;  %1734 = vmatprep.mubr.msk.f32.mxu0 %vm285_vm0, %v254_v29 }
  0x44   : > { %1681 = vmatmul.mubr.msk.f32.gmra.mxu1 %vm285_vm0, %v251_v23  ;;  %1735 = vmatmul.mubr.msk.f32.gmra.mxu0 %vm285_vm0, %v255_v31 }
  0x45   : > { %1683 = vmatprep.mubr.msk.f32.mxu1 %vm285_vm0, %v252_v25  ;;  %1737 = vmatprep.mubr.msk.f32.mxu0 %vm285_vm0, %v256_v33 }
  0x48   : > { %1684 = vmatmul.mubr.msk.f32.gmra.mxu1 %vm285_vm0, %v253_v27  ;;  %1738 = vmatmul.mubr.msk.f32.gmra.mxu0 %vm285_vm0, %v257_v35 }
  0x49   : > { %1686 = vmatprep.mubr.msk.f32.mxu1 %vm285_vm0, %v254_v29  ;;  %1740 = vmatprep.mubr.msk.f32.mxu0 %vm285_vm0, %v258_v37 }
  0x4c   : > { %1687 = vmatmul.mubr.msk.f32.gmra.mxu1 %vm285_vm0, %v255_v31  ;;  %1741 = vmatmul.mubr.msk.f32.gmra.mxu0 %vm285_vm0, %v259_v39 }
  0x4d   : > { %1689 = vmatprep.mubr.msk.f32.mxu1 %vm285_vm0, %v256_v33  ;;  %1743 = vmatprep.mubr.msk.f32.mxu0 %vm285_vm0, %v1858_v6 }
  0x50   : > { %1690 = vmatmul.mubr.msk.f32.gmra.mxu1 %vm285_vm0, %v257_v35  ;;  %1744 = vmatmul.mubr.msk.f32.gmra.mxu0 %vm285_vm0, %v1868_v8 }
  0x51   : > { %1692 = vmatprep.mubr.msk.f32.mxu1 %vm285_vm0, %v258_v37  ;;  %1746 = vmatprep.mubr.msk.f32.mxu0 %vm285_vm0, %v1874_v10 }
  0x54   : > { %1693 = vmatmul.mubr.msk.f32.gmra.mxu1 %vm285_vm0, %v259_v39  ;;  %1747 = vmatmul.mubr.msk.f32.gmra.mxu0 %vm285_vm0, %v1890_v14 }
  0x55   : > { %1695 = vmatprep.mubr.msk.f32.mxu1 %vm285_vm0, %v1858_v6  ;;  %1749 = vmatprep.mubr.msk.f32.mxu0 %vm285_vm0, %v1900_v16 }
  0x58   : > { %1696 = vmatmul.mubr.msk.f32.gmra.mxu1 %vm285_vm0, %v1868_v8  ;;  %1750 = vmatmul.mubr.msk.f32.gmra.mxu0 %vm285_vm0, %v1920_v20 }
  0x59   : > { %1698 = vmatprep.mubr.msk.f32.mxu1 %vm285_vm0, %v1874_v10  ;;  %1752 = vmatprep.mubr.msk.f32.mxu0 %vm285_vm0, %v1926_v22 }
  0x5c   : > { %1699 = vmatmul.mubr.msk.f32.gmra.mxu1 %vm285_vm0, %v1890_v14  ;;  %1753 = vmatmul.mubr.msk.f32.gmra.mxu0 %vm285_vm0, %v1938_v24 }
  0x5d   : > { %1701 = vmatprep.mubr.msk.f32.mxu1 %vm285_vm0, %v1900_v16  ;;  %1755 = vmatprep.mubr.msk.f32.mxu0 %vm285_vm0, %v1942_v26  ;;  %v2165_v16 = vld [vmem:[%s2275_s2] ss:$0 sm:$0xff] }
  0x60   : > { %1702 = vmatmul.mubr.msk.f32.gmra.mxu1 %vm285_vm0, %v1920_v20  ;;  %1756 = vmatmul.mubr.msk.f32.gmra.mxu0 %vm285_vm0, %v1952_v28 }
  0x61   : > { %1704 = vmatprep.mubr.msk.f32.mxu1 %vm285_vm0, %v1926_v22  ;;  %1758 = vmatprep.mubr.msk.f32.mxu0 %vm285_vm0, %v1956_v30 }
  0x64   : > { %1705 = vmatmul.mubr.msk.f32.gmra.mxu1 %vm285_vm0, %v1938_v24  ;;  %1759 = vmatmul.mubr.msk.f32.gmra.mxu0 %vm285_vm0, %v1966_v32 }
  0x65   : > { %1707 = vmatprep.mubr.msk.f32.mxu1 %vm285_vm0, %v1942_v26  ;;  %1761 = vmatprep.mubr.msk.f32.mxu0 %vm285_vm0, %v1970_v34 }
  0x68   : > { %1708 = vmatmul.mubr.msk.f32.gmra.mxu1 %vm285_vm0, %v1952_v28  ;;  %1762 = vmatmul.mubr.msk.f32.gmra.mxu0 %vm285_vm0, %v1980_v36 }
  0x69   : > { %1710 = vmatprep.mubr.msk.f32.mxu1 %vm285_vm0, %v1956_v30  ;;  %1764 = vmatprep.mubr.msk.f32.mxu0 %vm285_vm0, %v1984_v38 }
  0x6c   : > { %1711 = vmatmul.mubr.msk.f32.gmra.mxu1 %vm285_vm0, %v1966_v32  ;;  %1765 = vmatmul.mubr.msk.f32.gmra.mxu0 %vm285_vm0, %v1994_v40 }
  0x6d   : > { %1713 = vmatprep.mubr.msk.f32.mxu1 %vm285_vm0, %v1970_v34  ;;  %1767 = vmatprep.mubr.msk.f32.mxu0 %vm285_vm0, %v276_v43 }
  0x70   : > { %1714 = vmatmul.mubr.msk.f32.gmra.mxu1 %vm285_vm0, %v1980_v36  ;;  %1768 = vmatmul.mubr.msk.f32.gmra.mxu0 %vm285_vm0, %v277_v44 }
  0xd4   : > { %v1616_v45 = vpop.f32.mrf.mxu0  ;;  %v2109_v46 = vpop.f32.mrf.mxu1 }
  0xd6   : > { %v448_v47 = vpop.f32.mrf.mxu0  ;;  %v2111_v48 = vpop.f32.mrf.mxu1 }
  0xd8   : > { %v1619_v49 = vpop.f32.mrf.mxu0  ;;  %v2113_v50 = vpop.f32.mrf.mxu1 }
  0xda   : > { %v458_v51 = vpop.f32.mrf.mxu0  ;;  %v2115_v52 = vpop.f32.mrf.mxu1 }
  0xdc   : > { %v1622_v53 = vpop.f32.mrf.mxu0  ;;  %v2117_v54 = vpop.f32.mrf.mxu1 }
  0xde   : > { %v468_v55 = vpop.f32.mrf.mxu0  ;;  %v2119_v56 = vpop.f32.mrf.mxu1 }
  0xe0   : > { %v2121_v57 = vpop.f32.mrf.mxu0  ;;  %v2123_v58 = vpop.f32.mrf.mxu1 }
  0xe2   : > { %v2125_v59 = vpop.f32.mrf.mxu0  ;;  %v2127_v60 = vpop.f32.mrf.mxu1 }
  0xe4   : > { %v2129_v61 = vpop.f32.mrf.mxu0  ;;  %v2131_v62 = vpop.f32.mrf.mxu1 }
  0xe6   : > { %v2133_v63 = vpop.f32.mrf.mxu0  ;;  %v2135_v0 = vpop.f32.mrf.mxu1 }
  0xe8   : > { %v2137_v1 = vpop.f32.mrf.mxu0  ;;  %v2139_v2 = vpop.f32.mrf.mxu1 }
  0xea   : > { %v2141_v3 = vpop.f32.mrf.mxu0  ;;  %v2143_v4 = vpop.f32.mrf.mxu1 }
  0xec   : > { %v2145_v5 = vpop.f32.mrf.mxu0  ;;  %v2147_v6 = vpop.f32.mrf.mxu1 }
  0xee   : > { %v2149_v7 = vpop.f32.mrf.mxu0  ;;  %v2151_v8 = vpop.f32.mrf.mxu1 }
  0xf0   : > { %v2153_v9 = vpop.f32.mrf.mxu0  ;;  %v2155_v10 = vpop.f32.mrf.mxu1 }
  0xf2   : > { %v2157_v11 = vpop.f32.mrf.mxu0  ;;  %v2159_v12 = vpop.f32.mrf.mxu1 }
  0xf4   : > { %v1670_v13 = vpop.f32.mrf.mxu1  ;;  %v1724_v14 = vpop.f32.mrf.mxu0 }
  0xf5   : > { %v685_v15 = vadd.f32 %v1670_v13, %v1616_v45 }
  0xf6   : > { %v679_v17 = vpop.f32.mrf.mxu1  ;;  %v914_v18 = vpop.f32.mrf.mxu0 }
  0xf7   : > { %v1074_v19 = vadd.f32 %v1724_v14, %v685_v15  ;;  %v680_v20 = vadd.f32 %v679_v17, %v448_v47 }
  0xf8   : > { %v1673_v21 = vpop.f32.mrf.mxu1  ;;  %v1727_v22 = vpop.f32.mrf.mxu0 }
  0xf9   : > { %v1113_v23 = vadd.f32 %v2165_v16, %v1074_v19  ;;  %v1073_v24 = vadd.f32 %v914_v18, %v680_v20  ;;  %v695_v25 = vadd.f32 %v1673_v21, %v1619_v49 }
  0xfa   : > { %v689_v26 = vpop.f32.mrf.mxu1  ;;  %v924_v27 = vpop.f32.mrf.mxu0 }
  0xfb   : > { %1145 = vst [vmem:[%s2170_s24 + $0x8] sm:$0xff] %v1113_v23  ;;  %v1112_v28 = vadd.f32 %v2165_v16, %v1073_v24  ;;  %v1076_v29 = vadd.f32 %v1727_v22, %v695_v25  ;;  %v690_v30 = vadd.f32 %v689_v26, %v458_v51  ;;  %v1215_v36 = vmul.f32 %v1113_v23, %v1113_v23 }
  0xfc   : > { %v1676_v31 = vpop.f32.mrf.mxu1  ;;  %v1730_v32 = vpop.f32.mrf.mxu0 }
  0xfd   : > { %1144 = vst [vmem:[%s2170_s24] sm:$0xff] %v1112_v28  ;;  %v1214_v33 = vmul.f32 %v1112_v28, %v1112_v28  ;;  %v1115_v34 = vadd.f32 %v2165_v16, %v1076_v29  ;;  %v1075_v35 = vadd.f32 %v924_v27, %v690_v30  ;;  %v705_v37 = vadd.f32 %v1676_v31, %v1622_v53 }
  0xfe   : > { %v699_v38 = vpop.f32.mrf.mxu1  ;;  %v934_v39 = vpop.f32.mrf.mxu0  ;;  %v1176_v40 = vadd.f32 %v1113_v23, %v1112_v28 }
  0xff   : > { %1147 = vst [vmem:[%s2170_s24 + $0x18] sm:$0xff] %v1115_v34  ;;  %v1114_v41 = vadd.f32 %v2165_v16, %v1075_v35  ;;  %v700_v42 = vadd.f32 %v699_v38, %v468_v55  ;;  %v1246_v43 = vadd.f32 %v1215_v36, %v1214_v33  ;;  %v1078_v44 = vadd.f32 %v1730_v32, %v705_v37 }
 0x100   : > { %v1679_v45 = vpop.f32.mrf.mxu1  ;;  %v1733_v47 = vpop.f32.mrf.mxu0  ;;  %v1217_v53 = vmul.f32 %v1115_v34, %v1115_v34 }
 0x101   : > { %1146 = vst [vmem:[%s2170_s24 + $0x10] sm:$0xff] %v1114_v41  ;;  %v1177_v49 = vadd.f32 %v1176_v40, %v1114_v41  ;;  %v1216_v51 = vmul.f32 %v1114_v41, %v1114_v41  ;;  %v1077_v13 = vadd.f32 %v934_v39, %v700_v42  ;;  %v715_v14 = vadd.f32 %v1679_v45, %v2121_v57 }
 0x102   : > { %v1117_v15 = vadd.f32 %v2165_v16, %v1078_v44  ;;  %v709_v17 = vpop.f32.mrf.mxu1  ;;  %v944_v18 = vpop.f32.mrf.mxu0 }
 0x103   : > { %v1247_v19 = vadd.f32 %v1246_v43, %v1216_v51  ;;  %v1116_v55 = vadd.f32 %v2165_v16, %v1077_v13  ;;  %v1178_v20 = vadd.f32 %v1177_v49, %v1115_v34  ;;  %v1080_v21 = vadd.f32 %v1733_v47, %v715_v14 }
 0x104   : > { %1149 = vst [vmem:[%s2170_s24 + $0x28] sm:$0xff] %v1117_v15  ;;  %v710_v22 = vadd.f32 %v709_v17, %v2125_v59  ;;  %v1682_v23 = vpop.f32.mrf.mxu1  ;;  %v1736_v24 = vpop.f32.mrf.mxu0  ;;  %v1219_v32 = vmul.f32 %v1117_v15, %v1117_v15 }
 0x105   : > { %1148 = vst [vmem:[%s2170_s24 + $0x20] sm:$0xff] %v1116_v55  ;;  %v1179_v25 = vadd.f32 %v1178_v20, %v1116_v55  ;;  %v1218_v26 = vmul.f32 %v1116_v55, %v1116_v55  ;;  %v1248_v57 = vadd.f32 %v1247_v19, %v1217_v53  ;;  %v1119_v27 = vadd.f32 %v2165_v16, %v1080_v21 }
 0x106   : > { %v1079_v28 = vadd.f32 %v944_v18, %v710_v22  ;;  %v725_v29 = vadd.f32 %v1682_v23, %v2129_v61  ;;  %v719_v30 = vpop.f32.mrf.mxu1  ;;  %v954_v31 = vpop.f32.mrf.mxu0 }
 0x107   : > { %v1249_v33 = vadd.f32 %v1248_v57, %v1218_v26  ;;  %1151 = vst [vmem:[%s2170_s24 + $0x38] sm:$0xff] %v1119_v27  ;;  %v1180_v34 = vadd.f32 %v1179_v25, %v1117_v15  ;;  %v720_v59 = vadd.f32 %v719_v30, %v2133_v63  ;;  %v1221_v51 = vmul.f32 %v1119_v27, %v1119_v27 }
 0x108   : > { %v1118_v35 = vadd.f32 %v2165_v16, %v1079_v28  ;;  %v1082_v36 = vadd.f32 %v1736_v24, %v725_v29  ;;  %v1685_v37 = vpop.f32.mrf.mxu1  ;;  %v1739_v38 = vpop.f32.mrf.mxu0 }
 0x109   : > { %v1250_v39 = vadd.f32 %v1249_v33, %v1219_v32  ;;  %v1081_v40 = vadd.f32 %v954_v31, %v720_v59  ;;  %v735_v41 = vadd.f32 %v1685_v37, %v2137_v1 }
 0x10a   : > { %1150 = vst [vmem:[%s2170_s24 + $0x30] sm:$0xff] %v1118_v35  ;;  %v1181_v61 = vadd.f32 %v1180_v34, %v1118_v35  ;;  %v1220_v42 = vmul.f32 %v1118_v35, %v1118_v35  ;;  %v1121_v43 = vadd.f32 %v2165_v16, %v1082_v36  ;;  %v729_v44 = vpop.f32.mrf.mxu1  ;;  %v964_v45 = vpop.f32.mrf.mxu0 }
 0x10b   : > { %v1120_v63 = vadd.f32 %v2165_v16, %v1081_v40  ;;  %v1084_v47 = vadd.f32 %v1739_v38, %v735_v41  ;;  %v730_v49 = vadd.f32 %v729_v44, %v2141_v3 }
 0x10c   : > { %v1251_v13 = vadd.f32 %v1250_v39, %v1220_v42  ;;  %1153 = vst [vmem:[%s2170_s24 + $0x48] sm:$0xff] %v1121_v43  ;;  %v1182_v14 = vadd.f32 %v1181_v61, %v1119_v27  ;;  %v1688_v53 = vpop.f32.mrf.mxu1  ;;  %v1742_v1 = vpop.f32.mrf.mxu0  ;;  %v1223_v25 = vmul.f32 %v1121_v43, %v1121_v43 }
 0x10d   : > { %1152 = vst [vmem:[%s2170_s24 + $0x40] sm:$0xff] %v1120_v63  ;;  %v1222_v15 = vmul.f32 %v1120_v63, %v1120_v63  ;;  %v1123_v17 = vadd.f32 %v2165_v16, %v1084_v47  ;;  %v1083_v18 = vadd.f32 %v964_v45, %v730_v49  ;;  %v745_v19 = vadd.f32 %v1688_v53, %v2145_v5 }
 0x10e   : > { %v1183_v55 = vadd.f32 %v1182_v14, %v1120_v63  ;;  %v1252_v20 = vadd.f32 %v1251_v13, %v1221_v51  ;;  %v739_v21 = vpop.f32.mrf.mxu1  ;;  %v974_v22 = vpop.f32.mrf.mxu0 }
 0x10f   : > { %1155 = vst [vmem:[%s2170_s24 + $0x58] sm:$0xff] %v1123_v17  ;;  %v1122_v3 = vadd.f32 %v2165_v16, %v1083_v18  ;;  %v1086_v23 = vadd.f32 %v1742_v1, %v745_v19  ;;  %v740_v24 = vadd.f32 %v739_v21, %v2149_v7  ;;  %v1225_v37 = vmul.f32 %v1123_v17, %v1123_v17 }
 0x110   : > { %v1253_v26 = vadd.f32 %v1252_v20, %v1222_v15  ;;  %v1184_v57 = vadd.f32 %v1183_v55, %v1121_v43  ;;  %v1691_v27 = vpop.f32.mrf.mxu1  ;;  %v1745_v28 = vpop.f32.mrf.mxu0 }
 0x111   : > { %1154 = vst [vmem:[%s2170_s24 + $0x50] sm:$0xff] %v1122_v3  ;;  %v1224_v29 = vmul.f32 %v1122_v3, %v1122_v3  ;;  %v1125_v5 = vadd.f32 %v2165_v16, %v1086_v23  ;;  %v1085_v30 = vadd.f32 %v974_v22, %v740_v24  ;;  %v755_v31 = vadd.f32 %v1691_v27, %v2153_v9 }
 0x112   : > { %v1185_v32 = vadd.f32 %v1184_v57, %v1122_v3  ;;  %v1254_v33 = vadd.f32 %v1253_v26, %v1223_v25  ;;  %v749_v34 = vpop.f32.mrf.mxu1  ;;  %v984_v59 = vpop.f32.mrf.mxu0 }
 0x113   : > { %1157 = vst [vmem:[%s2170_s24 + $0x68] sm:$0xff] %v1125_v5  ;;  %v1124_v7 = vadd.f32 %v2165_v16, %v1085_v30  ;;  %v1088_v35 = vadd.f32 %v1745_v28, %v755_v31  ;;  %v750_v36 = vadd.f32 %v749_v34, %v2157_v11  ;;  %v1227_v13 = vmul.f32 %v1125_v5, %v1125_v5 }
 0x114   : > { %v1255_v38 = vadd.f32 %v1254_v33, %v1224_v29  ;;  %v1186_v39 = vadd.f32 %v1185_v32, %v1123_v17  ;;  %v1694_v40 = vpop.f32.mrf.mxu1  ;;  %v1748_v41 = vpop.f32.mrf.mxu0 }
 0x115   : > { %1156 = vst [vmem:[%s2170_s24 + $0x60] sm:$0xff] %v1124_v7  ;;  %v1226_v61 = vmul.f32 %v1124_v7, %v1124_v7  ;;  %v1127_v9 = vadd.f32 %v2165_v16, %v1088_v35  ;;  %v1087_v42 = vadd.f32 %v984_v59, %v750_v36  ;;  %v765_v43 = vadd.f32 %v1694_v40, %v2109_v46 }
 0x116   : > { %v1187_v44 = vadd.f32 %v1186_v39, %v1124_v7  ;;  %v1256_v45 = vadd.f32 %v1255_v38, %v1225_v37  ;;  %v759_v63 = vpop.f32.mrf.mxu1  ;;  %v994_v47 = vpop.f32.mrf.mxu0 }
 0x117   : > { %1159 = vst [vmem:[%s2170_s24 + $0x78] sm:$0xff] %v1127_v9  ;;  %v1126_v11 = vadd.f32 %v2165_v16, %v1087_v42  ;;  %v1090_v49 = vadd.f32 %v1748_v41, %v765_v43  ;;  %v760_v51 = vadd.f32 %v759_v63, %v2111_v48  ;;  %v1229_v24 = vmul.f32 %v1127_v9, %v1127_v9 }
 0x118   : > { %v1257_v14 = vadd.f32 %v1256_v45, %v1226_v61  ;;  %v1188_v53 = vadd.f32 %v1187_v44, %v1125_v5  ;;  %v1697_v1 = vpop.f32.mrf.mxu1  ;;  %v1751_v15 = vpop.f32.mrf.mxu0 }
 0x119   : > { %1158 = vst [vmem:[%s2170_s24 + $0x70] sm:$0xff] %v1126_v11  ;;  %v1228_v17 = vmul.f32 %v1126_v11, %v1126_v11  ;;  %v1129_v46 = vadd.f32 %v2165_v16, %v1090_v49  ;;  %v1089_v18 = vadd.f32 %v994_v47, %v760_v51  ;;  %v775_v19 = vadd.f32 %v1697_v1, %v2113_v50 }
 0x11a   : > { %v1189_v55 = vadd.f32 %v1188_v53, %v1126_v11  ;;  %v1258_v20 = vadd.f32 %v1257_v14, %v1227_v13  ;;  %v769_v21 = vpop.f32.mrf.mxu1  ;;  %v1004_v22 = vpop.f32.mrf.mxu0 }
 0x11b   : > { %1161 = vst [vmem:[%s2170_s24 + $0x88] sm:$0xff] %v1129_v46  ;;  %v1128_v48 = vadd.f32 %v2165_v16, %v1089_v18  ;;  %v1092_v3 = vadd.f32 %v1751_v15, %v775_v19  ;;  %v770_v23 = vadd.f32 %v769_v21, %v2115_v52  ;;  %v1231_v7 = vmul.f32 %v1129_v46, %v1129_v46 }
 0x11c   : > { %v1259_v25 = vadd.f32 %v1258_v20, %v1228_v17  ;;  %v1190_v26 = vadd.f32 %v1189_v55, %v1127_v9  ;;  %v1700_v57 = vpop.f32.mrf.mxu1  ;;  %v1754_v27 = vpop.f32.mrf.mxu0 }
 0x11d   : > { %1160 = vst [vmem:[%s2170_s24 + $0x80] sm:$0xff] %v1128_v48  ;;  %v1230_v28 = vmul.f32 %v1128_v48, %v1128_v48  ;;  %v1131_v50 = vadd.f32 %v2165_v16, %v1092_v3  ;;  %v1091_v29 = vadd.f32 %v1004_v22, %v770_v23  ;;  %v785_v5 = vadd.f32 %v1700_v57, %v2117_v54 }
 0x11e   : > { %v1191_v30 = vadd.f32 %v1190_v26, %v1128_v48  ;;  %v1260_v31 = vadd.f32 %v1259_v25, %v1229_v24  ;;  %v779_v32 = vpop.f32.mrf.mxu1  ;;  %v1014_v33 = vpop.f32.mrf.mxu0 }
 0x11f   : > { %1163 = vst [vmem:[%s2170_s24 + $0x98] sm:$0xff] %v1131_v50  ;;  %v1130_v52 = vadd.f32 %v2165_v16, %v1091_v29  ;;  %v1094_v34 = vadd.f32 %v1754_v27, %v785_v5  ;;  %v780_v59 = vadd.f32 %v779_v32, %v2119_v56  ;;  %v1233_v63 = vmul.f32 %v1131_v50, %v1131_v50 }
 0x120   : > { %v1261_v35 = vadd.f32 %v1260_v31, %v1230_v28  ;;  %v1192_v36 = vadd.f32 %v1191_v30, %v1129_v46  ;;  %v1703_v37 = vpop.f32.mrf.mxu1  ;;  %v1757_v38 = vpop.f32.mrf.mxu0 }
 0x121   : > { %1162 = vst [vmem:[%s2170_s24 + $0x90] sm:$0xff] %v1130_v52  ;;  %v1232_v39 = vmul.f32 %v1130_v52, %v1130_v52  ;;  %v1133_v54 = vadd.f32 %v2165_v16, %v1094_v34  ;;  %v1093_v40 = vadd.f32 %v1014_v33, %v780_v59  ;;  %v795_v41 = vadd.f32 %v1703_v37, %v2123_v58 }
 0x122   : > { %v1193_v61 = vadd.f32 %v1192_v36, %v1130_v52  ;;  %v1262_v9 = vadd.f32 %v1261_v35, %v1231_v7  ;;  %v789_v42 = vpop.f32.mrf.mxu1  ;;  %v1024_v43 = vpop.f32.mrf.mxu0 }
 0x123   : > { %1165 = vst [vmem:[%s2170_s24 + $0xa8] sm:$0xff] %v1133_v54  ;;  %v1132_v56 = vadd.f32 %v2165_v16, %v1093_v40  ;;  %v1096_v44 = vadd.f32 %v1757_v38, %v795_v41  ;;  %v790_v45 = vadd.f32 %v789_v42, %v2127_v60  ;;  %v1235_v55 = vmul.f32 %v1133_v54, %v1133_v54 }
 0x124   : > { %v1263_v47 = vadd.f32 %v1262_v9, %v1232_v39  ;;  %v1194_v11 = vadd.f32 %v1193_v61, %v1131_v50  ;;  %v1706_v49 = vpop.f32.mrf.mxu1  ;;  %v1760_v51 = vpop.f32.mrf.mxu0 }
 0x125   : > { %1164 = vst [vmem:[%s2170_s24 + $0xa0] sm:$0xff] %v1132_v56  ;;  %v1234_v13 = vmul.f32 %v1132_v56, %v1132_v56  ;;  %v1135_v58 = vadd.f32 %v2165_v16, %v1096_v44  ;;  %v1095_v14 = vadd.f32 %v1024_v43, %v790_v45  ;;  %v805_v53 = vadd.f32 %v1706_v49, %v2131_v62 }
 0x126   : > { %v1195_v1 = vadd.f32 %v1194_v11, %v1132_v56  ;;  %v1264_v15 = vadd.f32 %v1263_v47, %v1233_v63  ;;  %v799_v17 = vpop.f32.mrf.mxu1  ;;  %v1034_v46 = vpop.f32.mrf.mxu0 }
 0x127   : > { %1167 = vst [vmem:[%s2170_s24 + $0xb8] sm:$0xff] %v1135_v58  ;;  %v1134_v60 = vadd.f32 %v2165_v16, %v1095_v14  ;;  %v1098_v18 = vadd.f32 %v1760_v51, %v805_v53  ;;  %v800_v19 = vadd.f32 %v799_v17, %v2135_v0  ;;  %v1237_v29 = vmul.f32 %v1135_v58, %v1135_v58 }
 0x128   : > { %v1265_v20 = vadd.f32 %v1264_v15, %v1234_v13  ;;  %v1196_v21 = vadd.f32 %v1195_v1, %v1133_v54  ;;  %v1709_v22 = vpop.f32.mrf.mxu1  ;;  %v1763_v48 = vpop.f32.mrf.mxu0 }
 0x129   : > { %1166 = vst [vmem:[%s2170_s24 + $0xb0] sm:$0xff] %v1134_v60  ;;  %v1236_v3 = vmul.f32 %v1134_v60, %v1134_v60  ;;  %v1137_v62 = vadd.f32 %v2165_v16, %v1098_v18  ;;  %v1097_v23 = vadd.f32 %v1034_v46, %v800_v19  ;;  %v815_v24 = vadd.f32 %v1709_v22, %v2139_v2 }
 0x12a   : > { %v1197_v25 = vadd.f32 %v1196_v21, %v1134_v60  ;;  %v1266_v26 = vadd.f32 %v1265_v20, %v1235_v55  ;;  %v809_v57 = vpop.f32.mrf.mxu1  ;;  %v1044_v27 = vpop.f32.mrf.mxu0 }
 0x12b   : > { %1169 = vst [vmem:[%s2170_s24 + $0xc8] sm:$0xff] %v1137_v62  ;;  %v1136_v0 = vadd.f32 %v2165_v16, %v1097_v23  ;;  %v1100_v28 = vadd.f32 %v1763_v48, %v815_v24  ;;  %v810_v50 = vadd.f32 %v809_v57, %v2143_v4  ;;  %v1239_v39 = vmul.f32 %v1137_v62, %v1137_v62 }
 0x12c   : > { %v1267_v5 = vadd.f32 %v1266_v26, %v1236_v3  ;;  %v1198_v30 = vadd.f32 %v1197_v25, %v1135_v58  ;;  %v1712_v31 = vpop.f32.mrf.mxu1  ;;  %v1766_v32 = vpop.f32.mrf.mxu0 }
 0x12d   : > { %1168 = vst [vmem:[%s2170_s24 + $0xc0] sm:$0xff] %v1136_v0  ;;  %v1238_v33 = vmul.f32 %v1136_v0, %v1136_v0  ;;  %v1139_v2 = vadd.f32 %v2165_v16, %v1100_v28  ;;  %v1099_v52 = vadd.f32 %v1044_v27, %v810_v50  ;;  %v825_v34 = vadd.f32 %v1712_v31, %v2147_v6 }
 0x12e   : > { %v1199_v59 = vadd.f32 %v1198_v30, %v1136_v0  ;;  %v1268_v7 = vadd.f32 %v1267_v5, %v1237_v29  ;;  %v819_v35 = vpop.f32.mrf.mxu1  ;;  %v1054_v36 = vpop.f32.mrf.mxu0 }
 0x12f   : > { %1171 = vst [vmem:[%s2170_s24 + $0xd8] sm:$0xff] %v1139_v2  ;;  %v1138_v4 = vadd.f32 %v2165_v16, %v1099_v52  ;;  %v1102_v37 = vadd.f32 %v1766_v32, %v825_v34  ;;  %v820_v38 = vadd.f32 %v819_v35, %v2151_v8  ;;  %v1241_v11 = vmul.f32 %v1139_v2, %v1139_v2 }
 0x130   : > { %v1269_v54 = vadd.f32 %v1268_v7, %v1238_v33  ;;  %v1200_v40 = vadd.f32 %v1199_v59, %v1137_v62  ;;  %v1715_v41 = vpop.f32.mrf.mxu1  ;;  %v1769_v61 = vpop.f32.mrf.mxu0 }
 0x131   : > { %1170 = vst [vmem:[%s2170_s24 + $0xd0] sm:$0xff] %v1138_v4  ;;  %v1240_v9 = vmul.f32 %v1138_v4, %v1138_v4  ;;  %v1141_v6 = vadd.f32 %v2165_v16, %v1102_v37  ;;  %v1101_v42 = vadd.f32 %v1054_v36, %v820_v38  ;;  %v835_v43 = vadd.f32 %v1715_v41, %v2155_v10 }
 0x132   : > { %v1201_v56 = vadd.f32 %v1200_v40, %v1138_v4  ;;  %v1270_v44 = vadd.f32 %v1269_v54, %v1239_v39  ;;  %v829_v45 = vpop.f32.mrf.mxu1  ;;  %v1064_v13 = vpop.f32.mrf.mxu0 }
 0x133   : > { %1173 = vst [vmem:[%s2170_s24 + $0xe8] sm:$0xff] %v1141_v6  ;;  %v1140_v8 = vadd.f32 %v2165_v16, %v1101_v42  ;;  %v1104_v63 = vadd.f32 %v1769_v61, %v835_v43  ;;  %v830_v47 = vadd.f32 %v829_v45, %v2159_v12  ;;  %v1243_v17 = vmul.f32 %v1141_v6, %v1141_v6 }
 0x134   : > { %v1271_v49 = vadd.f32 %v1270_v44, %v1240_v9  ;;  %v1202_v51 = vadd.f32 %v1201_v56, %v1139_v2 }
 0x135   : > { %1172 = vst [vmem:[%s2170_s24 + $0xe0] sm:$0xff] %v1140_v8  ;;  %v1242_v58 = vmul.f32 %v1140_v8, %v1140_v8  ;;  %v1143_v14 = vadd.f32 %v2165_v16, %v1104_v63  ;;  %v1103_v10 = vadd.f32 %v1064_v13, %v830_v47 }
 0x136   : > { %v1203_v53 = vadd.f32 %v1202_v51, %v1140_v8  ;;  %v1272_v1 = vadd.f32 %v1271_v49, %v1241_v11 }
 0x137   : > { %1175 = vst [vmem:[%s2170_s24 + $0xf8] sm:$0xff] %v1143_v14  ;;  %v1142_v15 = vadd.f32 %v2165_v16, %v1103_v10  ;;  %v1245_v55 = vmul.f32 %v1143_v14, %v1143_v14 }
 0x138   : > { %v1273_v46 = vadd.f32 %v1272_v1, %v1242_v58  ;;  %v1204_v60 = vadd.f32 %v1203_v53, %v1141_v6 }
 0x139   : > { %1174 = vst [vmem:[%s2170_s24 + $0xf0] sm:$0xff] %v1142_v15  ;;  %v1244_v12 = vmul.f32 %v1142_v15, %v1142_v15 }
 0x13a   : > { %v1205_v18 = vadd.f32 %v1204_v60, %v1142_v15  ;;  %v1274_v19 = vadd.f32 %v1273_v46, %v1243_v17 }
 0x13c   : > { %v1206_v20 = vadd.f32 %v1205_v18, %v1143_v14  ;;  %v1275_v21 = vadd.f32 %v1274_v19, %v1244_v12 }
 0x13e   : > { %v1207_v22 = vrot.slane %v1206_v20, 4  ;;  %v1276_v48 = vadd.f32 %v1275_v21, %v1245_v55 }
 0x140   : > { %v1208_v3 = vadd.f32 %v1207_v22, %v1206_v20  ;;  %v1277_v62 = vrot.slane %v1276_v48, 4 }
 0x142   : > { %v1209_v23 = vrot.slane %v1208_v3, 2  ;;  %v1278_v24 = vadd.f32 %v1277_v62, %v1276_v48 }
 0x144   : > { %v1210_v25 = vadd.f32 %v1209_v23, %v1208_v3  ;;  %v1279_v16 = vrot.slane %v1278_v24, 2 }
 0x146   : > { %v1211_v26 = vrot.slane %v1210_v25, 1  ;;  %v1280_v57 = vadd.f32 %v1279_v16, %v1278_v24 }
 0x148   : > { %v1212_v27 = vadd.f32 %v1211_v26, %v1210_v25  ;;  %v1281_v0 = vrot.slane %v1280_v57, 1 }
 0x14a   : > { %1213 = vst [vmem:[%s238_s27] sm:$0x1] %v1212_v27  ;;  %v1282_v28 = vadd.f32 %v1281_v0, %v1280_v57 }
 0x14c   : > { %1283 = vst [vmem:[%s241_s30] sm:$0x1] %v1282_v28 }
 0x14d PF: > { %s16_s18 = sadd.s32 1, %s1791_s18  }
 0x14e   : > { %p13_p4 = scmp.ge.s32.totalorder %s16_s18, 4  }
 0x150   :  { %15 = sbr.rel (!%p13_p4) target bundleno = 1 (0x1), region = 88 }

// kernel: downsampling_block.7
= control target key start
LH: loop header
LB: loop body
LE: loop exit
PB: predicated region body
PF: predicated region fallthrough
CT: control target
= control target key end

     0   :  { %s1547_s15 = smov 0   ;;  %s2427_s0 = inlined_call_operand.vmem [shape: f32[16,2,8,2,128], index: 0, kind: input, shape index: {}]   ;;  %s2428_s1 = inlined_call_operand.vmem [shape: f32[1,128], index: 1, kind: input, shape index: {}]   ;;  %s2429_s2 = inlined_call_operand.vmem [shape: f32[1,128], index: 2, kind: input, shape index: {}]   ;;  %s2430_s3 = inlined_call_operand.vmem [shape: f32[16,2,8,2,128], index: 3, kind: output, shape index: {0}]   ;;  %s2431_s4 = inlined_call_operand.vmem [shape: f32[16,8,128], index: 4, kind: output, shape index: {1}]  }
   0x1 LB: > { %s1485_s16 = sadd.s32 4294967295, %s1520_s15   ;;  %p1489_p0 = scmp.ge.s32.totalorder %s1520_s15, 1  ;;  %s1520_s15 = sphi %s1547_s15, %s15_s15  }
   0x2   : > { %p167_p1 = scmp.lt.s32.totalorder %s1520_s15, 3 }
   0x4   : > { %p168_p2 = pnand %p1489_p0, %p167_p1 }
   0x6   : > { %171 = sbr.rel (%p168_p2) target bundleno = 198 (0xc6), region = 32 }
   0xb   : > { %s1490_s17 = sshll.u32 %s1485_s16, 3  ;;  %v1561_v0 = vld [vmem:[%s2428_s1] ss:$0 sm:$0xff]  ;;  %vm1259_vm0 = vcmask 1041409   ;;  %vm1262_vm1 = vcmask 1042434   ;;  %vm1265_vm2 = vcmask 1043459  }
   0xc   : > { %p201_p3 = scmp.lt.s32.totalorder %s1490_s17, 15  ;;  %v1571_v1 = vld [vmem:[%s2429_s2] ss:$0 sm:$0xff]  ;;  %vm1268_vm3 = vcmask 1044484   ;;  %vm1271_vm4 = vcmask 1045509   ;;  %vm1274_vm5 = vcmask 1046534  }
   0xd   : > { %vm1277_vm6 = vcmask 1047559  }
   0xe   : > { %s2488_s17 = smov (!%p201_p3, %s1490_s17), 15 }
   0xf   : > { %s1502_s18 = sshll.u32 %s2488_s17, 5  ;;  %s1497_s7 = sshll.u32 %s2488_s17, 3 }
  0x10   : > { %s1566_s23 = scalar_lea.vmem %s2427_s0, %s1502_s18  ;;  %s1598_s28 = scalar_lea.vmem %s2430_s3, %s1502_s18 }
  0x11   : > { %v220_v2 = vld [vmem:[%s1566_s23] sm:$0x3]  ;;  %v221_v3 = vld [vmem:[%s1566_s23 + $0x2] sm:$0x3]  ;;  %v222_v4 = vld [vmem:[%s1566_s23 + $0x4] sm:$0x3]  ;;  %s2291_s10 = scalar_lea.vmem %s2431_s4, %s1497_s7 }
  0x12   : > { %v356_v5 = vmul.f32 %v1561_v0, %v220_v2  ;;  %v357_v6 = vmul.f32 %v1561_v0, %v221_v3  ;;  %v358_v7 = vmul.f32 %v1561_v0, %v222_v4  ;;  %v223_v8 = vld [vmem:[%s1566_s23 + $0x6] sm:$0x3]  ;;  %v224_v9 = vld [vmem:[%s1566_s23 + $0x8] sm:$0x3]  ;;  %v225_v10 = vld [vmem:[%s1566_s23 + $0xa] sm:$0x3] }
  0x13   : > { %v359_v11 = vmul.f32 %v1561_v0, %v223_v8  ;;  %v360_v12 = vmul.f32 %v1561_v0, %v224_v9  ;;  %v361_v13 = vmul.f32 %v1561_v0, %v225_v10  ;;  %v226_v14 = vld [vmem:[%s1566_s23 + $0xc] sm:$0x3]  ;;  %v227_v15 = vld [vmem:[%s1566_s23 + $0xe] sm:$0x3]  ;;  %v228_v20 = vld [vmem:[%s1566_s23 + $0x10] sm:$0x3] }
  0x14   : > { %v490_v16 = vadd.f32 %v1571_v1, %v356_v5  ;;  %v491_v17 = vadd.f32 %v1571_v1, %v357_v6  ;;  %v1590_v18 = vadd.f32 %v1571_v1, %v358_v7  ;;  %v362_v19 = vmul.f32 %v1561_v0, %v226_v14  ;;  %v229_v21 = vld [vmem:[%s1566_s23 + $0x12] sm:$0x3]  ;;  %v230_v26 = vld [vmem:[%s1566_s23 + $0x14] sm:$0x3]  ;;  %v231_v27 = vld [vmem:[%s1566_s23 + $0x16] sm:$0x3] }
  0x15   : > { %v493_v22 = vadd.f32 %v1571_v1, %v359_v11  ;;  %v494_v23 = vadd.f32 %v1571_v1, %v360_v12  ;;  %v1603_v24 = vadd.f32 %v1571_v1, %v361_v13  ;;  %v363_v25 = vmul.f32 %v1561_v0, %v227_v15  ;;  %v232_v28 = vld [vmem:[%s1566_s23 + $0x18] sm:$0x3]  ;;  %v233_v33 = vld [vmem:[%s1566_s23 + $0x1a] sm:$0x3]  ;;  %v234_v38 = vld [vmem:[%s1566_s23 + $0x1c] sm:$0x3] }
  0x16   : > { %v618_v29 = vmax.f32 %v490_v16, 0.0  ;;  %v619_v30 = vmax.f32 %v491_v17, 0.0  ;;  %v620_v31 = vmax.f32 %v1590_v18, 0.0  ;;  %v496_v32 = vadd.f32 %v1571_v1, %v362_v19  ;;  %v235_v43 = vld [vmem:[%s1566_s23 + $0x1e] sm:$0x3] }
  0x17   : > { %v621_v34 = vmax.f32 %v493_v22, 0.0  ;;  %v622_v35 = vmax.f32 %v494_v23, 0.0  ;;  %v623_v36 = vmax.f32 %v1603_v24, 0.0  ;;  %v497_v37 = vadd.f32 %v1571_v1, %v363_v25  ;;  %v236_v18 = vld [vmem:[%s1566_s23 + $0x20] sm:$0x3] }
  0x18   : > { %746 = vst [vmem:[%s1598_s28] sm:$0x3] %v618_v29  ;;  %747 = vst [vmem:[%s1598_s28 + $0x2] sm:$0x3] %v619_v30  ;;  %v624_v39 = vmax.f32 %v496_v32, 0.0  ;;  %v364_v40 = vmul.f32 %v1561_v0, %v228_v20  ;;  %v365_v41 = vmul.f32 %v1561_v0, %v229_v21  ;;  %v366_v42 = vmul.f32 %v1561_v0, %v230_v26  ;;  %v237_v23 = vld [vmem:[%s1566_s23 + $0x22] sm:$0x3] }
  0x19   : > { %748 = vst [vmem:[%s1598_s28 + $0x4] sm:$0x3] %v620_v31  ;;  %749 = vst [vmem:[%s1598_s28 + $0x6] sm:$0x3] %v621_v34  ;;  %v625_v44 = vmax.f32 %v497_v37, 0.0  ;;  %v367_v45 = vmul.f32 %v1561_v0, %v231_v27  ;;  %v368_v46 = vmul.f32 %v1561_v0, %v232_v28  ;;  %v369_v47 = vmul.f32 %v1561_v0, %v233_v33 }
  0x1a   : > { %750 = vst [vmem:[%s1598_s28 + $0x8] sm:$0x3] %v622_v35  ;;  %751 = vst [vmem:[%s1598_s28 + $0xa] sm:$0x3] %v623_v36  ;;  %v498_v48 = vadd.f32 %v1571_v1, %v364_v40  ;;  %v499_v49 = vadd.f32 %v1571_v1, %v365_v41  ;;  %v500_v50 = vadd.f32 %v1571_v1, %v366_v42  ;;  %v238_v28 = vld [vmem:[%s1566_s23 + $0x24] sm:$0x3] }
  0x1b   : > { %752 = vst [vmem:[%s1598_s28 + $0xc] sm:$0x3] %v624_v39  ;;  %v370_v51 = vmul.f32 %v1561_v0, %v234_v38  ;;  %753 = vst [vmem:[%s1598_s28 + $0xe] sm:$0x3] %v625_v44  ;;  %v501_v52 = vadd.f32 %v1571_v1, %v367_v45  ;;  %v502_v53 = vadd.f32 %v1571_v1, %v368_v46  ;;  %v242_v40 = vld [vmem:[%s1566_s23 + $0x2c] sm:$0x3] }
  0x1c   : > { %v503_v54 = vadd.f32 %v1571_v1, %v369_v47  ;;  %v371_v55 = vmul.f32 %v1561_v0, %v235_v43  ;;  %v626_v56 = vmax.f32 %v498_v48, 0.0  ;;  %v627_v57 = vmax.f32 %v499_v49, 0.0  ;;  %v243_v45 = vld [vmem:[%s1566_s23 + $0x2e] sm:$0x3] }
  0x1d   : > { %v628_v58 = vmax.f32 %v500_v50, 0.0  ;;  %v504_v59 = vadd.f32 %v1571_v1, %v370_v51  ;;  %v629_v60 = vmax.f32 %v501_v52, 0.0  ;;  %v630_v61 = vmax.f32 %v502_v53, 0.0  ;;  %v244_v50 = vld [vmem:[%s1566_s23 + $0x30] sm:$0x3] }
  0x1e   : > { %v631_v62 = vmax.f32 %v503_v54, 0.0  ;;  %v505_v63 = vadd.f32 %v1571_v1, %v371_v55  ;;  %754 = vst [vmem:[%s1598_s28 + $0x10] sm:$0x3] %v626_v56  ;;  %v874_v2 = vmax.f32 %v618_v29, %v626_v56  ;;  %755 = vst [vmem:[%s1598_s28 + $0x12] sm:$0x3] %v627_v57  ;;  %v875_v3 = vmax.f32 %v619_v30, %v627_v57 }
  0x1f   : > { %756 = vst [vmem:[%s1598_s28 + $0x14] sm:$0x3] %v628_v58  ;;  %v876_v4 = vmax.f32 %v620_v31, %v628_v58  ;;  %v632_v5 = vmax.f32 %v504_v59, 0.0  ;;  %757 = vst [vmem:[%s1598_s28 + $0x16] sm:$0x3] %v629_v60  ;;  %v877_v6 = vmax.f32 %v621_v34, %v629_v60  ;;  %v878_v7 = vmax.f32 %v622_v35, %v630_v61 }
  0x20   : > { %758 = vst [vmem:[%s1598_s28 + $0x18] sm:$0x3] %v630_v61  ;;  %759 = vst [vmem:[%s1598_s28 + $0x1a] sm:$0x3] %v631_v62  ;;  %v879_v8 = vmax.f32 %v623_v36, %v631_v62  ;;  %v633_v9 = vmax.f32 %v505_v63, 0.0  ;;  %v1002_v10 = vrot.slane %v874_v2, 1  ;;  %v372_v33 = vmul.f32 %v1561_v0, %v236_v18 }
  0x21   : > { %v1003_v11 = vrot.slane %v875_v3, 1  ;;  %v1004_v12 = vrot.slane %v876_v4, 1  ;;  %760 = vst [vmem:[%s1598_s28 + $0x1c] sm:$0x3] %v632_v5  ;;  %v880_v13 = vmax.f32 %v624_v39, %v632_v5  ;;  %v1005_v14 = vrot.slane %v877_v6, 1 }
  0x22   : > { %v1006_v15 = vrot.slane %v878_v7, 1  ;;  %v1007_v16 = vrot.slane %v879_v8, 1  ;;  %761 = vst [vmem:[%s1598_s28 + $0x1e] sm:$0x3] %v633_v9  ;;  %v1648_v17 = vmax.f32 %v625_v44, %v633_v9  ;;  %v1130_v19 = vmax.f32 %v874_v2, %v1002_v10  ;;  %v239_v29 = vld [vmem:[%s1566_s23 + $0x26] sm:$0x3] }
  0x23   : > { %v1131_v20 = vmax.f32 %v875_v3, %v1003_v11  ;;  %v1132_v21 = vmax.f32 %v876_v4, %v1004_v12  ;;  %v1008_v22 = vrot.slane %v880_v13, 1  ;;  %v1652_v24 = vmax.f32 %v877_v6, %v1005_v14  ;;  %v240_v34 = vld [vmem:[%s1566_s23 + $0x28] sm:$0x3]  ;;  %v241_v35 = vld [vmem:[%s1566_s23 + $0x2a] sm:$0x3] }
  0x24   : > { %v1654_v25 = vmax.f32 %v878_v7, %v1006_v15  ;;  %v1656_v26 = vmax.f32 %v879_v8, %v1007_v16  ;;  %v373_v39 = vmul.f32 %v1561_v0, %v237_v23  ;;  %v506_v43 = vadd.f32 %v1571_v1, %v372_v33  ;;  %v245_v55 = vld [vmem:[%s1566_s23 + $0x32] sm:$0x3]  ;;  %v246_v60 = vld [vmem:[%s1566_s23 + $0x34] sm:$0x3]  ;;  %v247_v3 = vld [vmem:[%s1566_s23 + $0x36] sm:$0x3] }
  0x25   : > { %v1258_v30 = vrot.slane %v1131_v20, 7  ;;  %v1261_v31 = vrot.slane %v1132_v21, 6  ;;  %v1661_v32 = vmax.f32 %v880_v13, %v1008_v22  ;;  %v374_v44 = vmul.f32 %v1561_v0, %v238_v28  ;;  %v248_v4 = vld [vmem:[%s1566_s23 + $0x38] sm:$0x3]  ;;  %v249_v9 = vld [vmem:[%s1566_s23 + $0x3a] sm:$0x3] }
  0x26   : > { %v507_v47 = vadd.f32 %v1571_v1, %v373_v39  ;;  %v375_v48 = vmul.f32 %v1561_v0, %v239_v29  ;;  %v376_v49 = vmul.f32 %v1561_v0, %v240_v34  ;;  %v634_v51 = vmax.f32 %v506_v43, 0.0  ;;  %v250_v10 = vld [vmem:[%s1566_s23 + $0x3c] sm:$0x3]  ;;  %v251_v15 = vld [vmem:[%s1566_s23 + $0x3e] sm:$0x3] }
  0x27   : > { %v1260_v41 = vsel %vm1259_vm0, %v1258_v30, %v1130_v19  ;;  %v508_v52 = vadd.f32 %v1571_v1, %v374_v44  ;;  %v377_v53 = vmul.f32 %v1561_v0, %v241_v35  ;;  %v378_v54 = vmul.f32 %v1561_v0, %v242_v40 }
  0x28   : > { %v1677_v46 = vsel %vm1262_vm1, %v1261_v31, %v1260_v41  ;;  %v635_v56 = vmax.f32 %v507_v47, 0.0  ;;  %v509_v57 = vadd.f32 %v1571_v1, %v375_v48  ;;  %v510_v58 = vadd.f32 %v1571_v1, %v376_v49  ;;  %762 = vst [vmem:[%s1598_s28 + $0x20] sm:$0x3] %v634_v51 }
  0x29   : > { %v379_v59 = vmul.f32 %v1561_v0, %v243_v45  ;;  %v636_v61 = vmax.f32 %v508_v52, 0.0  ;;  %v511_v62 = vadd.f32 %v1571_v1, %v377_v53  ;;  %v512_v63 = vadd.f32 %v1571_v1, %v378_v54 }
  0x2a   : > { %v380_v2 = vmul.f32 %v1561_v0, %v244_v50  ;;  %763 = vst [vmem:[%s1598_s28 + $0x22] sm:$0x3] %v635_v56  ;;  %v637_v5 = vmax.f32 %v509_v57, 0.0  ;;  %v638_v6 = vmax.f32 %v510_v58, 0.0  ;;  %v381_v8 = vmul.f32 %v1561_v0, %v245_v55  ;;  %v252_v55 = vld [vmem:[%s1566_s23 + $0x40] sm:$0x3] }
  0x2b   : > { %v513_v7 = vadd.f32 %v1571_v1, %v379_v59  ;;  %764 = vst [vmem:[%s1598_s28 + $0x24] sm:$0x3] %v636_v61  ;;  %v639_v11 = vmax.f32 %v511_v62, 0.0  ;;  %v640_v12 = vmax.f32 %v512_v63, 0.0  ;;  %v382_v14 = vmul.f32 %v1561_v0, %v246_v60 }
  0x2c   : > { %v514_v13 = vadd.f32 %v1571_v1, %v380_v2  ;;  %765 = vst [vmem:[%s1598_s28 + $0x26] sm:$0x3] %v637_v5  ;;  %766 = vst [vmem:[%s1598_s28 + $0x28] sm:$0x3] %v638_v6  ;;  %v515_v18 = vadd.f32 %v1571_v1, %v381_v8  ;;  %v383_v19 = vmul.f32 %v1561_v0, %v247_v3 }
  0x2d   : > { %v641_v16 = vmax.f32 %v513_v7, 0.0  ;;  %v384_v20 = vmul.f32 %v1561_v0, %v248_v4  ;;  %767 = vst [vmem:[%s1598_s28 + $0x2a] sm:$0x3] %v639_v11  ;;  %768 = vst [vmem:[%s1598_s28 + $0x2c] sm:$0x3] %v640_v12  ;;  %v516_v22 = vadd.f32 %v1571_v1, %v382_v14  ;;  %v385_v23 = vmul.f32 %v1561_v0, %v249_v9 }
  0x2e   : > { %v642_v21 = vmax.f32 %v514_v13, 0.0  ;;  %v386_v28 = vmul.f32 %v1561_v0, %v250_v10  ;;  %v643_v29 = vmax.f32 %v515_v18, 0.0  ;;  %v517_v30 = vadd.f32 %v1571_v1, %v383_v19  ;;  %v254_v7 = vld [vmem:[%s1566_s23 + $0x44] sm:$0x3]  ;;  %v256_v13 = vld [vmem:[%s1566_s23 + $0x48] sm:$0x3] }
  0x2f   : > { %769 = vst [vmem:[%s1598_s28 + $0x2e] sm:$0x3] %v641_v16  ;;  %v518_v31 = vadd.f32 %v1571_v1, %v384_v20  ;;  %v387_v33 = vmul.f32 %v1561_v0, %v251_v15  ;;  %v644_v35 = vmax.f32 %v516_v22, 0.0  ;;  %v519_v39 = vadd.f32 %v1571_v1, %v385_v23  ;;  %v257_v19 = vld [vmem:[%s1566_s23 + $0x4a] sm:$0x3] }
  0x30   : > { %770 = vst [vmem:[%s1598_s28 + $0x30] sm:$0x3] %v642_v21  ;;  %v882_v34 = vmax.f32 %v634_v51, %v642_v21  ;;  %v520_v40 = vadd.f32 %v1571_v1, %v386_v28  ;;  %771 = vst [vmem:[%s1598_s28 + $0x32] sm:$0x3] %v643_v29  ;;  %v883_v41 = vmax.f32 %v635_v56, %v643_v29  ;;  %v645_v43 = vmax.f32 %v517_v30, 0.0 }
  0x31   : > { %v646_v44 = vmax.f32 %v518_v31, 0.0  ;;  %v521_v45 = vadd.f32 %v1571_v1, %v387_v33  ;;  %772 = vst [vmem:[%s1598_s28 + $0x34] sm:$0x3] %v644_v35  ;;  %v884_v48 = vmax.f32 %v636_v61, %v644_v35  ;;  %v647_v49 = vmax.f32 %v519_v39, 0.0  ;;  %v258_v20 = vld [vmem:[%s1566_s23 + $0x4c] sm:$0x3] }
  0x32   : > { %v1010_v47 = vrot.slane %v882_v34, 1  ;;  %v648_v50 = vmax.f32 %v520_v40, 0.0  ;;  %v1011_v51 = vrot.slane %v883_v41, 1  ;;  %773 = vst [vmem:[%s1598_s28 + $0x36] sm:$0x3] %v645_v43  ;;  %v885_v52 = vmax.f32 %v637_v5, %v645_v43 }
  0x33   : > { %774 = vst [vmem:[%s1598_s28 + $0x38] sm:$0x3] %v646_v44  ;;  %v886_v53 = vmax.f32 %v638_v6, %v646_v44  ;;  %v649_v54 = vmax.f32 %v521_v45, 0.0  ;;  %v1012_v57 = vrot.slane %v884_v48, 1  ;;  %775 = vst [vmem:[%s1598_s28 + $0x3a] sm:$0x3] %v647_v49  ;;  %v887_v58 = vmax.f32 %v639_v11, %v647_v49 }
  0x34   : > { %v1138_v56 = vmax.f32 %v882_v34, %v1010_v47  ;;  %776 = vst [vmem:[%s1598_s28 + $0x3c] sm:$0x3] %v648_v50  ;;  %v888_v59 = vmax.f32 %v640_v12, %v648_v50  ;;  %v1139_v60 = vmax.f32 %v883_v41, %v1011_v51  ;;  %v1013_v61 = vrot.slane %v885_v52, 1  ;;  %v253_v6 = vld [vmem:[%s1566_s23 + $0x42] sm:$0x3] }
  0x35   : > { %v1014_v62 = vrot.slane %v886_v53, 1  ;;  %777 = vst [vmem:[%s1598_s28 + $0x3e] sm:$0x3] %v649_v54  ;;  %v1732_v63 = vmax.f32 %v641_v16, %v649_v54  ;;  %v1140_v2 = vmax.f32 %v884_v48, %v1012_v57  ;;  %v1015_v3 = vrot.slane %v887_v58, 1  ;;  %v255_v12 = vld [vmem:[%s1566_s23 + $0x46] sm:$0x3] }
  0x36   : > { %v1016_v4 = vrot.slane %v888_v59, 1  ;;  %v388_v5 = vmul.f32 %v1561_v0, %v252_v55  ;;  %v1279_v8 = vrot.slane %v1139_v60, 7  ;;  %v1737_v9 = vmax.f32 %v885_v52, %v1013_v61  ;;  %v259_v29 = vld [vmem:[%s1566_s23 + $0x4e] sm:$0x3]  ;;  %v260_v30 = vld [vmem:[%s1566_s23 + $0x50] sm:$0x3] }
  0x37   : > { %v1739_v10 = vmax.f32 %v886_v53, %v1014_v62  ;;  %v1281_v14 = vrot.slane %v1140_v2, 6  ;;  %v1744_v15 = vmax.f32 %v887_v58, %v1015_v3  ;;  %v389_v28 = vmul.f32 %v1561_v0, %v253_v6  ;;  %v261_v49 = vld [vmem:[%s1566_s23 + $0x52] sm:$0x3]  ;;  %v262_v54 = vld [vmem:[%s1566_s23 + $0x54] sm:$0x3] }
  0x38   : > { %v1746_v16 = vmax.f32 %v888_v59, %v1016_v4  ;;  %v522_v18 = vadd.f32 %v1571_v1, %v388_v5  ;;  %v1280_v21 = vsel %vm1259_vm0, %v1279_v8, %v1138_v56  ;;  %v390_v40 = vmul.f32 %v1561_v0, %v254_v7  ;;  %v263_v55 = vld [vmem:[%s1566_s23 + $0x56] sm:$0x3]  ;;  %v264_v60 = vld [vmem:[%s1566_s23 + $0x58] sm:$0x3]  ;;  %v265_v61 = vld [vmem:[%s1566_s23 + $0x5a] sm:$0x3] }
  0x39   : > { %v1758_v31 = vsel %vm1262_vm1, %v1281_v14, %v1280_v21  ;;  %v523_v39 = vadd.f32 %v1571_v1, %v389_v28  ;;  %v391_v41 = vmul.f32 %v1561_v0, %v255_v12  ;;  %v392_v43 = vmul.f32 %v1561_v0, %v256_v13  ;;  %v266_v62 = vld [vmem:[%s1566_s23 + $0x5c] sm:$0x3]  ;;  %v267_v6 = vld [vmem:[%s1566_s23 + $0x5e] sm:$0x3]  ;;  %v300_v33 = vld [vmem:[%s1566_s23 + $0xa0] sm:$0x3] }
  0x3a   : > { %v650_v35 = vmax.f32 %v522_v18, 0.0  ;;  %v393_v44 = vmul.f32 %v1561_v0, %v257_v19  ;;  %v394_v45 = vmul.f32 %v1561_v0, %v258_v20  ;;  %v395_v47 = vmul.f32 %v1561_v0, %v259_v29  ;;  %v316_v11 = vld [vmem:[%s1566_s23 + $0xc0] sm:$0x3] }
  0x3b   : > { %v396_v48 = vmul.f32 %v1561_v0, %v260_v30  ;;  %v651_v50 = vmax.f32 %v523_v39, 0.0  ;;  %v524_v51 = vadd.f32 %v1571_v1, %v390_v40  ;;  %v525_v52 = vadd.f32 %v1571_v1, %v391_v41 }
  0x3c   : > { %778 = vst [vmem:[%s1598_s28 + $0x40] sm:$0x3] %v650_v35  ;;  %v526_v53 = vadd.f32 %v1571_v1, %v392_v43  ;;  %v527_v56 = vadd.f32 %v1571_v1, %v393_v44  ;;  %v528_v57 = vadd.f32 %v1571_v1, %v394_v45  ;;  %v529_v58 = vadd.f32 %v1571_v1, %v395_v47 }
  0x3d   : > { %v530_v59 = vadd.f32 %v1571_v1, %v396_v48  ;;  %779 = vst [vmem:[%s1598_s28 + $0x42] sm:$0x3] %v651_v50  ;;  %v652_v2 = vmax.f32 %v524_v51, 0.0  ;;  %v653_v3 = vmax.f32 %v525_v52, 0.0  ;;  %v397_v5 = vmul.f32 %v1561_v0, %v261_v49 }
  0x3e   : > { %v654_v4 = vmax.f32 %v526_v53, 0.0  ;;  %v655_v7 = vmax.f32 %v527_v56, 0.0  ;;  %v656_v8 = vmax.f32 %v528_v57, 0.0  ;;  %v657_v12 = vmax.f32 %v529_v58, 0.0  ;;  %v268_v53 = vld [vmem:[%s1566_s23 + $0x60] sm:$0x3] }
  0x3f   : > { %v658_v13 = vmax.f32 %v530_v59, 0.0  ;;  %780 = vst [vmem:[%s1598_s28 + $0x44] sm:$0x3] %v652_v2  ;;  %781 = vst [vmem:[%s1598_s28 + $0x46] sm:$0x3] %v653_v3  ;;  %v531_v14 = vadd.f32 %v1571_v1, %v397_v5  ;;  %v398_v18 = vmul.f32 %v1561_v0, %v262_v54  ;;  %v399_v19 = vmul.f32 %v1561_v0, %v263_v55 }
  0x40   : > { %782 = vst [vmem:[%s1598_s28 + $0x48] sm:$0x3] %v654_v4  ;;  %v400_v20 = vmul.f32 %v1561_v0, %v264_v60  ;;  %783 = vst [vmem:[%s1598_s28 + $0x4a] sm:$0x3] %v655_v7  ;;  %v401_v28 = vmul.f32 %v1561_v0, %v265_v61  ;;  %v402_v29 = vmul.f32 %v1561_v0, %v266_v62 }
  0x41   : > { %784 = vst [vmem:[%s1598_s28 + $0x4c] sm:$0x3] %v656_v8  ;;  %785 = vst [vmem:[%s1598_s28 + $0x4e] sm:$0x3] %v657_v12  ;;  %v890_v21 = vmax.f32 %v650_v35, %v658_v13  ;;  %v403_v30 = vmul.f32 %v1561_v0, %v267_v6  ;;  %v659_v39 = vmax.f32 %v531_v14, 0.0  ;;  %v532_v40 = vadd.f32 %v1571_v1, %v398_v18 }
  0x42   : > { %786 = vst [vmem:[%s1598_s28 + $0x50] sm:$0x3] %v658_v13  ;;  %v533_v41 = vadd.f32 %v1571_v1, %v399_v19  ;;  %v534_v43 = vadd.f32 %v1571_v1, %v400_v20  ;;  %v535_v45 = vadd.f32 %v1571_v1, %v401_v28  ;;  %v536_v35 = vadd.f32 %v1571_v1, %v402_v29  ;;  %v269_v19 = vld [vmem:[%s1566_s23 + $0x62] sm:$0x3] }
  0x43   : > { %v1018_v44 = vrot.slane %v890_v21, 1  ;;  %v537_v47 = vadd.f32 %v1571_v1, %v403_v30  ;;  %787 = vst [vmem:[%s1598_s28 + $0x52] sm:$0x3] %v659_v39  ;;  %v891_v48 = vmax.f32 %v651_v50, %v659_v39  ;;  %v660_v49 = vmax.f32 %v532_v40, 0.0  ;;  %v271_v30 = vld [vmem:[%s1566_s23 + $0x66] sm:$0x3] }
  0x44   : > { %v661_v51 = vmax.f32 %v533_v41, 0.0  ;;  %v662_v52 = vmax.f32 %v534_v43, 0.0  ;;  %v663_v55 = vmax.f32 %v535_v45, 0.0  ;;  %v664_v56 = vmax.f32 %v536_v35, 0.0  ;;  %v272_v39 = vld [vmem:[%s1566_s23 + $0x68] sm:$0x3] }
  0x45   : > { %v1146_v54 = vmax.f32 %v890_v21, %v1018_v44  ;;  %v665_v57 = vmax.f32 %v537_v47, 0.0  ;;  %v1019_v58 = vrot.slane %v891_v48, 1  ;;  %788 = vst [vmem:[%s1598_s28 + $0x54] sm:$0x3] %v660_v49  ;;  %v892_v59 = vmax.f32 %v652_v2, %v660_v49  ;;  %v273_v45 = vld [vmem:[%s1566_s23 + $0x6a] sm:$0x3] }
  0x46   : > { %789 = vst [vmem:[%s1598_s28 + $0x56] sm:$0x3] %v661_v51  ;;  %v893_v60 = vmax.f32 %v653_v3, %v661_v51  ;;  %790 = vst [vmem:[%s1598_s28 + $0x58] sm:$0x3] %v662_v52  ;;  %v894_v61 = vmax.f32 %v654_v4, %v662_v52  ;;  %v895_v50 = vmax.f32 %v655_v7, %v663_v55  ;;  %v274_v35 = vld [vmem:[%s1566_s23 + $0x6c] sm:$0x3] }
  0x47   : > { %791 = vst [vmem:[%s1598_s28 + $0x5a] sm:$0x3] %v663_v55  ;;  %792 = vst [vmem:[%s1598_s28 + $0x5c] sm:$0x3] %v664_v56  ;;  %v896_v62 = vmax.f32 %v656_v8, %v664_v56  ;;  %v1815_v5 = vmax.f32 %v657_v12, %v665_v57  ;;  %v404_v6 = vmul.f32 %v1561_v0, %v268_v53  ;;  %v1020_v14 = vrot.slane %v892_v59, 1 }
  0x48   : > { %793 = vst [vmem:[%s1598_s28 + $0x5e] sm:$0x3] %v665_v57  ;;  %v1147_v13 = vmax.f32 %v891_v48, %v1019_v58  ;;  %v1021_v2 = vrot.slane %v893_v60, 1  ;;  %v1022_v18 = vrot.slane %v894_v61, 1  ;;  %v1023_v3 = vrot.slane %v895_v50, 1 }
  0x49   : > { %v1024_v4 = vrot.slane %v896_v62, 1  ;;  %v1821_v8 = vadd.f32 %v1571_v1, %v404_v6  ;;  %v270_v12 = vld [vmem:[%s1566_s23 + $0x64] sm:$0x3]  ;;  %v1148_v21 = vmax.f32 %v892_v59, %v1020_v14  ;;  %v405_v44 = vmul.f32 %v1561_v0, %v269_v19  ;;  %v275_v52 = vld [vmem:[%s1566_s23 + $0x6e] sm:$0x3] }
  0x4a   : > { %v1293_v20 = vrot.slane %v1147_v13, 7  ;;  %v1824_v28 = vmax.f32 %v893_v60, %v1021_v2  ;;  %v1826_v29 = vmax.f32 %v894_v61, %v1022_v18  ;;  %v1830_v40 = vmax.f32 %v895_v50, %v1023_v3  ;;  %v276_v58 = vld [vmem:[%s1566_s23 + $0x70] sm:$0x3]  ;;  %v277_v50 = vld [vmem:[%s1566_s23 + $0x72] sm:$0x3] }
  0x4b   : > { %v1832_v41 = vmax.f32 %v896_v62, %v1024_v4  ;;  %v666_v43 = vmax.f32 %v1821_v8, 0.0  ;;  %v1295_v48 = vrot.slane %v1148_v21, 6  ;;  %v539_v56 = vadd.f32 %v1571_v1, %v405_v44  ;;  %v278_v4 = vld [vmem:[%s1566_s23 + $0x74] sm:$0x3]  ;;  %v279_v8 = vld [vmem:[%s1566_s23 + $0x76] sm:$0x3] }
  0x4c   : > { %v1294_v47 = vsel %vm1259_vm0, %v1293_v20, %v1146_v54  ;;  %v406_v57 = vmul.f32 %v1561_v0, %v270_v12  ;;  %v407_v59 = vmul.f32 %v1561_v0, %v271_v30  ;;  %v408_v60 = vmul.f32 %v1561_v0, %v272_v39  ;;  %v280_v12 = vld [vmem:[%s1566_s23 + $0x78] sm:$0x3]  ;;  %v281_v44 = vld [vmem:[%s1566_s23 + $0x7a] sm:$0x3] }
  0x4d   : > { %794 = vst [vmem:[%s1598_s28 + $0x60] sm:$0x3] %v666_v43  ;;  %v1849_v54 = vsel %vm1262_vm1, %v1295_v48, %v1294_v47  ;;  %v409_v61 = vmul.f32 %v1561_v0, %v273_v45  ;;  %v667_v62 = vmax.f32 %v539_v56, 0.0  ;;  %v410_v13 = vmul.f32 %v1561_v0, %v274_v35  ;;  %v282_v45 = vld [vmem:[%s1566_s23 + $0x7c] sm:$0x3] }
  0x4e   : > { %v540_v6 = vadd.f32 %v1571_v1, %v406_v57  ;;  %v411_v14 = vmul.f32 %v1561_v0, %v275_v52  ;;  %v541_v2 = vadd.f32 %v1571_v1, %v407_v59  ;;  %v542_v18 = vadd.f32 %v1571_v1, %v408_v60  ;;  %v283_v56 = vld [vmem:[%s1566_s23 + $0x7e] sm:$0x3] }
  0x4f   : > { %v543_v19 = vadd.f32 %v1571_v1, %v409_v61  ;;  %v412_v3 = vmul.f32 %v1561_v0, %v276_v58  ;;  %795 = vst [vmem:[%s1598_s28 + $0x62] sm:$0x3] %v667_v62  ;;  %v544_v21 = vadd.f32 %v1571_v1, %v410_v13  ;;  %v413_v39 = vmul.f32 %v1561_v0, %v277_v50 }
  0x50   : > { %v668_v20 = vmax.f32 %v540_v6, 0.0  ;;  %v545_v30 = vadd.f32 %v1571_v1, %v411_v14  ;;  %v669_v35 = vmax.f32 %v541_v2, 0.0  ;;  %v670_v47 = vmax.f32 %v542_v18, 0.0 }
  0x51   : > { %v671_v48 = vmax.f32 %v543_v19, 0.0  ;;  %v546_v52 = vadd.f32 %v1571_v1, %v412_v3  ;;  %v672_v57 = vmax.f32 %v544_v21, 0.0  ;;  %v547_v59 = vadd.f32 %v1571_v1, %v413_v39 }
  0x52   : > { %796 = vst [vmem:[%s1598_s28 + $0x64] sm:$0x3] %v668_v20  ;;  %v673_v58 = vmax.f32 %v545_v30, 0.0  ;;  %v414_v60 = vmul.f32 %v1561_v0, %v278_v4  ;;  %797 = vst [vmem:[%s1598_s28 + $0x66] sm:$0x3] %v669_v35  ;;  %v415_v50 = vmul.f32 %v1561_v0, %v279_v8  ;;  %v416_v6 = vmul.f32 %v1561_v0, %v280_v12 }
  0x53   : > { %798 = vst [vmem:[%s1598_s28 + $0x68] sm:$0x3] %v670_v47  ;;  %799 = vst [vmem:[%s1598_s28 + $0x6a] sm:$0x3] %v671_v48  ;;  %v674_v61 = vmax.f32 %v546_v52, 0.0  ;;  %v417_v13 = vmul.f32 %v1561_v0, %v281_v44  ;;  %v675_v14 = vmax.f32 %v547_v59, 0.0  ;;  %v418_v18 = vmul.f32 %v1561_v0, %v282_v45 }
  0x54   : > { %800 = vst [vmem:[%s1598_s28 + $0x6c] sm:$0x3] %v672_v57  ;;  %801 = vst [vmem:[%s1598_s28 + $0x6e] sm:$0x3] %v673_v58  ;;  %v548_v2 = vadd.f32 %v1571_v1, %v414_v60  ;;  %v419_v19 = vmul.f32 %v1561_v0, %v283_v56  ;;  %v549_v4 = vadd.f32 %v1571_v1, %v415_v50 }
  0x55   : > { %802 = vst [vmem:[%s1598_s28 + $0x70] sm:$0x3] %v674_v61  ;;  %v898_v3 = vmax.f32 %v666_v43, %v674_v61  ;;  %v550_v8 = vadd.f32 %v1571_v1, %v416_v6  ;;  %v551_v12 = vadd.f32 %v1571_v1, %v417_v13  ;;  %803 = vst [vmem:[%s1598_s28 + $0x72] sm:$0x3] %v675_v14  ;;  %v284_v6 = vld [vmem:[%s1566_s23 + $0x80] sm:$0x3] }
  0x56   : > { %v899_v21 = vmax.f32 %v667_v62, %v675_v14  ;;  %v676_v30 = vmax.f32 %v548_v2, 0.0  ;;  %v552_v39 = vadd.f32 %v1571_v1, %v418_v18  ;;  %v553_v44 = vadd.f32 %v1571_v1, %v419_v19 }
  0x57   : > { %v1026_v45 = vrot.slane %v898_v3, 1  ;;  %v677_v52 = vmax.f32 %v549_v4, 0.0  ;;  %v678_v43 = vmax.f32 %v550_v8, 0.0  ;;  %v679_v56 = vmax.f32 %v551_v12, 0.0 }
  0x58   : > { %v1027_v59 = vrot.slane %v899_v21, 1  ;;  %804 = vst [vmem:[%s1598_s28 + $0x74] sm:$0x3] %v676_v30  ;;  %v900_v60 = vmax.f32 %v668_v20, %v676_v30  ;;  %v680_v61 = vmax.f32 %v552_v39, 0.0  ;;  %v681_v50 = vmax.f32 %v553_v44, 0.0 }
  0x59   : > { %v1154_v62 = vmax.f32 %v898_v3, %v1026_v45  ;;  %805 = vst [vmem:[%s1598_s28 + $0x76] sm:$0x3] %v677_v52  ;;  %v901_v13 = vmax.f32 %v669_v35, %v677_v52  ;;  %806 = vst [vmem:[%s1598_s28 + $0x78] sm:$0x3] %v678_v43  ;;  %v902_v14 = vmax.f32 %v670_v47, %v678_v43  ;;  %v285_v30 = vld [vmem:[%s1566_s23 + $0x82] sm:$0x3] }
  0x5a   : > { %807 = vst [vmem:[%s1598_s28 + $0x7a] sm:$0x3] %v679_v56  ;;  %v903_v2 = vmax.f32 %v671_v48, %v679_v56  ;;  %v1155_v18 = vmax.f32 %v899_v21, %v1027_v59  ;;  %v1028_v19 = vrot.slane %v900_v60, 1  ;;  %808 = vst [vmem:[%s1598_s28 + $0x7c] sm:$0x3] %v680_v61  ;;  %v904_v4 = vmax.f32 %v672_v57, %v680_v61 }
  0x5b   : > { %809 = vst [vmem:[%s1598_s28 + $0x7e] sm:$0x3] %v681_v50  ;;  %v1901_v8 = vmax.f32 %v673_v58, %v681_v50  ;;  %v1029_v20 = vrot.slane %v901_v13, 1  ;;  %v1030_v3 = vrot.slane %v902_v14, 1  ;;  %v420_v35 = vmul.f32 %v1561_v0, %v284_v6  ;;  %v286_v57 = vld [vmem:[%s1566_s23 + $0x84] sm:$0x3] }
  0x5c   : > { %v1031_v12 = vrot.slane %v903_v2, 1  ;;  %v1307_v47 = vrot.slane %v1155_v18, 7  ;;  %v1156_v48 = vmax.f32 %v900_v60, %v1028_v19  ;;  %v1032_v21 = vrot.slane %v904_v4, 1  ;;  %v287_v43 = vld [vmem:[%s1566_s23 + $0x86] sm:$0x3] }
  0x5d   : > { %v1907_v44 = vmax.f32 %v901_v13, %v1029_v20  ;;  %v1909_v58 = vmax.f32 %v902_v14, %v1030_v3  ;;  %v1914_v52 = vadd.f32 %v1571_v1, %v420_v35  ;;  %v288_v56 = vld [vmem:[%s1566_s23 + $0x88] sm:$0x3]  ;;  %v289_v59 = vld [vmem:[%s1566_s23 + $0x8a] sm:$0x3]  ;;  %v421_v6 = vmul.f32 %v1561_v0, %v285_v30  ;;  %v290_v13 = vld [vmem:[%s1566_s23 + $0x8c] sm:$0x3] }
  0x5e   : > { %v1911_v45 = vmax.f32 %v903_v2, %v1031_v12  ;;  %v1308_v60 = vsel %vm1259_vm0, %v1307_v47, %v1154_v62  ;;  %v1309_v61 = vrot.slane %v1156_v48, 6  ;;  %v1920_v50 = vmax.f32 %v904_v4, %v1032_v21  ;;  %v291_v14 = vld [vmem:[%s1566_s23 + $0x8e] sm:$0x3]  ;;  %v292_v3 = vld [vmem:[%s1566_s23 + $0x90] sm:$0x3] }
  0x5f   : > { %v682_v20 = vmax.f32 %v1914_v52, 0.0  ;;  %v555_v4 = vadd.f32 %v1571_v1, %v421_v6  ;;  %v422_v35 = vmul.f32 %v1561_v0, %v286_v57  ;;  %v423_v30 = vmul.f32 %v1561_v0, %v287_v43  ;;  %v293_v52 = vld [vmem:[%s1566_s23 + $0x92] sm:$0x3] }
  0x60   : > { %v1931_v12 = vsel %vm1262_vm1, %v1309_v61, %v1308_v60  ;;  %v424_v47 = vmul.f32 %v1561_v0, %v288_v56  ;;  %v425_v48 = vmul.f32 %v1561_v0, %v289_v59  ;;  %v426_v21 = vmul.f32 %v1561_v0, %v290_v13  ;;  %v294_v13 = vld [vmem:[%s1566_s23 + $0x94] sm:$0x3] }
  0x61   : > { %810 = vst [vmem:[%s1598_s28 + $0x80] sm:$0x3] %v682_v20  ;;  %v683_v60 = vmax.f32 %v555_v4, 0.0  ;;  %v556_v61 = vadd.f32 %v1571_v1, %v422_v35  ;;  %v427_v57 = vmul.f32 %v1561_v0, %v291_v14  ;;  %v428_v6 = vmul.f32 %v1561_v0, %v292_v3  ;;  %v295_v4 = vld [vmem:[%s1566_s23 + $0x96] sm:$0x3] }
  0x62   : > { %v557_v62 = vadd.f32 %v1571_v1, %v423_v30  ;;  %v558_v43 = vadd.f32 %v1571_v1, %v424_v47  ;;  %v1948_v56 = vadd.f32 %v1571_v1, %v425_v48  ;;  %v1951_v59 = vadd.f32 %v1571_v1, %v426_v21  ;;  %v296_v35 = vld [vmem:[%s1566_s23 + $0x98] sm:$0x3]  ;;  %v297_v47 = vld [vmem:[%s1566_s23 + $0x9a] sm:$0x3]  ;;  %v298_v48 = vld [vmem:[%s1566_s23 + $0x9c] sm:$0x3] }
  0x63   : > { %811 = vst [vmem:[%s1598_s28 + $0x82] sm:$0x3] %v683_v60  ;;  %v684_v19 = vmax.f32 %v556_v61, 0.0  ;;  %v561_v14 = vadd.f32 %v1571_v1, %v427_v57  ;;  %v562_v3 = vadd.f32 %v1571_v1, %v428_v6  ;;  %v429_v30 = vmul.f32 %v1561_v0, %v293_v52  ;;  %v299_v61 = vld [vmem:[%s1566_s23 + $0x9e] sm:$0x3] }
  0x64   : > { %v685_v21 = vmax.f32 %v557_v62, 0.0  ;;  %v686_v18 = vmax.f32 %v558_v43, 0.0  ;;  %v687_v55 = vmax.f32 %v1948_v56, 0.0  ;;  %v688_v2 = vmax.f32 %v1951_v59, 0.0 }
  0x65   : > { %812 = vst [vmem:[%s1598_s28 + $0x84] sm:$0x3] %v684_v19  ;;  %v689_v57 = vmax.f32 %v561_v14, 0.0  ;;  %v690_v53 = vmax.f32 %v562_v3, 0.0  ;;  %v563_v6 = vadd.f32 %v1571_v1, %v429_v30  ;;  %v430_v34 = vmul.f32 %v1561_v0, %v294_v13  ;;  %v1982_v13 = vld [vmem:[%s2428_s1] ss:$0 sm:$0xff] }
  0x66   : > { %813 = vst [vmem:[%s1598_s28 + $0x86] sm:$0x3] %v685_v21  ;;  %814 = vst [vmem:[%s1598_s28 + $0x88] sm:$0x3] %v686_v18  ;;  %v431_v62 = vmul.f32 %v1561_v0, %v295_v4  ;;  %v432_v52 = vmul.f32 %v1561_v0, %v296_v35  ;;  %v433_v43 = vmul.f32 %v1561_v0, %v297_v47 }
  0x67   : > { %815 = vst [vmem:[%s1598_s28 + $0x8a] sm:$0x3] %v687_v55  ;;  %816 = vst [vmem:[%s1598_s28 + $0x8c] sm:$0x3] %v688_v2  ;;  %v434_v56 = vmul.f32 %v1561_v0, %v298_v48  ;;  %v906_v59 = vmax.f32 %v682_v20, %v690_v53  ;;  %v691_v14 = vmax.f32 %v563_v6, 0.0  ;;  %v564_v3 = vadd.f32 %v1571_v1, %v430_v34 }
  0x68   : > { %817 = vst [vmem:[%s1598_s28 + $0x8e] sm:$0x3] %v689_v57  ;;  %818 = vst [vmem:[%s1598_s28 + $0x90] sm:$0x3] %v690_v53  ;;  %v435_v4 = vmul.f32 %v1982_v13, %v299_v61  ;;  %v565_v35 = vadd.f32 %v1571_v1, %v431_v62  ;;  %v1989_v0 = vld [vmem:[%s2429_s2] ss:$0 sm:$0xff] }
  0x69   : > { %v566_v53 = vadd.f32 %v1989_v0, %v432_v52  ;;  %v567_v34 = vadd.f32 %v1989_v0, %v433_v43  ;;  %v568_v20 = vadd.f32 %v1989_v0, %v434_v56  ;;  %v1034_v30 = vrot.slane %v906_v59, 1  ;;  %819 = vst [vmem:[%s1598_s28 + $0x92] sm:$0x3] %v691_v14 }
  0x6a   : > { %v907_v47 = vmax.f32 %v683_v60, %v691_v14  ;;  %v692_v48 = vmax.f32 %v564_v3, 0.0  ;;  %v569_v1 = vadd.f32 %v1989_v0, %v435_v4  ;;  %v693_v61 = vmax.f32 %v565_v35, 0.0 }
  0x6b   : > { %v694_v6 = vmax.f32 %v566_v53, 0.0  ;;  %v695_v62 = vmax.f32 %v567_v34, 0.0  ;;  %v696_v51 = vmax.f32 %v568_v20, 0.0  ;;  %v1162_v52 = vmax.f32 %v906_v59, %v1034_v30 }
  0x6c   : > { %v1035_v43 = vrot.slane %v907_v47, 1  ;;  %820 = vst [vmem:[%s1598_s28 + $0x94] sm:$0x3] %v692_v48  ;;  %v908_v56 = vmax.f32 %v684_v19, %v692_v48  ;;  %v697_v39 = vmax.f32 %v569_v1, 0.0  ;;  %821 = vst [vmem:[%s1598_s28 + $0x96] sm:$0x3] %v693_v61  ;;  %v909_v49 = vmax.f32 %v685_v21, %v693_v61 }
  0x6d   : > { %822 = vst [vmem:[%s1598_s28 + $0x98] sm:$0x3] %v694_v6  ;;  %v910_v60 = vmax.f32 %v686_v18, %v694_v6  ;;  %823 = vst [vmem:[%s1598_s28 + $0x9a] sm:$0x3] %v695_v62  ;;  %v911_v14 = vmax.f32 %v687_v55, %v695_v62  ;;  %v912_v3 = vmax.f32 %v688_v2, %v696_v51  ;;  %v301_v18 = vld [vmem:[%s1566_s23 + $0xa2] sm:$0x3] }
  0x6e   : > { %824 = vst [vmem:[%s1598_s28 + $0x9c] sm:$0x3] %v696_v51  ;;  %v1163_v4 = vmax.f32 %v907_v47, %v1035_v43  ;;  %v1036_v35 = vrot.slane %v908_v56, 1  ;;  %825 = vst [vmem:[%s1598_s28 + $0x9e] sm:$0x3] %v697_v39  ;;  %v2003_v53 = vmax.f32 %v689_v57, %v697_v39  ;;  %v436_v59 = vmul.f32 %v1982_v13, %v300_v33 }
  0x6f   : > { %v1037_v19 = vrot.slane %v909_v49, 1  ;;  %v1038_v21 = vrot.slane %v910_v60, 1  ;;  %v1039_v34 = vrot.slane %v911_v14, 1  ;;  %v1040_v20 = vrot.slane %v912_v3, 1  ;;  %v302_v39 = vld [vmem:[%s1566_s23 + $0xa4] sm:$0x3] }
  0x70   : > { %v1321_v30 = vrot.slane %v1163_v4, 7  ;;  %v1164_v55 = vmax.f32 %v908_v56, %v1036_v35  ;;  %v2009_v2 = vadd.f32 %v1989_v0, %v436_v59  ;;  %v303_v1 = vld [vmem:[%s1566_s23 + $0xa6] sm:$0x3]  ;;  %v304_v61 = vld [vmem:[%s1566_s23 + $0xa8] sm:$0x3]  ;;  %v437_v4 = vmul.f32 %v1982_v13, %v301_v18 }
  0x71   : > { %v2012_v57 = vmax.f32 %v909_v49, %v1037_v19  ;;  %v2014_v33 = vmax.f32 %v910_v60, %v1038_v21  ;;  %v2016_v47 = vmax.f32 %v911_v14, %v1039_v34  ;;  %v2018_v48 = vmax.f32 %v912_v3, %v1040_v20  ;;  %v305_v6 = vld [vmem:[%s1566_s23 + $0xaa] sm:$0x3]  ;;  %v306_v49 = vld [vmem:[%s1566_s23 + $0xac] sm:$0x3]  ;;  %v307_v60 = vld [vmem:[%s1566_s23 + $0xae] sm:$0x3] }
  0x72   : > { %v1322_v62 = vsel %vm1259_vm0, %v1321_v30, %v1162_v52  ;;  %v1323_v43 = vrot.slane %v1164_v55, 6  ;;  %v698_v56 = vmax.f32 %v2009_v2, 0.0  ;;  %v308_v19 = vld [vmem:[%s1566_s23 + $0xb0] sm:$0x3]  ;;  %v571_v21 = vadd.f32 %v1989_v0, %v437_v4  ;;  %v310_v59 = vld [vmem:[%s1566_s23 + $0xb4] sm:$0x3] }
  0x73   : > { %v438_v34 = vmul.f32 %v1982_v13, %v302_v39  ;;  %v439_v20 = vmul.f32 %v1982_v13, %v303_v1  ;;  %v440_v18 = vmul.f32 %v1982_v13, %v304_v61  ;;  %v441_v30 = vmul.f32 %v1982_v13, %v305_v6 }
  0x74   : > { %v2034_v52 = vsel %vm1262_vm1, %v1323_v43, %v1322_v62  ;;  %826 = vst [vmem:[%s1598_s28 + $0xa0] sm:$0x3] %v698_v56  ;;  %v442_v55 = vmul.f32 %v1982_v13, %v306_v49  ;;  %v443_v2 = vmul.f32 %v1982_v13, %v307_v60  ;;  %v309_v62 = vld [vmem:[%s1566_s23 + $0xb2] sm:$0x3]  ;;  %v699_v43 = vmax.f32 %v571_v21, 0.0 }
  0x75   : > { %v572_v4 = vadd.f32 %v1989_v0, %v438_v34  ;;  %v573_v39 = vadd.f32 %v1989_v0, %v439_v20  ;;  %v444_v1 = vmul.f32 %v1982_v13, %v308_v19  ;;  %v574_v61 = vadd.f32 %v1989_v0, %v440_v18  ;;  %v311_v60 = vld [vmem:[%s1566_s23 + $0xb6] sm:$0x3]  ;;  %v312_v21 = vld [vmem:[%s1566_s23 + $0xb8] sm:$0x3]  ;;  %v313_v34 = vld [vmem:[%s1566_s23 + $0xba] sm:$0x3] }
  0x76   : > { %v575_v6 = vadd.f32 %v1989_v0, %v441_v30  ;;  %v576_v3 = vadd.f32 %v1989_v0, %v442_v55  ;;  %v577_v49 = vadd.f32 %v1989_v0, %v443_v2  ;;  %827 = vst [vmem:[%s1598_s28 + $0xa2] sm:$0x3] %v699_v43  ;;  %v445_v18 = vmul.f32 %v1982_v13, %v309_v62  ;;  %v314_v30 = vld [vmem:[%s1566_s23 + $0xbc] sm:$0x3]  ;;  %v315_v55 = vld [vmem:[%s1566_s23 + $0xbe] sm:$0x3] }
  0x77   : > { %v700_v14 = vmax.f32 %v572_v4, 0.0  ;;  %v701_v20 = vmax.f32 %v573_v39, 0.0  ;;  %v578_v19 = vadd.f32 %v1989_v0, %v444_v1  ;;  %v702_v35 = vmax.f32 %v574_v61, 0.0 }
  0x78   : > { %v703_v51 = vmax.f32 %v575_v6, 0.0  ;;  %v704_v2 = vmax.f32 %v576_v3, 0.0  ;;  %v705_v23 = vmax.f32 %v577_v49, 0.0  ;;  %v579_v4 = vadd.f32 %v1989_v0, %v445_v18 }
  0x79   : > { %828 = vst [vmem:[%s1598_s28 + $0xa4] sm:$0x3] %v700_v14  ;;  %829 = vst [vmem:[%s1598_s28 + $0xa6] sm:$0x3] %v701_v20  ;;  %v706_v7 = vmax.f32 %v578_v19, 0.0  ;;  %v446_v39 = vmul.f32 %v1982_v13, %v310_v59  ;;  %v447_v1 = vmul.f32 %v1982_v13, %v311_v60  ;;  %v448_v62 = vmul.f32 %v1982_v13, %v312_v21 }
  0x7a   : > { %830 = vst [vmem:[%s1598_s28 + $0xa8] sm:$0x3] %v702_v35  ;;  %831 = vst [vmem:[%s1598_s28 + $0xaa] sm:$0x3] %v703_v51  ;;  %v449_v3 = vmul.f32 %v1982_v13, %v313_v34  ;;  %v450_v61 = vmul.f32 %v1982_v13, %v314_v30  ;;  %v451_v6 = vmul.f32 %v1982_v13, %v315_v55  ;;  %v707_v19 = vmax.f32 %v579_v4, 0.0 }
  0x7b   : > { %832 = vst [vmem:[%s1598_s28 + $0xac] sm:$0x3] %v704_v2  ;;  %833 = vst [vmem:[%s1598_s28 + $0xae] sm:$0x3] %v705_v23  ;;  %v914_v49 = vmax.f32 %v698_v56, %v706_v7  ;;  %v580_v59 = vadd.f32 %v1989_v0, %v446_v39  ;;  %v581_v60 = vadd.f32 %v1989_v0, %v447_v1 }
  0x7c   : > { %834 = vst [vmem:[%s1598_s28 + $0xb0] sm:$0x3] %v706_v7  ;;  %v582_v18 = vadd.f32 %v1989_v0, %v448_v62  ;;  %v583_v22 = vadd.f32 %v1989_v0, %v449_v3  ;;  %v584_v21 = vadd.f32 %v1989_v0, %v450_v61  ;;  %v585_v34 = vadd.f32 %v1989_v0, %v451_v6 }
  0x7d   : > { %v1042_v30 = vrot.slane %v914_v49, 1  ;;  %835 = vst [vmem:[%s1598_s28 + $0xb2] sm:$0x3] %v707_v19  ;;  %v915_v7 = vmax.f32 %v699_v43, %v707_v19  ;;  %v708_v56 = vmax.f32 %v580_v59, 0.0  ;;  %v709_v55 = vmax.f32 %v581_v60, 0.0 }
  0x7e   : > { %v710_v4 = vmax.f32 %v582_v18, 0.0  ;;  %v711_v39 = vmax.f32 %v583_v22, 0.0  ;;  %v712_v1 = vmax.f32 %v584_v21, 0.0  ;;  %v713_v62 = vmax.f32 %v585_v34, 0.0 }
  0x7f   : > { %v1170_v3 = vmax.f32 %v914_v49, %v1042_v30  ;;  %v1043_v42 = vrot.slane %v915_v7, 1  ;;  %836 = vst [vmem:[%s1598_s28 + $0xb4] sm:$0x3] %v708_v56  ;;  %v916_v61 = vmax.f32 %v700_v14, %v708_v56  ;;  %837 = vst [vmem:[%s1598_s28 + $0xb6] sm:$0x3] %v709_v55  ;;  %v917_v6 = vmax.f32 %v701_v20, %v709_v55 }
  0x80   : > { %838 = vst [vmem:[%s1598_s28 + $0xb8] sm:$0x3] %v710_v4  ;;  %v918_v38 = vmax.f32 %v702_v35, %v710_v4  ;;  %839 = vst [vmem:[%s1598_s28 + $0xba] sm:$0x3] %v711_v39  ;;  %v919_v43 = vmax.f32 %v703_v51, %v711_v39  ;;  %v920_v19 = vmax.f32 %v704_v2, %v712_v1  ;;  %v317_v14 = vld [vmem:[%s1566_s23 + $0xc2] sm:$0x3] }
  0x81   : > { %840 = vst [vmem:[%s1598_s28 + $0xbc] sm:$0x3] %v712_v1  ;;  %841 = vst [vmem:[%s1598_s28 + $0xbe] sm:$0x3] %v713_v62  ;;  %v2089_v22 = vmax.f32 %v705_v23, %v713_v62  ;;  %v1171_v59 = vmax.f32 %v915_v7, %v1043_v42  ;;  %v1044_v60 = vrot.slane %v916_v61, 1  ;;  %v1045_v49 = vrot.slane %v917_v6, 1 }
  0x82   : > { %v452_v18 = vmul.f32 %v1982_v13, %v316_v11  ;;  %v1046_v20 = vrot.slane %v918_v38, 1  ;;  %v1047_v35 = vrot.slane %v919_v43, 1  ;;  %v1048_v21 = vrot.slane %v920_v19, 1  ;;  %v318_v23 = vld [vmem:[%s1566_s23 + $0xc4] sm:$0x3] }
  0x83   : > { %v1335_v2 = vrot.slane %v1171_v59, 7  ;;  %v1172_v34 = vmax.f32 %v916_v61, %v1044_v60  ;;  %v2094_v30 = vmax.f32 %v917_v6, %v1045_v49  ;;  %v319_v7 = vld [vmem:[%s1566_s23 + $0xc6] sm:$0x3]  ;;  %v453_v4 = vmul.f32 %v1982_v13, %v317_v14  ;;  %v320_v39 = vld [vmem:[%s1566_s23 + $0xc8] sm:$0x3] }
  0x84   : > { %v2097_v42 = vadd.f32 %v1989_v0, %v452_v18  ;;  %v2101_v11 = vmax.f32 %v918_v38, %v1046_v20  ;;  %v2103_v56 = vmax.f32 %v919_v43, %v1047_v35  ;;  %v2105_v55 = vmax.f32 %v920_v19, %v1048_v21  ;;  %v321_v1 = vld [vmem:[%s1566_s23 + $0xca] sm:$0x3]  ;;  %v322_v62 = vld [vmem:[%s1566_s23 + $0xcc] sm:$0x3]  ;;  %v323_v60 = vld [vmem:[%s1566_s23 + $0xce] sm:$0x3] }
  0x85   : > { %v1336_v61 = vsel %vm1259_vm0, %v1335_v2, %v1170_v3  ;;  %v1337_v6 = vrot.slane %v1172_v34, 6  ;;  %v587_v18 = vadd.f32 %v1989_v0, %v453_v4  ;;  %v324_v14 = vld [vmem:[%s1566_s23 + $0xd0] sm:$0x3]  ;;  %v454_v3 = vmul.f32 %v1982_v13, %v318_v23  ;;  %v325_v2 = vld [vmem:[%s1566_s23 + $0xd2] sm:$0x3] }
  0x86   : > { %2438 = vst [vmem:[#allocation2_spill] sm:$0xff] %v2103_v56  ;;  %2439 = vst [vmem:[#allocation3_spill] sm:$0xff] %v2105_v55  ;;  %v714_v38 = vmax.f32 %v2097_v42, 0.0  ;;  %v455_v35 = vmul.f32 %v1982_v13, %v319_v7  ;;  %v456_v21 = vmul.f32 %v1982_v13, %v320_v39  ;;  %v457_v42 = vmul.f32 %v1982_v13, %v321_v1  ;;  %v326_v39 = vld [vmem:[%s1566_s23 + $0xd4] sm:$0x3] }
  0x87   : > { %v2121_v20 = vsel %vm1262_vm1, %v1337_v6, %v1336_v61  ;;  %v715_v34 = vmax.f32 %v587_v18, 0.0  ;;  %v458_v4 = vmul.f32 %v1982_v13, %v322_v62  ;;  %v459_v61 = vmul.f32 %v1982_v13, %v323_v60  ;;  %v327_v19 = vld [vmem:[%s1566_s23 + $0xd6] sm:$0x3]  ;;  %v331_v51 = vld [vmem:[%s1566_s23 + $0xde] sm:$0x3] }
  0x88   : > { %842 = vst [vmem:[%s1598_s28 + $0xc0] sm:$0x3] %v714_v38  ;;  %v588_v6 = vadd.f32 %v1989_v0, %v454_v3  ;;  %v589_v49 = vadd.f32 %v1989_v0, %v455_v35  ;;  %v590_v23 = vadd.f32 %v1989_v0, %v456_v21  ;;  %v460_v7 = vmul.f32 %v1982_v13, %v324_v14  ;;  %v328_v3 = vld [vmem:[%s1566_s23 + $0xd8] sm:$0x3]  ;;  %v329_v35 = vld [vmem:[%s1566_s23 + $0xda] sm:$0x3] }
  0x89   : > { %843 = vst [vmem:[%s1598_s28 + $0xc2] sm:$0x3] %v715_v34  ;;  %v591_v18 = vadd.f32 %v1989_v0, %v457_v42  ;;  %v592_v1 = vadd.f32 %v1989_v0, %v458_v4  ;;  %v593_v62 = vadd.f32 %v1989_v0, %v459_v61  ;;  %v461_v60 = vmul.f32 %v1982_v13, %v325_v2  ;;  %v330_v21 = vld [vmem:[%s1566_s23 + $0xdc] sm:$0x3] }
  0x8a   : > { %v716_v43 = vmax.f32 %v588_v6, 0.0  ;;  %v717_v14 = vmax.f32 %v589_v49, 0.0  ;;  %v718_v59 = vmax.f32 %v590_v23, 0.0  ;;  %v594_v42 = vadd.f32 %v1989_v0, %v460_v7 }
  0x8b   : > { %v719_v37 = vmax.f32 %v591_v18, 0.0  ;;  %v720_v4 = vmax.f32 %v592_v1, 0.0  ;;  %v721_v36 = vmax.f32 %v593_v62, 0.0  ;;  %v595_v61 = vadd.f32 %v1989_v0, %v461_v60 }
  0x8c   : > { %844 = vst [vmem:[%s1598_s28 + $0xc4] sm:$0x3] %v716_v43  ;;  %845 = vst [vmem:[%s1598_s28 + $0xc6] sm:$0x3] %v717_v14  ;;  %v722_v2 = vmax.f32 %v594_v42, 0.0  ;;  %v462_v6 = vmul.f32 %v1982_v13, %v326_v39  ;;  %v463_v49 = vmul.f32 %v1982_v13, %v327_v19  ;;  %v464_v23 = vmul.f32 %v1982_v13, %v328_v3 }
  0x8d   : > { %846 = vst [vmem:[%s1598_s28 + $0xc8] sm:$0x3] %v718_v59  ;;  %847 = vst [vmem:[%s1598_s28 + $0xca] sm:$0x3] %v719_v37  ;;  %v723_v7 = vmax.f32 %v595_v61, 0.0  ;;  %v465_v18 = vmul.f32 %v1982_v13, %v329_v35  ;;  %v466_v1 = vmul.f32 %v1982_v13, %v330_v21  ;;  %v467_v62 = vmul.f32 %v1982_v13, %v331_v51 }
  0x8e   : > { %848 = vst [vmem:[%s1598_s28 + $0xcc] sm:$0x3] %v720_v4  ;;  %849 = vst [vmem:[%s1598_s28 + $0xce] sm:$0x3] %v721_v36  ;;  %v922_v60 = vmax.f32 %v714_v38, %v722_v2  ;;  %v596_v42 = vadd.f32 %v1989_v0, %v462_v6  ;;  %v597_v39 = vadd.f32 %v1989_v0, %v463_v49 }
  0x8f   : > { %850 = vst [vmem:[%s1598_s28 + $0xd0] sm:$0x3] %v722_v2  ;;  %v598_v19 = vadd.f32 %v1989_v0, %v464_v23  ;;  %851 = vst [vmem:[%s1598_s28 + $0xd2] sm:$0x3] %v723_v7  ;;  %v923_v3 = vmax.f32 %v715_v34, %v723_v7  ;;  %v599_v61 = vadd.f32 %v1989_v0, %v465_v18  ;;  %v332_v34 = vld [vmem:[%s1566_s23 + $0xe0] sm:$0x3] }
  0x90   : > { %v600_v35 = vadd.f32 %v1989_v0, %v466_v1  ;;  %v601_v51 = vadd.f32 %v1989_v0, %v467_v62  ;;  %v1050_v21 = vrot.slane %v922_v60, 1  ;;  %v724_v38 = vmax.f32 %v596_v42, 0.0 }
  0x91   : > { %v725_v2 = vmax.f32 %v597_v39, 0.0  ;;  %v726_v6 = vmax.f32 %v598_v19, 0.0  ;;  %v1051_v49 = vrot.slane %v923_v3, 1  ;;  %v727_v27 = vmax.f32 %v599_v61, 0.0 }
  0x92   : > { %v728_v23 = vmax.f32 %v600_v35, 0.0  ;;  %v729_v55 = vmax.f32 %v601_v51, 0.0  ;;  %v1178_v7 = vmax.f32 %v922_v60, %v1050_v21  ;;  %852 = vst [vmem:[%s1598_s28 + $0xd4] sm:$0x3] %v724_v38  ;;  %v924_v18 = vmax.f32 %v716_v43, %v724_v38  ;;  %v333_v51 = vld [vmem:[%s1566_s23 + $0xe2] sm:$0x3] }
  0x93   : > { %853 = vst [vmem:[%s1598_s28 + $0xd6] sm:$0x3] %v725_v2  ;;  %v925_v1 = vmax.f32 %v717_v14, %v725_v2  ;;  %854 = vst [vmem:[%s1598_s28 + $0xd8] sm:$0x3] %v726_v6  ;;  %v926_v62 = vmax.f32 %v718_v59, %v726_v6  ;;  %v1179_v56 = vmax.f32 %v923_v3, %v1051_v49  ;;  %v334_v21 = vld [vmem:[%s1566_s23 + $0xe4] sm:$0x3] }
  0x94   : > { %855 = vst [vmem:[%s1598_s28 + $0xda] sm:$0x3] %v727_v27  ;;  %v927_v42 = vmax.f32 %v719_v37, %v727_v27  ;;  %856 = vst [vmem:[%s1598_s28 + $0xdc] sm:$0x3] %v728_v23  ;;  %v928_v39 = vmax.f32 %v720_v4, %v728_v23  ;;  %v2175_v19 = vmax.f32 %v721_v36, %v729_v55  ;;  %v1052_v61 = vrot.slane %v924_v18, 1 }
  0x95   : > { %857 = vst [vmem:[%s1598_s28 + $0xde] sm:$0x3] %v729_v55  ;;  %v1053_v35 = vrot.slane %v925_v1, 1  ;;  %v1054_v60 = vrot.slane %v926_v62, 1  ;;  %v468_v43 = vmul.f32 %v1982_v13, %v332_v34  ;;  %v1349_v14 = vrot.slane %v1179_v56, 7 }
  0x96   : > { %v1055_v59 = vrot.slane %v927_v42, 1  ;;  %v1056_v3 = vrot.slane %v928_v39, 1  ;;  %v1180_v37 = vmax.f32 %v924_v18, %v1052_v61  ;;  %v335_v38 = vld [vmem:[%s1566_s23 + $0xe6] sm:$0x3]  ;;  %v469_v49 = vmul.f32 %v1982_v13, %v333_v51  ;;  %v336_v23 = vld [vmem:[%s1566_s23 + $0xe8] sm:$0x3] }
  0x97   : > { %v2180_v4 = vmax.f32 %v925_v1, %v1053_v35  ;;  %v2182_v36 = vmax.f32 %v926_v62, %v1054_v60  ;;  %v2185_v55 = vadd.f32 %v1989_v0, %v468_v43  ;;  %v1350_v2 = vsel %vm1259_vm0, %v1349_v14, %v1178_v7  ;;  %v337_v34 = vld [vmem:[%s1566_s23 + $0xea] sm:$0x3]  ;;  %v338_v18 = vld [vmem:[%s1566_s23 + $0xec] sm:$0x3]  ;;  %v339_v7 = vld [vmem:[%s1566_s23 + $0xee] sm:$0x3] }
  0x98   : > { %v2190_v56 = vmax.f32 %v927_v42, %v1055_v59  ;;  %v2192_v6 = vmax.f32 %v928_v39, %v1056_v3  ;;  %v1351_v1 = vrot.slane %v1180_v37, 6  ;;  %v603_v60 = vadd.f32 %v1989_v0, %v469_v49  ;;  %v340_v51 = vld [vmem:[%s1566_s23 + $0xf0] sm:$0x3]  ;;  %v344_v61 = vld [vmem:[%s1566_s23 + $0xf8] sm:$0x3] }
  0x99   : > { %2440 = vst [vmem:[#allocation4_spill] sm:$0xff] %v2180_v4  ;;  %2441 = vst [vmem:[#allocation5_spill] sm:$0xff] %v2182_v36  ;;  %v730_v35 = vmax.f32 %v2185_v55, 0.0  ;;  %v470_v43 = vmul.f32 %v1982_v13, %v334_v21  ;;  %v471_v59 = vmul.f32 %v1982_v13, %v335_v38  ;;  %v472_v3 = vmul.f32 %v1982_v13, %v336_v23  ;;  %v341_v55 = vld [vmem:[%s1566_s23 + $0xf2] sm:$0x3] }
  0x9a   : > { %2442 = vst [vmem:[#allocation6_spill] sm:$0xff] %v2190_v56  ;;  %2443 = vst [vmem:[#allocation7_spill] sm:$0xff] %v2192_v6  ;;  %v2208_v14 = vsel %vm1262_vm1, %v1351_v1, %v1350_v2  ;;  %v473_v37 = vmul.f32 %v1982_v13, %v337_v34  ;;  %v731_v39 = vmax.f32 %v603_v60, 0.0  ;;  %v474_v49 = vmul.f32 %v1982_v13, %v338_v18  ;;  %v342_v34 = vld [vmem:[%s1566_s23 + $0xf4] sm:$0x3] }
  0x9b   : > { %2444 = vst [vmem:[#allocation8_spill] sm:$0xff] %v2208_v14  ;;  %858 = vst [vmem:[%s1598_s28 + $0xe0] sm:$0x3] %v730_v35  ;;  %v604_v21 = vadd.f32 %v1989_v0, %v470_v43  ;;  %v475_v2 = vmul.f32 %v1982_v13, %v339_v7  ;;  %v605_v1 = vadd.f32 %v1989_v0, %v471_v59  ;;  %v343_v60 = vld [vmem:[%s1566_s23 + $0xf6] sm:$0x3] }
  0x9c   : > { %v606_v42 = vadd.f32 %v1989_v0, %v472_v3  ;;  %v607_v38 = vadd.f32 %v1989_v0, %v473_v37  ;;  %v476_v23 = vmul.f32 %v1982_v13, %v340_v51  ;;  %859 = vst [vmem:[%s1598_s28 + $0xe2] sm:$0x3] %v731_v39  ;;  %v608_v18 = vadd.f32 %v1989_v0, %v474_v49  ;;  %v345_v3 = vld [vmem:[%s1566_s23 + $0xfa] sm:$0x3]  ;;  %v346_v37 = vld [vmem:[%s1566_s23 + $0xfc] sm:$0x3] }
  0x9d   : > { %v732_v43 = vmax.f32 %v604_v21, 0.0  ;;  %v609_v7 = vadd.f32 %v1989_v0, %v475_v2  ;;  %v477_v59 = vmul.f32 %v1982_v13, %v341_v55  ;;  %v733_v62 = vmax.f32 %v605_v1, 0.0  ;;  %v347_v56 = vld [vmem:[%s1566_s23 + $0xfe] sm:$0x3] }
  0x9e   : > { %v734_v27 = vmax.f32 %v606_v42, 0.0  ;;  %v735_v51 = vmax.f32 %v607_v38, 0.0  ;;  %v610_v6 = vadd.f32 %v1989_v0, %v476_v23  ;;  %v736_v21 = vmax.f32 %v608_v18, 0.0 }
  0x9f   : > { %860 = vst [vmem:[%s1598_s28 + $0xe4] sm:$0x3] %v732_v43  ;;  %v737_v36 = vmax.f32 %v609_v7, 0.0  ;;  %v611_v49 = vadd.f32 %v1989_v0, %v477_v59  ;;  %v478_v2 = vmul.f32 %v1982_v13, %v342_v34  ;;  %861 = vst [vmem:[%s1598_s28 + $0xe6] sm:$0x3] %v733_v62  ;;  %v479_v42 = vmul.f32 %v1982_v13, %v343_v60 }
  0xa0   : > { %862 = vst [vmem:[%s1598_s28 + $0xe8] sm:$0x3] %v734_v27  ;;  %863 = vst [vmem:[%s1598_s28 + $0xea] sm:$0x3] %v735_v51  ;;  %v738_v55 = vmax.f32 %v610_v6, 0.0  ;;  %v480_v1 = vmul.f32 %v1982_v13, %v344_v61  ;;  %v481_v38 = vmul.f32 %v1982_v13, %v345_v3  ;;  %v482_v7 = vmul.f32 %v1982_v13, %v346_v37 }
  0xa1   : > { %864 = vst [vmem:[%s1598_s28 + $0xec] sm:$0x3] %v736_v21  ;;  %865 = vst [vmem:[%s1598_s28 + $0xee] sm:$0x3] %v737_v36  ;;  %v739_v23 = vmax.f32 %v611_v49, 0.0  ;;  %v612_v18 = vadd.f32 %v1989_v0, %v478_v2  ;;  %v483_v34 = vmul.f32 %v1982_v13, %v347_v56  ;;  %v613_v6 = vadd.f32 %v1989_v0, %v479_v42 }
  0xa2   : > { %866 = vst [vmem:[%s1598_s28 + $0xf0] sm:$0x3] %v738_v55  ;;  %v930_v59 = vmax.f32 %v730_v35, %v738_v55  ;;  %v614_v60 = vadd.f32 %v1989_v0, %v480_v1  ;;  %v615_v61 = vadd.f32 %v1989_v0, %v481_v38  ;;  %v616_v2 = vadd.f32 %v1989_v0, %v482_v7 }
  0xa3   : > { %867 = vst [vmem:[%s1598_s28 + $0xf2] sm:$0x3] %v739_v23  ;;  %v931_v3 = vmax.f32 %v731_v39, %v739_v23  ;;  %v740_v49 = vmax.f32 %v612_v18, 0.0  ;;  %v617_v37 = vadd.f32 %v1989_v0, %v483_v34  ;;  %v741_v56 = vmax.f32 %v613_v6, 0.0 }
  0xa4   : > { %v1058_v13 = vrot.slane %v930_v59, 1  ;;  %v742_v4 = vmax.f32 %v614_v60, 0.0  ;;  %v743_v35 = vmax.f32 %v615_v61, 0.0  ;;  %v744_v1 = vmax.f32 %v616_v2, 0.0 }
  0xa5   : > { %v1059_v55 = vrot.slane %v931_v3, 1  ;;  %868 = vst [vmem:[%s1598_s28 + $0xf4] sm:$0x3] %v740_v49  ;;  %v932_v42 = vmax.f32 %v732_v43, %v740_v49  ;;  %v745_v38 = vmax.f32 %v617_v37, 0.0  ;;  %869 = vst [vmem:[%s1598_s28 + $0xf6] sm:$0x3] %v741_v56  ;;  %v933_v39 = vmax.f32 %v733_v62, %v741_v56 }
  0xa6   : > { %v1186_v14 = vmax.f32 %v930_v59, %v1058_v13  ;;  %870 = vst [vmem:[%s1598_s28 + $0xf8] sm:$0x3] %v742_v4  ;;  %v934_v23 = vmax.f32 %v734_v27, %v742_v4  ;;  %871 = vst [vmem:[%s1598_s28 + $0xfa] sm:$0x3] %v743_v35  ;;  %v935_v18 = vmax.f32 %v735_v51, %v743_v35  ;;  %v2445_v49 = vrot.slane %v1648_v17, 1 }
  0xa7   : > { %v1187_v7 = vmax.f32 %v931_v3, %v1059_v55  ;;  %v1060_v0 = vrot.slane %v932_v42, 1  ;;  %872 = vst [vmem:[%s1598_s28 + $0xfc] sm:$0x3] %v744_v1  ;;  %v936_v34 = vmax.f32 %v736_v21, %v744_v1  ;;  %873 = vst [vmem:[%s1598_s28 + $0xfe] sm:$0x3] %v745_v38  ;;  %v2260_v6 = vmax.f32 %v737_v36, %v745_v38 }
  0xa8   : > { %v1061_v60 = vrot.slane %v933_v39, 1  ;;  %v1062_v61 = vrot.slane %v934_v23, 1  ;;  %v1063_v43 = vrot.slane %v935_v18, 1  ;;  %v1137_v59 = vmax.f32 %v1648_v17, %v2445_v49 }
  0xa9   : > { %v1363_v62 = vrot.slane %v1187_v7, 7  ;;  %v1188_v2 = vmax.f32 %v932_v42, %v1060_v0  ;;  %v1064_v27 = vrot.slane %v936_v34, 1  ;;  %v1065_v4 = vrot.slane %v2260_v6, 1 }
  0xaa   : > { %v2266_v51 = vmax.f32 %v933_v39, %v1061_v60  ;;  %v2268_v3 = vmax.f32 %v934_v23, %v1062_v61  ;;  %v2270_v21 = vmax.f32 %v935_v18, %v1063_v43  ;;  %v2446_v17 = vrot.slane %v1652_v24, 5 }
  0xab   : > { %v1364_v36 = vsel %vm1259_vm0, %v1363_v62, %v1186_v14  ;;  %v1365_v37 = vrot.slane %v1188_v2, 6  ;;  %v2273_v13 = vmax.f32 %v936_v34, %v1064_v27  ;;  %v2447_v38 = vrot.slane %v1654_v25, 4 }
  0xac   : > { %v1266_v56 = vsel %vm1265_vm2, %v2446_v17, %v1677_v46  ;;  %v1367_v35 = vrot.slane %v2266_v51, 5  ;;  %v1369_v55 = vrot.slane %v2268_v3, 4  ;;  %v1371_v42 = vrot.slane %v2270_v21, 3 }
  0xad   : > { %v1366_v1 = vsel %vm1262_vm1, %v1365_v37, %v1364_v36  ;;  %v1373_v14 = vrot.slane %v2273_v13, 2  ;;  %v1269_v39 = vsel %vm1268_vm3, %v2447_v38, %v1266_v56  ;;  %v2448_v24 = vrot.slane %v1656_v26, 3 }
  0xae   : > { %v1276_v23 = vrot.slane %v1137_v59, 1  ;;  %v2449_v18 = vrot.slane %v1661_v32, 2  ;;  %v2450_v7 = vrot.slane %v1732_v63, 1  ;;  %v2451_v34 = vrot.slane %v1737_v9, 5 }
  0xaf   : > { %v1272_v46 = vsel %vm1271_vm4, %v2448_v24, %v1269_v39  ;;  %v2452_v26 = vrot.slane %v1815_v5, 1  ;;  %v2453_v49 = vrot.slane %v1739_v10, 4  ;;  %v2454_v59 = vrot.slane %v1824_v28, 5 }
  0xb0   : > { %v1275_v25 = vsel %vm1274_vm5, %v2449_v18, %v1272_v46  ;;  %v1145_v0 = vmax.f32 %v1732_v63, %v2450_v7  ;;  %v1284_v60 = vsel %vm1265_vm2, %v2451_v34, %v1758_v31  ;;  %v2455_v9 = vrot.slane %v1901_v8, 1 }
  0xb1   : > { %v1153_v61 = vmax.f32 %v1815_v5, %v2452_v26  ;;  %v1278_v43 = vsel %vm1277_vm6, %v1276_v23, %v1275_v25  ;;  %v1286_v32 = vsel %vm1268_vm3, %v2453_v49, %v1284_v60  ;;  %v1298_v63 = vsel %vm1265_vm2, %v2454_v59, %v1849_v54  ;;  %v2476_v59 = vld [vmem:[#allocation8_spill] sm:$0xff] }
  0xb2   : > { %v1161_v31 = vmax.f32 %v1901_v8, %v2455_v9  ;;  %1385 = vst [vmem:[%s2291_s10] sm:$0xff] %v1278_v43  ;;  %v2456_v62 = vrot.slane %v1744_v15, 3  ;;  %v1291_v2 = vrot.slane %v1145_v0, 1  ;;  %v2457_v10 = vrot.slane %v1826_v29, 4 }
  0xb3   : > { %v1305_v51 = vrot.slane %v1153_v61, 1  ;;  %v2458_v28 = vrot.slane %v1746_v16, 2  ;;  %v2459_v36 = vrot.slane %v1830_v40, 3  ;;  %v2460_v15 = vrot.slane %v1907_v44, 5 }
  0xb4   : > { %v1288_v5 = vsel %vm1271_vm4, %v2456_v62, %v1286_v32  ;;  %v1300_v27 = vsel %vm1268_vm3, %v2457_v10, %v1298_v63  ;;  %v1319_v17 = vrot.slane %v1161_v31, 1  ;;  %v2461_v56 = vrot.slane %v1832_v41, 2  ;;  %v2477_v63 = vld [vmem:[#allocation4_spill] sm:$0xff]  ;;  %v2479_v62 = vld [vmem:[#allocation3_spill] sm:$0xff] }
  0xb5   : > { %v1290_v54 = vsel %vm1274_vm5, %v2458_v28, %v1288_v5  ;;  %v1302_v8 = vsel %vm1271_vm4, %v2459_v36, %v1300_v27  ;;  %v1312_v37 = vsel %vm1265_vm2, %v2460_v15, %v1931_v12  ;;  %v2462_v16 = vrot.slane %v1909_v58, 4  ;;  %v2483_v28 = vld [vmem:[#allocation6_spill] sm:$0xff] }
  0xb6   : > { %v1292_v29 = vsel %vm1277_vm6, %v1291_v2, %v1290_v54  ;;  %v1304_v38 = vsel %vm1274_vm5, %v2461_v56, %v1302_v8  ;;  %v2463_v40 = vrot.slane %v2003_v53, 1  ;;  %v2464_v12 = vrot.slane %v1911_v45, 3  ;;  %v2481_v2 = vld [vmem:[#allocation5_spill] sm:$0xff] }
  0xb7   : > { %v1314_v39 = vsel %vm1268_vm3, %v2462_v16, %v1312_v37  ;;  %1386 = vst [vmem:[%s2291_s10 + $0x8] sm:$0xff] %v1292_v29  ;;  %v1306_v44 = vsel %vm1277_vm6, %v1305_v51, %v1304_v38  ;;  %v2465_v41 = vrot.slane %v2012_v57, 5  ;;  %v2466_v58 = vrot.slane %v2089_v22, 1  ;;  %v2485_v37 = vld [vmem:[#allocation7_spill] sm:$0xff] }
  0xb8   : > { %v1169_v24 = vmax.f32 %v2003_v53, %v2463_v40  ;;  %v1316_v46 = vsel %vm1271_vm4, %v2464_v12, %v1314_v39  ;;  %1387 = vst [vmem:[%s2291_s10 + $0x10] sm:$0xff] %v1306_v44  ;;  %v2467_v25 = vrot.slane %v1920_v50, 2  ;;  %v2468_v7 = vrot.slane %v2014_v33, 4 }
  0xb9   : > { %v1326_v23 = vsel %vm1265_vm2, %v2465_v41, %v2034_v52  ;;  %v1177_v18 = vmax.f32 %v2089_v22, %v2466_v58  ;;  %v2469_v57 = vrot.slane %v2094_v30, 5  ;;  %v2470_v22 = vrot.slane %v2016_v47, 3  ;;  %v2473_v30 = vld [vmem:[#allocation2_spill] sm:$0xff] }
  0xba   : > { %v1318_v53 = vsel %vm1274_vm5, %v2467_v25, %v1316_v46  ;;  %v1328_v45 = vsel %vm1268_vm3, %v2468_v7, %v1326_v23  ;;  %v1333_v0 = vrot.slane %v1169_v24, 1  ;;  %v2471_v50 = vrot.slane %v2101_v11, 4 }
  0xbb   : > { %v1340_v52 = vsel %vm1265_vm2, %v2469_v57, %v2121_v20  ;;  %v1320_v34 = vsel %vm1277_vm6, %v1319_v17, %v1318_v53  ;;  %v1330_v60 = vsel %vm1271_vm4, %v2470_v22, %v1328_v45  ;;  %v1347_v33 = vrot.slane %v1177_v18, 1 }
  0xbc   : > { %v1342_v26 = vsel %vm1268_vm3, %v2471_v50, %v1340_v52  ;;  %1388 = vst [vmem:[%s2291_s10 + $0x18] sm:$0xff] %v1320_v34  ;;  %v2472_v61 = vrot.slane %v2018_v48, 2  ;;  %v2474_v49 = vrot.slane %v2473_v30, 3  ;;  %v2475_v32 = vrot.slane %v2175_v19, 1 }
  0xbd   : > { %v2478_v11 = vrot.slane %v2477_v63, 5  ;;  %v2480_v48 = vrot.slane %v2479_v62, 2  ;;  %v2482_v10 = vrot.slane %v2481_v2, 4  ;;  %v2484_v54 = vrot.slane %v2483_v28, 3 }
  0xbe   : > { %v1332_v43 = vsel %vm1274_vm5, %v2472_v61, %v1330_v60  ;;  %v1344_v20 = vsel %vm1271_vm4, %v2474_v49, %v1342_v26  ;;  %v1185_v47 = vmax.f32 %v2175_v19, %v2475_v32  ;;  %v1193_v19 = vmax.f32 %v2260_v6, %v1065_v4 }
  0xbf   : > { %v1354_v9 = vsel %vm1265_vm2, %v2478_v11, %v2476_v59  ;;  %v1334_v31 = vsel %vm1277_vm6, %v1333_v0, %v1332_v43  ;;  %v1346_v5 = vsel %vm1274_vm5, %v2480_v48, %v1344_v20  ;;  %v1368_v15 = vsel %vm1265_vm2, %v1367_v35, %v1366_v1 }
  0xc0   : > { %v1356_v27 = vsel %vm1268_vm3, %v2482_v10, %v1354_v9  ;;  %1389 = vst [vmem:[%s2291_s10 + $0x20] sm:$0xff] %v1334_v31  ;;  %v1348_v51 = vsel %vm1277_vm6, %v1347_v33, %v1346_v5  ;;  %v1361_v8 = vrot.slane %v1185_v47, 1  ;;  %v2486_v17 = vrot.slane %v2485_v37, 2 }
  0xc1   : > { %v1358_v36 = vsel %vm1271_vm4, %v2484_v54, %v1356_v27  ;;  %1390 = vst [vmem:[%s2291_s10 + $0x28] sm:$0xff] %v1348_v51  ;;  %v1370_v56 = vsel %vm1268_vm3, %v1369_v55, %v1368_v15  ;;  %v1375_v6 = vrot.slane %v1193_v19, 1 }
  0xc2   : > { %v1360_v29 = vsel %vm1274_vm5, %v2486_v17, %v1358_v36  ;;  %v1372_v38 = vsel %vm1271_vm4, %v1371_v42, %v1370_v56 }
  0xc3   : > { %v1362_v4 = vsel %vm1277_vm6, %v1361_v8, %v1360_v29  ;;  %v1374_v35 = vsel %vm1274_vm5, %v1373_v14, %v1372_v38 }
  0xc4   : > { %1391 = vst [vmem:[%s2291_s10 + $0x30] sm:$0xff] %v1362_v4  ;;  %v1376_v1 = vsel %vm1277_vm6, %v1375_v6, %v1374_v35 }
  0xc5   : > { %1392 = vst [vmem:[%s2291_s10 + $0x38] sm:$0xff] %v1376_v1 }
  0xc6 PF: > { %s15_s15 = sadd.s32 1, %s1520_s15  }
  0xc7   : > { %p12_p4 = scmp.ge.s32.totalorder %s15_s15, 4  }
  0xc9   :  { %14 = sbr.rel (!%p12_p4) target bundleno = 1 (0x1), region = 74 }

</bundles_post_ra>
